<compile_context>
chip_gen: v7x
topology: tpu7x:2x2x1
jax: 0.10.0
libtpu: 0.0.40
codegen_flags: <defaults>
</compile_context>

<pallas_src>
import functools

import jax
import jax.numpy as jnp
from jax.experimental import pallas as pl
from jax.experimental.pallas import tpu as pltpu

_F32 = jnp.float32
_BF16 = jnp.bfloat16

_TM_MAX = 512                           # M-tile (lane dim); ~1.2 MB bf16 patch tile at K=1152
_MIN_PALLAS_M = 128                     # below one full lane tile the MXU is mostly idle -> XLA
_VMEM_LIMIT_BYTES = 32 * 1024 * 1024    # explicit; safe on v5e/v6e/v7x, >> what the tiles need


def _round_up(x, m):
    return ((x + m - 1) // m) * m


# ---------------------------------------------------------------------------
# Pallas kernels (transposed-product conv matmuls, fused epilogues).
# ---------------------------------------------------------------------------
def _conv_kernel(w_ref, x_ref, b_ref, o_ref, *, leaky):
    # out(Cout, tm) = W(Cout, K) @ P(K, tm) + b  [+ LeakyReLU(0.1)]
    acc = jnp.dot(w_ref[...], x_ref[...], preferred_element_type=jnp.float32)
    acc = acc + b_ref[...]
    if leaky:
        acc = jnp.where(acc >= 0.0, acc, 0.1 * acc)
    o_ref[...] = acc.astype(o_ref.dtype)


def _conv_res_kernel(w_ref, x_ref, b_ref, r_ref, o_ref):
    # BasicBlock tail (identity residual): conv2 + bias + residual, NO activation (per spec).
    acc = jnp.dot(w_ref[...], x_ref[...], preferred_element_type=jnp.float32)
    acc = acc + b_ref[...] + r_ref[...]
    o_ref[...] = acc.astype(o_ref.dtype)


def _conv_res_ds_kernel(w_ref, x_ref, b_ref, wd_ref, xs_ref, o_ref):
    # BasicBlock tail with fused 1x1 stride-s downsample: conv2 + bias + Wd @ x_strided.
    acc = jnp.dot(w_ref[...], x_ref[...], preferred_element_type=jnp.float32)
    acc = acc + jnp.dot(wd_ref[...], xs_ref[...], preferred_element_type=jnp.float32)
    acc = acc + b_ref[...]
    o_ref[...] = acc.astype(o_ref.dtype)


# ---------------------------------------------------------------------------
# Tiled pallas_call wrapper.
# ---------------------------------------------------------------------------
def _pallas_conv_mm(w2d, patches, bias, *, leaky, residual=None, wd=None, xs=None):
    """out(Cout, M) = w2d(Cout,K) @ patches(K,M) + bias [+ residual | + wd @ xs] [+ leaky]."""
    Cout, K = w2d.shape
    M = patches.shape[1]
    tm = min(_TM_MAX, _round_up(M, 128))
    Mp = _round_up(M, tm)
    if Mp != M:  # pad M (lane dim) so every grid tile is full; sliced off afterwards
        patches = jnp.pad(patches, ((0, 0), (0, Mp - M)))
        if residual is not None:
            residual = jnp.pad(residual, ((0, 0), (0, Mp - M)))
        if xs is not None:
            xs = jnp.pad(xs, ((0, 0), (0, Mp - M)))

    grid = (Mp // tm,)
    w_spec = pl.BlockSpec((Cout, K), lambda m: (0, 0))     # VMEM-resident across the grid
    x_spec = pl.BlockSpec((K, tm), lambda m: (0, m))       # pipelined / double-buffered
    b_spec = pl.BlockSpec((Cout, 1), lambda m: (0, 0))
    o_spec = pl.BlockSpec((Cout, tm), lambda m: (0, m))    # lane-dense (tm % 128 == 0)

    flops = 2 * Mp * K * Cout
    bytes_accessed = w2d.size * 2 + patches.size * 2 + bias.size * 4 + Cout * Mp * 4

    if wd is not None:
        Cin = wd.shape[1]
        flops += 2 * Mp * Cin * Cout
        bytes_accessed += wd.size * 2 + xs.size * 2
        kernel = _conv_res_ds_kernel
        in_specs = [w_spec, x_spec, b_spec,
                    pl.BlockSpec((Cout, Cin), lambda m: (0, 0)),
                    pl.BlockSpec((Cin, tm), lambda m: (0, m))]
        args = (w2d, patches, bias, wd, xs)
    elif residual is not None:
        bytes_accessed += residual.size * 4
        kernel = _conv_res_kernel
        in_specs = [w_spec, x_spec, b_spec,
                    pl.BlockSpec((Cout, tm), lambda m: (0, m))]
        args = (w2d, patches, bias, residual)
    else:
        kernel = functools.partial(_conv_kernel, leaky=leaky)
        in_specs = [w_spec, x_spec, b_spec]
        args = (w2d, patches, bias)

    out = pl.pallas_call(
        kernel,
        out_shape=jax.ShapeDtypeStruct((Cout, Mp), _F32),
        grid=grid,
        in_specs=in_specs,
        out_specs=o_spec,
        compiler_params=pltpu.CompilerParams(
            dimension_semantics=("parallel",),          # v7x: split the M axis over 2 TCs
            vmem_limit_bytes=_VMEM_LIMIT_BYTES),
        cost_estimate=pl.CostEstimate(
            flops=int(flops), transcendentals=0, bytes_accessed=int(bytes_accessed)),
    )(*args)
    return out[:, :M] if Mp != M else out


# ---------------------------------------------------------------------------
# Glue: transposed im2col (CNHW layout) + weight re-layout.
# ---------------------------------------------------------------------------
def _im2col_t(x_cnhw, kh, kw, stride, pad, dilation):
    """x: (C, N, H, W) f32 -> patches (kh*kw*C, N*Ho*Wo) bf16 (tap-major, channel-minor)."""
    C, N, H, W = x_cnhw.shape
    xb = x_cnhw.astype(_BF16)                        # halve HBM traffic of the im2col blowup
    xp = jnp.pad(xb, ((0, 0), (0, 0), (pad, pad), (pad, pad)))
    Ho = (H + 2 * pad - dilation * (kh - 1) - 1) // stride + 1
    Wo = (W + 2 * pad - dilation * (kw - 1) - 1) // stride + 1
    rows = []
    for i in range(kh):
        for j in range(kw):
            di, dj = i * dilation, j * dilation
            patch = xp[:, :,
                       di: di + (Ho - 1) * stride + 1: stride,
                       dj: dj + (Wo - 1) * stride + 1: stride]
            rows.append(patch.reshape(C, N * Ho * Wo))
    return jnp.concatenate(rows, axis=0), (N, Ho, Wo)


def _conv2d_t(x_cnhw, weight_oihw, bias, stride, pad, dilation, *, leaky=True,
              residual_cnhw=None, ds_weight=None, ds_input_cnhw=None, ds_stride=None):
    """Conv in CNHW layout via transposed im2col + Pallas matmul; weight is PyTorch OIHW."""
    Cout, Cin, kh, kw = weight_oihw.shape
    patches, (N, Ho, Wo) = _im2col_t(x_cnhw, kh, kw, stride, pad, dilation)
    M = N * Ho * Wo
    K = kh * kw * Cin

    # (O, I, kh, kw) -> (O, kh, kw, I) -> (O, kh*kw*I)   [matches patch tap-major order]
    w2d = jnp.transpose(weight_oihw, (0, 2, 3, 1)).reshape(Cout, K)
    Kp = _round_up(K, 32)                            # e.g. first conv K=27 -> 32 (alignment)
    if Kp != K:
        patches = jnp.pad(patches, ((0, Kp - K), (0, 0)))
        w2d = jnp.pad(w2d, ((0, 0), (0, Kp - K)))
    w2d = w2d.astype(_BF16)
    b2 = bias.reshape(Cout, 1).astype(_F32)

    residual = None
    if residual_cnhw is not None:
        residual = residual_cnhw.reshape(Cout, M).astype(_F32)

    wd2 = xs = None
    if ds_weight is not None:
        # 1x1 stride-s conv on the block input (no bias, no activation), fused in-kernel.
        Cd = ds_weight.shape[1]
        xs = ds_input_cnhw[:, :, ::ds_stride, ::ds_stride].reshape(Cd, M).astype(_BF16)
        wd2 = ds_weight.reshape(Cout, Cd).astype(_BF16)

    if M < _MIN_PALLAS_M:
        # Tiny tail layers (4x4 / 2x2 / 1x1 spatial): launch+DMA overhead dominates -> XLA.
        acc = jnp.dot(w2d.astype(_F32), patches.astype(_F32)) + b2
        if wd2 is not None:
            acc = acc + jnp.dot(wd2.astype(_F32), xs.astype(_F32))
        elif residual is not None:
            acc = acc + residual
        if leaky:
            acc = jnp.where(acc >= 0.0, acc, 0.1 * acc)
        out = acc
    else:
        out = _pallas_conv_mm(w2d, patches, b2, leaky=leaky,
                              residual=residual, wd=wd2, xs=xs)
    return out.reshape(Cout, N, Ho, Wo)


# ---------------------------------------------------------------------------
# Deterministic parameter construction (shapes follow the PyTorch __init__).
# ---------------------------------------------------------------------------
_CONV1_STRIDES = (2, 1, 1)


def init_encoder_params(key, in_chs, conv_chs=(32, 32, 64, 128, 128)):
    conv_chs = list(conv_chs)

    def conv_param(key, cin, cout, k, with_bias=True):
        kw_key, kb_key = jax.random.split(key)
        fan_in = cin * k * k
        w = jax.random.normal(kw_key, (cout, cin, k, k), _F32) * (2.0 / fan_in) ** 0.5
        b = (jax.random.normal(kb_key, (cout,), _F32) * 0.01
             if with_bias else jnp.zeros((cout,), _F32))
        return w, b

    keys = iter(jax.random.split(key, 256))
    params = {"conv1": [], "res_layers": []}

    c0 = conv_chs[0]
    params["conv1"].append(conv_param(next(keys), in_chs, c0, 3))
    params["conv1"].append(conv_param(next(keys), c0, c0, 3))
    params["conv1"].append(conv_param(next(keys), c0, c0, 3))

    in_c = c0
    for out_c in conv_chs[1:]:
        layer = []
        for blk_idx in range(3):                      # blocks=3 per _make_layer
            cin = in_c if blk_idx == 0 else out_c
            blk = {
                "w1b1": conv_param(next(keys), cin, out_c, 3),    # conv1: bias + LeakyReLU
                "w2b2": conv_param(next(keys), out_c, out_c, 3),  # conv2: bias, no activation
                "wd": None,                                       # downsample (first block only)
            }
            if blk_idx == 0:
                wd, _ = conv_param(next(keys), cin, out_c, 1, with_bias=False)
                blk["wd"] = wd                                    # 1x1, stride 2, bias=False
            layer.append(blk)
        params["res_layers"].append(layer)
        in_c = out_c
    return params


# ---------------------------------------------------------------------------
# Forward pass (mirrors ResNetEncoder.forward: returns outs[::-1], NCHW).
# ---------------------------------------------------------------------------
def resnet_encoder_forward(x_nchw, params):
    x = jnp.transpose(x_nchw, (1, 0, 2, 3)).astype(_F32)   # NCHW -> CNHW
    stage_outs = []

    h = x
    for (w, b), stride in zip(params["conv1"], _CONV1_STRIDES):
        h = _conv2d_t(h, w, b, stride, pad=1, dilation=1, leaky=True)
    stage_outs.append(h)

    for layer in params["res_layers"]:
        for blk_idx, blk in enumerate(layer):
            stride = 2 if blk_idx == 0 else 1
            inp = h
            w1, b1 = blk["w1b1"]
            w2, b2 = blk["w2b2"]
            h1 = _conv2d_t(inp, w1, b1, stride, pad=1, dilation=1, leaky=True)
            if blk["wd"] is not None:
                # conv2 + bias + fused 1x1 stride-2 downsample residual (single kernel).
                h = _conv2d_t(h1, w2, b2, 1, pad=1, dilation=1, leaky=False,
                              ds_weight=blk["wd"], ds_input_cnhw=inp, ds_stride=stride)
            else:
                # conv2 + bias + identity residual (single kernel). No post-add activation.
                h = _conv2d_t(h1, w2, b2, 1, pad=1, dilation=1, leaky=False,
                              residual_cnhw=inp)
        stage_outs.append(h)

    outs = [x_nchw.astype(_F32)]
    outs += [jnp.transpose(o, (1, 0, 2, 3)) for o in stage_outs]   # CNHW -> NCHW
    return outs[::-1]


# ---------------------------------------------------------------------------
if __name__ == "__main__":
    key = jax.random.PRNGKey(0)
    k_x, k_p = jax.random.split(key)

    # deterministic input: batch=2, in_chs=3, 64x64 spatial (NCHW, PyTorch convention)
    x = jax.random.normal(k_x, (2, 3, 64, 64), jnp.float32)
    params = init_encoder_params(k_p, in_chs=3, conv_chs=(32, 32, 64, 128, 128))

    fwd = jax.jit(resnet_encoder_forward)
    outs = fwd(x, params)
    outs = [jax.block_until_ready(o) for o in outs]

    # sanity: expected pyramid shapes (deepest first, raw input last)
    expected = [
        (2, 128, 2, 2),
        (2, 128, 4, 4),
        (2, 64, 8, 8),
        (2, 32, 16, 16),
        (2, 32, 32, 32),
        (2, 3, 64, 64),
    ]
    assert [tuple(o.shape) for o in outs] == expected, [tuple(o.shape) for o in outs]
    assert all(bool(jnp.all(jnp.isfinite(o))) for o in outs)

    print("KERNEL_OK")
</pallas_src>

<mosaic_0001>
module attributes {stable_mosaic.version = 11 : i64} {
  func.func @_conv_kernel(%arg0: i32, %arg1: memref<32x32xbf16, #tpu.memory_space<vmem>>, %arg2: memref<32x512xbf16, #tpu.memory_space<vmem>>, %arg3: memref<32x1xf32, #tpu.memory_space<vmem>>, %arg4: memref<32x512xf32, #tpu.memory_space<vmem>>) attributes {dimension_semantics = [#tpu.dimension_semantics<parallel>], iteration_bounds = array<i64: 4>, scalar_prefetch = 0 : i64, scratch_operands = 0 : i64, tpu.core_type = #tpu.core_type<tc>, window_params = [{pipeline_mode = #tpu.pipeline_mode<synchronous>, transform_indices = @transform_0, window_bounds = array<i64: 32, 32>}, {transform_indices = @transform_1, window_bounds = array<i64: 32, 512>}, {pipeline_mode = #tpu.pipeline_mode<synchronous>, transform_indices = @transform_2, window_bounds = array<i64: 32, 1>}, {transform_indices = @transform_3, window_bounds = array<i64: 32, 512>}]} {
    %c0 = arith.constant 0 : index
    %c0_0 = arith.constant 0 : index
    %0 = vector.load %arg1[%c0, %c0_0] : memref<32x32xbf16, #tpu.memory_space<vmem>>, vector<32x32xbf16>
    %c0_1 = arith.constant 0 : index
    %c0_2 = arith.constant 0 : index
    %1 = vector.load %arg2[%c0_1, %c0_2] : memref<32x512xbf16, #tpu.memory_space<vmem>>, vector<32x512xbf16>
    %cst = arith.constant dense<0.000000e+00> : vector<32x512xf32>
    %2 = tpu.matmul %0, %1, %cst {dimension_numbers = #tpu.dot_dimension_numbers<[1], [0], [0], [1], [0, 0, 1, 1], [], []>} : vector<32x32xbf16>, vector<32x512xbf16>, vector<32x512xf32> -> vector<32x512xf32>
    %c0_3 = arith.constant 0 : index
    %c0_4 = arith.constant 0 : index
    %3 = vector.load %arg3[%c0_3, %c0_4] : memref<32x1xf32, #tpu.memory_space<vmem>>, vector<32x1xf32>
    %4 = vector.broadcast %3 : vector<32x1xf32> to vector<32x512xf32>
    %5 = arith.addf %2, %4 : vector<32x512xf32>
    %cst_5 = arith.constant 0.000000e+00 : f32
    %6 = vector.broadcast %cst_5 : f32 to vector<32x512xf32>
    %7 = arith.cmpf oge, %5, %6 : vector<32x512xf32>
    %cst_6 = arith.constant 1.000000e-01 : f32
    %8 = vector.broadcast %cst_6 : f32 to vector<32x512xf32>
    %9 = arith.mulf %8, %5 : vector<32x512xf32>
    %10 = arith.select %7, %5, %9 : vector<32x512xi1>, vector<32x512xf32>
    %c0_7 = arith.constant 0 : index
    %c0_8 = arith.constant 0 : index
    %11 = vector.load %arg4[%c0_7, %c0_8] : memref<32x512xf32, #tpu.memory_space<vmem>>, vector<32x512xf32>
    tpu.vector_store %arg4[%c0_7, %c0_8], %10 {strides = array<i32>} : memref<32x512xf32, #tpu.memory_space<vmem>>, vector<32x512xf32>,
    return
  }
  func.func @transform_0(%arg0: i32) -> (i32, i32) {
    %c0_i32 = arith.constant 0 : i32
    %c0_i32_0 = arith.constant 0 : i32
    %c0_i32_1 = arith.constant 0 : i32
    return %c0_i32, %c0_i32_0 : i32, i32
  }
  func.func @transform_1(%arg0: i32) -> (i32, i32) {
    %c0_i32 = arith.constant 0 : i32
    %c0_i32_0 = arith.constant 0 : i32
    return %c0_i32, %arg0 : i32, i32
  }
  func.func @transform_2(%arg0: i32) -> (i32, i32) {
    %c0_i32 = arith.constant 0 : i32
    %c0_i32_0 = arith.constant 0 : i32
    %c0_i32_1 = arith.constant 0 : i32
    return %c0_i32, %c0_i32_0 : i32, i32
  }
  func.func @transform_3(%arg0: i32) -> (i32, i32) {
    %c0_i32 = arith.constant 0 : i32
    %c0_i32_0 = arith.constant 0 : i32
    return %c0_i32, %arg0 : i32, i32
  }
}

module attributes {stable_mosaic.version = 11 : i64} {
  func.func @_conv_kernel(%arg0: i32, %arg1: memref<32x288xbf16, #tpu.memory_space<vmem>>, %arg2: memref<288x512xbf16, #tpu.memory_space<vmem>>, %arg3: memref<32x1xf32, #tpu.memory_space<vmem>>, %arg4: memref<32x512xf32, #tpu.memory_space<vmem>>) attributes {dimension_semantics = [#tpu.dimension_semantics<parallel>], iteration_bounds = array<i64: 4>, scalar_prefetch = 0 : i64, scratch_operands = 0 : i64, tpu.core_type = #tpu.core_type<tc>, window_params = [{pipeline_mode = #tpu.pipeline_mode<synchronous>, transform_indices = @transform_0, window_bounds = array<i64: 32, 288>}, {transform_indices = @transform_1, window_bounds = array<i64: 288, 512>}, {pipeline_mode = #tpu.pipeline_mode<synchronous>, transform_indices = @transform_2, window_bounds = array<i64: 32, 1>}, {transform_indices = @transform_3, window_bounds = array<i64: 32, 512>}]} {
    %c0 = arith.constant 0 : index
    %c0_0 = arith.constant 0 : index
    %0 = vector.load %arg1[%c0, %c0_0] : memref<32x288xbf16, #tpu.memory_space<vmem>>, vector<32x288xbf16>
    %c0_1 = arith.constant 0 : index
    %c0_2 = arith.constant 0 : index
    %1 = vector.load %arg2[%c0_1, %c0_2] : memref<288x512xbf16, #tpu.memory_space<vmem>>, vector<288x512xbf16>
    %cst = arith.constant dense<0.000000e+00> : vector<32x512xf32>
    %2 = tpu.matmul %0, %1, %cst {dimension_numbers = #tpu.dot_dimension_numbers<[1], [0], [0], [1], [0, 0, 1, 1], [], []>} : vector<32x288xbf16>, vector<288x512xbf16>, vector<32x512xf32> -> vector<32x512xf32>
    %c0_3 = arith.constant 0 : index
    %c0_4 = arith.constant 0 : index
    %3 = vector.load %arg3[%c0_3, %c0_4] : memref<32x1xf32, #tpu.memory_space<vmem>>, vector<32x1xf32>
    %4 = vector.broadcast %3 : vector<32x1xf32> to vector<32x512xf32>
    %5 = arith.addf %2, %4 : vector<32x512xf32>
    %cst_5 = arith.constant 0.000000e+00 : f32
    %6 = vector.broadcast %cst_5 : f32 to vector<32x512xf32>
    %7 = arith.cmpf oge, %5, %6 : vector<32x512xf32>
    %cst_6 = arith.constant 1.000000e-01 : f32
    %8 = vector.broadcast %cst_6 : f32 to vector<32x512xf32>
    %9 = arith.mulf %8, %5 : vector<32x512xf32>
    %10 = arith.select %7, %5, %9 : vector<32x512xi1>, vector<32x512xf32>
    %c0_7 = arith.constant 0 : index
    %c0_8 = arith.constant 0 : index
    %11 = vector.load %arg4[%c0_7, %c0_8] : memref<32x512xf32, #tpu.memory_space<vmem>>, vector<32x512xf32>
    tpu.vector_store %arg4[%c0_7, %c0_8], %10 {strides = array<i32>} : memref<32x512xf32, #tpu.memory_space<vmem>>, vector<32x512xf32>,
    return
  }
  func.func @transform_0(%arg0: i32) -> (i32, i32) {
    %c0_i32 = arith.constant 0 : i32
    %c0_i32_0 = arith.constant 0 : i32
    %c0_i32_1 = arith.constant 0 : i32
    return %c0_i32, %c0_i32_0 : i32, i32
  }
  func.func @transform_1(%arg0: i32) -> (i32, i32) {
    %c0_i32 = arith.constant 0 : i32
    %c0_i32_0 = arith.constant 0 : i32
    return %c0_i32, %arg0 : i32, i32
  }
  func.func @transform_2(%arg0: i32) -> (i32, i32) {
    %c0_i32 = arith.constant 0 : i32
    %c0_i32_0 = arith.constant 0 : i32
    %c0_i32_1 = arith.constant 0 : i32
    return %c0_i32, %c0_i32_0 : i32, i32
  }
  func.func @transform_3(%arg0: i32) -> (i32, i32) {
    %c0_i32 = arith.constant 0 : i32
    %c0_i32_0 = arith.constant 0 : i32
    return %c0_i32, %arg0 : i32, i32
  }
}

module attributes {stable_mosaic.version = 11 : i64} {
  func.func @_conv_kernel(%arg0: i32, %arg1: memref<32x288xbf16, #tpu.memory_space<vmem>>, %arg2: memref<288x512xbf16, #tpu.memory_space<vmem>>, %arg3: memref<32x1xf32, #tpu.memory_space<vmem>>, %arg4: memref<32x512xf32, #tpu.memory_space<vmem>>) attributes {dimension_semantics = [#tpu.dimension_semantics<parallel>], iteration_bounds = array<i64: 1>, scalar_prefetch = 0 : i64, scratch_operands = 0 : i64, tpu.core_type = #tpu.core_type<tc>, window_params = [{pipeline_mode = #tpu.pipeline_mode<synchronous>, transform_indices = @transform_0, window_bounds = array<i64: 32, 288>}, {transform_indices = @transform_1, window_bounds = array<i64: 288, 512>}, {pipeline_mode = #tpu.pipeline_mode<synchronous>, transform_indices = @transform_2, window_bounds = array<i64: 32, 1>}, {transform_indices = @transform_3, window_bounds = array<i64: 32, 512>}]} {
    %c0 = arith.constant 0 : index
    %c0_0 = arith.constant 0 : index
    %0 = vector.load %arg1[%c0, %c0_0] : memref<32x288xbf16, #tpu.memory_space<vmem>>, vector<32x288xbf16>
    %c0_1 = arith.constant 0 : index
    %c0_2 = arith.constant 0 : index
    %1 = vector.load %arg2[%c0_1, %c0_2] : memref<288x512xbf16, #tpu.memory_space<vmem>>, vector<288x512xbf16>
    %cst = arith.constant dense<0.000000e+00> : vector<32x512xf32>
    %2 = tpu.matmul %0, %1, %cst {dimension_numbers = #tpu.dot_dimension_numbers<[1], [0], [0], [1], [0, 0, 1, 1], [], []>} : vector<32x288xbf16>, vector<288x512xbf16>, vector<32x512xf32> -> vector<32x512xf32>
    %c0_3 = arith.constant 0 : index
    %c0_4 = arith.constant 0 : index
    %3 = vector.load %arg3[%c0_3, %c0_4] : memref<32x1xf32, #tpu.memory_space<vmem>>, vector<32x1xf32>
    %4 = vector.broadcast %3 : vector<32x1xf32> to vector<32x512xf32>
    %5 = arith.addf %2, %4 : vector<32x512xf32>
    %cst_5 = arith.constant 0.000000e+00 : f32
    %6 = vector.broadcast %cst_5 : f32 to vector<32x512xf32>
    %7 = arith.cmpf oge, %5, %6 : vector<32x512xf32>
    %cst_6 = arith.constant 1.000000e-01 : f32
    %8 = vector.broadcast %cst_6 : f32 to vector<32x512xf32>
    %9 = arith.mulf %8, %5 : vector<32x512xf32>
    %10 = arith.select %7, %5, %9 : vector<32x512xi1>, vector<32x512xf32>
    %c0_7 = arith.constant 0 : index
    %c0_8 = arith.constant 0 : index
    %11 = vector.load %arg4[%c0_7, %c0_8] : memref<32x512xf32, #tpu.memory_space<vmem>>, vector<32x512xf32>
    tpu.vector_store %arg4[%c0_7, %c0_8], %10 {strides = array<i32>} : memref<32x512xf32, #tpu.memory_space<vmem>>, vector<32x512xf32>,
    return
  }
  func.func @transform_0(%arg0: i32) -> (i32, i32) {
    %c0_i32 = arith.constant 0 : i32
    %c0_i32_0 = arith.constant 0 : i32
    %c0_i32_1 = arith.constant 0 : i32
    return %c0_i32, %c0_i32_0 : i32, i32
  }
  func.func @transform_1(%arg0: i32) -> (i32, i32) {
    %c0_i32 = arith.constant 0 : i32
    %c0_i32_0 = arith.constant 0 : i32
    return %c0_i32, %arg0 : i32, i32
  }
  func.func @transform_2(%arg0: i32) -> (i32, i32) {
    %c0_i32 = arith.constant 0 : i32
    %c0_i32_0 = arith.constant 0 : i32
    %c0_i32_1 = arith.constant 0 : i32
    return %c0_i32, %c0_i32_0 : i32, i32
  }
  func.func @transform_3(%arg0: i32) -> (i32, i32) {
    %c0_i32 = arith.constant 0 : i32
    %c0_i32_0 = arith.constant 0 : i32
    return %c0_i32, %arg0 : i32, i32
  }
}

module attributes {stable_mosaic.version = 11 : i64} {
  func.func @_conv_res_ds_kernel(%arg0: i32, %arg1: memref<32x288xbf16, #tpu.memory_space<vmem>>, %arg2: memref<288x512xbf16, #tpu.memory_space<vmem>>, %arg3: memref<32x1xf32, #tpu.memory_space<vmem>>, %arg4: memref<32x32xbf16, #tpu.memory_space<vmem>>, %arg5: memref<32x512xbf16, #tpu.memory_space<vmem>>, %arg6: memref<32x512xf32, #tpu.memory_space<vmem>>) attributes {dimension_semantics = [#tpu.dimension_semantics<parallel>], iteration_bounds = array<i64: 1>, scalar_prefetch = 0 : i64, scratch_operands = 0 : i64, tpu.core_type = #tpu.core_type<tc>, window_params = [{pipeline_mode = #tpu.pipeline_mode<synchronous>, transform_indices = @transform_0, window_bounds = array<i64: 32, 288>}, {transform_indices = @transform_1, window_bounds = array<i64: 288, 512>}, {pipeline_mode = #tpu.pipeline_mode<synchronous>, transform_indices = @transform_2, window_bounds = array<i64: 32, 1>}, {pipeline_mode = #tpu.pipeline_mode<synchronous>, transform_indices = @transform_3, window_bounds = array<i64: 32, 32>}, {transform_indices = @transform_4, window_bounds = array<i64: 32, 512>}, {transform_indices = @transform_5, window_bounds = array<i64: 32, 512>}]} {
    %c0 = arith.constant 0 : index
    %c0_0 = arith.constant 0 : index
    %0 = vector.load %arg1[%c0, %c0_0] : memref<32x288xbf16, #tpu.memory_space<vmem>>, vector<32x288xbf16>
    %c0_1 = arith.constant 0 : index
    %c0_2 = arith.constant 0 : index
    %1 = vector.load %arg2[%c0_1, %c0_2] : memref<288x512xbf16, #tpu.memory_space<vmem>>, vector<288x512xbf16>
    %cst = arith.constant dense<0.000000e+00> : vector<32x512xf32>
    %2 = tpu.matmul %0, %1, %cst {dimension_numbers = #tpu.dot_dimension_numbers<[1], [0], [0], [1], [0, 0, 1, 1], [], []>} : vector<32x288xbf16>, vector<288x512xbf16>, vector<32x512xf32> -> vector<32x512xf32>
    %c0_3 = arith.constant 0 : index
    %c0_4 = arith.constant 0 : index
    %3 = vector.load %arg4[%c0_3, %c0_4] : memref<32x32xbf16, #tpu.memory_space<vmem>>, vector<32x32xbf16>
    %c0_5 = arith.constant 0 : index
    %c0_6 = arith.constant 0 : index
    %4 = vector.load %arg5[%c0_5, %c0_6] : memref<32x512xbf16, #tpu.memory_space<vmem>>, vector<32x512xbf16>
    %cst_7 = arith.constant dense<0.000000e+00> : vector<32x512xf32>
    %5 = tpu.matmul %3, %4, %cst_7 {dimension_numbers = #tpu.dot_dimension_numbers<[1], [0], [0], [1], [0, 0, 1, 1], [], []>} : vector<32x32xbf16>, vector<32x512xbf16>, vector<32x512xf32> -> vector<32x512xf32>
    %6 = arith.addf %2, %5 : vector<32x512xf32>
    %c0_8 = arith.constant 0 : index
    %c0_9 = arith.constant 0 : index
    %7 = vector.load %arg3[%c0_8, %c0_9] : memref<32x1xf32, #tpu.memory_space<vmem>>, vector<32x1xf32>
    %8 = vector.broadcast %7 : vector<32x1xf32> to vector<32x512xf32>
    %9 = arith.addf %6, %8 : vector<32x512xf32>
    %c0_10 = arith.constant 0 : index
    %c0_11 = arith.constant 0 : index
    %10 = vector.load %arg6[%c0_10, %c0_11] : memref<32x512xf32, #tpu.memory_space<vmem>>, vector<32x512xf32>
    tpu.vector_store %arg6[%c0_10, %c0_11], %9 {strides = array<i32>} : memref<32x512xf32, #tpu.memory_space<vmem>>, vector<32x512xf32>,
    return
  }
  func.func @transform_0(%arg0: i32) -> (i32, i32) {
    %c0_i32 = arith.constant 0 : i32
    %c0_i32_0 = arith.constant 0 : i32
    %c0_i32_1 = arith.constant 0 : i32
    return %c0_i32, %c0_i32_0 : i32, i32
  }
  func.func @transform_1(%arg0: i32) -> (i32, i32) {
    %c0_i32 = arith.constant 0 : i32
    %c0_i32_0 = arith.constant 0 : i32
    return %c0_i32, %arg0 : i32, i32
  }
  func.func @transform_2(%arg0: i32) -> (i32, i32) {
    %c0_i32 = arith.constant 0 : i32
    %c0_i32_0 = arith.constant 0 : i32
    %c0_i32_1 = arith.constant 0 : i32
    return %c0_i32, %c0_i32_0 : i32, i32
  }
  func.func @transform_3(%arg0: i32) -> (i32, i32) {
    %c0_i32 = arith.constant 0 : i32
    %c0_i32_0 = arith.constant 0 : i32
    %c0_i32_1 = arith.constant 0 : i32
    return %c0_i32, %c0_i32_0 : i32, i32
  }
  func.func @transform_4(%arg0: i32) -> (i32, i32) {
    %c0_i32 = arith.constant 0 : i32
    %c0_i32_0 = arith.constant 0 : i32
    return %c0_i32, %arg0 : i32, i32
  }
  func.func @transform_5(%arg0: i32) -> (i32, i32) {
    %c0_i32 = arith.constant 0 : i32
    %c0_i32_0 = arith.constant 0 : i32
    return %c0_i32, %arg0 : i32, i32
  }
}

module attributes {stable_mosaic.version = 11 : i64} {
  func.func @_conv_res_kernel(%arg0: i32, %arg1: memref<32x288xbf16, #tpu.memory_space<vmem>>, %arg2: memref<288x512xbf16, #tpu.memory_space<vmem>>, %arg3: memref<32x1xf32, #tpu.memory_space<vmem>>, %arg4: memref<32x512xf32, #tpu.memory_space<vmem>>, %arg5: memref<32x512xf32, #tpu.memory_space<vmem>>) attributes {dimension_semantics = [#tpu.dimension_semantics<parallel>], iteration_bounds = array<i64: 1>, scalar_prefetch = 0 : i64, scratch_operands = 0 : i64, tpu.core_type = #tpu.core_type<tc>, window_params = [{pipeline_mode = #tpu.pipeline_mode<synchronous>, transform_indices = @transform_0, window_bounds = array<i64: 32, 288>}, {transform_indices = @transform_1, window_bounds = array<i64: 288, 512>}, {pipeline_mode = #tpu.pipeline_mode<synchronous>, transform_indices = @transform_2, window_bounds = array<i64: 32, 1>}, {transform_indices = @transform_3, window_bounds = array<i64: 32, 512>}, {transform_indices = @transform_4, window_bounds = array<i64: 32, 512>}]} {
    %c0 = arith.constant 0 : index
    %c0_0 = arith.constant 0 : index
    %0 = vector.load %arg1[%c0, %c0_0] : memref<32x288xbf16, #tpu.memory_space<vmem>>, vector<32x288xbf16>
    %c0_1 = arith.constant 0 : index
    %c0_2 = arith.constant 0 : index
    %1 = vector.load %arg2[%c0_1, %c0_2] : memref<288x512xbf16, #tpu.memory_space<vmem>>, vector<288x512xbf16>
    %cst = arith.constant dense<0.000000e+00> : vector<32x512xf32>
    %2 = tpu.matmul %0, %1, %cst {dimension_numbers = #tpu.dot_dimension_numbers<[1], [0], [0], [1], [0, 0, 1, 1], [], []>} : vector<32x288xbf16>, vector<288x512xbf16>, vector<32x512xf32> -> vector<32x512xf32>
    %c0_3 = arith.constant 0 : index
    %c0_4 = arith.constant 0 : index
    %3 = vector.load %arg3[%c0_3, %c0_4] : memref<32x1xf32, #tpu.memory_space<vmem>>, vector<32x1xf32>
    %4 = vector.broadcast %3 : vector<32x1xf32> to vector<32x512xf32>
    %5 = arith.addf %2, %4 : vector<32x512xf32>
    %c0_5 = arith.constant 0 : index
    %c0_6 = arith.constant 0 : index
    %6 = vector.load %arg4[%c0_5, %c0_6] : memref<32x512xf32, #tpu.memory_space<vmem>>, vector<32x512xf32>
    %7 = arith.addf %5, %6 : vector<32x512xf32>
    %c0_7 = arith.constant 0 : index
    %c0_8 = arith.constant 0 : index
    %8 = vector.load %arg5[%c0_7, %c0_8] : memref<32x512xf32, #tpu.memory_space<vmem>>, vector<32x512xf32>
    tpu.vector_store %arg5[%c0_7, %c0_8], %7 {strides = array<i32>} : memref<32x512xf32, #tpu.memory_space<vmem>>, vector<32x512xf32>,
    return
  }
  func.func @transform_0(%arg0: i32) -> (i32, i32) {
    %c0_i32 = arith.constant 0 : i32
    %c0_i32_0 = arith.constant 0 : i32
    %c0_i32_1 = arith.constant 0 : i32
    return %c0_i32, %c0_i32_0 : i32, i32
  }
  func.func @transform_1(%arg0: i32) -> (i32, i32) {
    %c0_i32 = arith.constant 0 : i32
    %c0_i32_0 = arith.constant 0 : i32
    return %c0_i32, %arg0 : i32, i32
  }
  func.func @transform_2(%arg0: i32) -> (i32, i32) {
    %c0_i32 = arith.constant 0 : i32
    %c0_i32_0 = arith.constant 0 : i32
    %c0_i32_1 = arith.constant 0 : i32
    return %c0_i32, %c0_i32_0 : i32, i32
  }
  func.func @transform_3(%arg0: i32) -> (i32, i32) {
    %c0_i32 = arith.constant 0 : i32
    %c0_i32_0 = arith.constant 0 : i32
    return %c0_i32, %arg0 : i32, i32
  }
  func.func @transform_4(%arg0: i32) -> (i32, i32) {
    %c0_i32 = arith.constant 0 : i32
    %c0_i32_0 = arith.constant 0 : i32
    return %c0_i32, %arg0 : i32, i32
  }
}

module attributes {stable_mosaic.version = 11 : i64} {
  func.func @_conv_kernel(%arg0: i32, %arg1: memref<64x288xbf16, #tpu.memory_space<vmem>>, %arg2: memref<288x128xbf16, #tpu.memory_space<vmem>>, %arg3: memref<64x1xf32, #tpu.memory_space<vmem>>, %arg4: memref<64x128xf32, #tpu.memory_space<vmem>>) attributes {dimension_semantics = [#tpu.dimension_semantics<parallel>], iteration_bounds = array<i64: 1>, scalar_prefetch = 0 : i64, scratch_operands = 0 : i64, tpu.core_type = #tpu.core_type<tc>, window_params = [{pipeline_mode = #tpu.pipeline_mode<synchronous>, transform_indices = @transform_0, window_bounds = array<i64: 64, 288>}, {transform_indices = @transform_1, window_bounds = array<i64: 288, 128>}, {pipeline_mode = #tpu.pipeline_mode<synchronous>, transform_indices = @transform_2, window_bounds = array<i64: 64, 1>}, {transform_indices = @transform_3, window_bounds = array<i64: 64, 128>}]} {
    %c0 = arith.constant 0 : index
    %c0_0 = arith.constant 0 : index
    %0 = vector.load %arg1[%c0, %c0_0] : memref<64x288xbf16, #tpu.memory_space<vmem>>, vector<64x288xbf16>
    %c0_1 = arith.constant 0 : index
    %c0_2 = arith.constant 0 : index
    %1 = vector.load %arg2[%c0_1, %c0_2] : memref<288x128xbf16, #tpu.memory_space<vmem>>, vector<288x128xbf16>
    %cst = arith.constant dense<0.000000e+00> : vector<64x128xf32>
    %2 = tpu.matmul %0, %1, %cst {dimension_numbers = #tpu.dot_dimension_numbers<[1], [0], [0], [1], [0, 0, 1, 1], [], []>} : vector<64x288xbf16>, vector<288x128xbf16>, vector<64x128xf32> -> vector<64x128xf32>
    %c0_3 = arith.constant 0 : index
    %c0_4 = arith.constant 0 : index
    %3 = vector.load %arg3[%c0_3, %c0_4] : memref<64x1xf32, #tpu.memory_space<vmem>>, vector<64x1xf32>
    %4 = vector.broadcast %3 : vector<64x1xf32> to vector<64x128xf32>
    %5 = arith.addf %2, %4 : vector<64x128xf32>
    %cst_5 = arith.constant 0.000000e+00 : f32
    %6 = vector.broadcast %cst_5 : f32 to vector<64x128xf32>
    %7 = arith.cmpf oge, %5, %6 : vector<64x128xf32>
    %cst_6 = arith.constant 1.000000e-01 : f32
    %8 = vector.broadcast %cst_6 : f32 to vector<64x128xf32>
    %9 = arith.mulf %8, %5 : vector<64x128xf32>
    %10 = arith.select %7, %5, %9 : vector<64x128xi1>, vector<64x128xf32>
    %c0_7 = arith.constant 0 : index
    %c0_8 = arith.constant 0 : index
    %11 = vector.load %arg4[%c0_7, %c0_8] : memref<64x128xf32, #tpu.memory_space<vmem>>, vector<64x128xf32>
    tpu.vector_store %arg4[%c0_7, %c0_8], %10 {strides = array<i32>} : memref<64x128xf32, #tpu.memory_space<vmem>>, vector<64x128xf32>,
    return
  }
  func.func @transform_0(%arg0: i32) -> (i32, i32) {
    %c0_i32 = arith.constant 0 : i32
    %c0_i32_0 = arith.constant 0 : i32
    %c0_i32_1 = arith.constant 0 : i32
    return %c0_i32, %c0_i32_0 : i32, i32
  }
  func.func @transform_1(%arg0: i32) -> (i32, i32) {
    %c0_i32 = arith.constant 0 : i32
    %c0_i32_0 = arith.constant 0 : i32
    return %c0_i32, %arg0 : i32, i32
  }
  func.func @transform_2(%arg0: i32) -> (i32, i32) {
    %c0_i32 = arith.constant 0 : i32
    %c0_i32_0 = arith.constant 0 : i32
    %c0_i32_1 = arith.constant 0 : i32
    return %c0_i32, %c0_i32_0 : i32, i32
  }
  func.func @transform_3(%arg0: i32) -> (i32, i32) {
    %c0_i32 = arith.constant 0 : i32
    %c0_i32_0 = arith.constant 0 : i32
    return %c0_i32, %arg0 : i32, i32
  }
}

module attributes {stable_mosaic.version = 11 : i64} {
  func.func @_conv_res_ds_kernel(%arg0: i32, %arg1: memref<64x576xbf16, #tpu.memory_space<vmem>>, %arg2: memref<576x128xbf16, #tpu.memory_space<vmem>>, %arg3: memref<64x1xf32, #tpu.memory_space<vmem>>, %arg4: memref<64x32xbf16, #tpu.memory_space<vmem>>, %arg5: memref<32x128xbf16, #tpu.memory_space<vmem>>, %arg6: memref<64x128xf32, #tpu.memory_space<vmem>>) attributes {dimension_semantics = [#tpu.dimension_semantics<parallel>], iteration_bounds = array<i64: 1>, scalar_prefetch = 0 : i64, scratch_operands = 0 : i64, tpu.core_type = #tpu.core_type<tc>, window_params = [{pipeline_mode = #tpu.pipeline_mode<synchronous>, transform_indices = @transform_0, window_bounds = array<i64: 64, 576>}, {transform_indices = @transform_1, window_bounds = array<i64: 576, 128>}, {pipeline_mode = #tpu.pipeline_mode<synchronous>, transform_indices = @transform_2, window_bounds = array<i64: 64, 1>}, {pipeline_mode = #tpu.pipeline_mode<synchronous>, transform_indices = @transform_3, window_bounds = array<i64: 64, 32>}, {transform_indices = @transform_4, window_bounds = array<i64: 32, 128>}, {transform_indices = @transform_5, window_bounds = array<i64: 64, 128>}]} {
    %c0 = arith.constant 0 : index
    %c0_0 = arith.constant 0 : index
    %0 = vector.load %arg1[%c0, %c0_0] : memref<64x576xbf16, #tpu.memory_space<vmem>>, vector<64x576xbf16>
    %c0_1 = arith.constant 0 : index
    %c0_2 = arith.constant 0 : index
    %1 = vector.load %arg2[%c0_1, %c0_2] : memref<576x128xbf16, #tpu.memory_space<vmem>>, vector<576x128xbf16>
    %cst = arith.constant dense<0.000000e+00> : vector<64x128xf32>
    %2 = tpu.matmul %0, %1, %cst {dimension_numbers = #tpu.dot_dimension_numbers<[1], [0], [0], [1], [0, 0, 1, 1], [], []>} : vector<64x576xbf16>, vector<576x128xbf16>, vector<64x128xf32> -> vector<64x128xf32>
    %c0_3 = arith.constant 0 : index
    %c0_4 = arith.constant 0 : index
    %3 = vector.load %arg4[%c0_3, %c0_4] : memref<64x32xbf16, #tpu.memory_space<vmem>>, vector<64x32xbf16>
    %c0_5 = arith.constant 0 : index
    %c0_6 = arith.constant 0 : index
    %4 = vector.load %arg5[%c0_5, %c0_6] : memref<32x128xbf16, #tpu.memory_space<vmem>>, vector<32x128xbf16>
    %cst_7 = arith.constant dense<0.000000e+00> : vector<64x128xf32>
    %5 = tpu.matmul %3, %4, %cst_7 {dimension_numbers = #tpu.dot_dimension_numbers<[1], [0], [0], [1], [0, 0, 1, 1], [], []>} : vector<64x32xbf16>, vector<32x128xbf16>, vector<64x128xf32> -> vector<64x128xf32>
    %6 = arith.addf %2, %5 : vector<64x128xf32>
    %c0_8 = arith.constant 0 : index
    %c0_9 = arith.constant 0 : index
    %7 = vector.load %arg3[%c0_8, %c0_9] : memref<64x1xf32, #tpu.memory_space<vmem>>, vector<64x1xf32>
    %8 = vector.broadcast %7 : vector<64x1xf32> to vector<64x128xf32>
    %9 = arith.addf %6, %8 : vector<64x128xf32>
    %c0_10 = arith.constant 0 : index
    %c0_11 = arith.constant 0 : index
    %10 = vector.load %arg6[%c0_10, %c0_11] : memref<64x128xf32, #tpu.memory_space<vmem>>, vector<64x128xf32>
    tpu.vector_store %arg6[%c0_10, %c0_11], %9 {strides = array<i32>} : memref<64x128xf32, #tpu.memory_space<vmem>>, vector<64x128xf32>,
    return
  }
  func.func @transform_0(%arg0: i32) -> (i32, i32) {
    %c0_i32 = arith.constant 0 : i32
    %c0_i32_0 = arith.constant 0 : i32
    %c0_i32_1 = arith.constant 0 : i32
    return %c0_i32, %c0_i32_0 : i32, i32
  }
  func.func @transform_1(%arg0: i32) -> (i32, i32) {
    %c0_i32 = arith.constant 0 : i32
    %c0_i32_0 = arith.constant 0 : i32
    return %c0_i32, %arg0 : i32, i32
  }
  func.func @transform_2(%arg0: i32) -> (i32, i32) {
    %c0_i32 = arith.constant 0 : i32
    %c0_i32_0 = arith.constant 0 : i32
    %c0_i32_1 = arith.constant 0 : i32
    return %c0_i32, %c0_i32_0 : i32, i32
  }
  func.func @transform_3(%arg0: i32) -> (i32, i32) {
    %c0_i32 = arith.constant 0 : i32
    %c0_i32_0 = arith.constant 0 : i32
    %c0_i32_1 = arith.constant 0 : i32
    return %c0_i32, %c0_i32_0 : i32, i32
  }
  func.func @transform_4(%arg0: i32) -> (i32, i32) {
    %c0_i32 = arith.constant 0 : i32
    %c0_i32_0 = arith.constant 0 : i32
    return %c0_i32, %arg0 : i32, i32
  }
  func.func @transform_5(%arg0: i32) -> (i32, i32) {
    %c0_i32 = arith.constant 0 : i32
    %c0_i32_0 = arith.constant 0 : i32
    return %c0_i32, %arg0 : i32, i32
  }
}

module attributes {stable_mosaic.version = 11 : i64} {
  func.func @_conv_kernel(%arg0: i32, %arg1: memref<64x576xbf16, #tpu.memory_space<vmem>>, %arg2: memref<576x128xbf16, #tpu.memory_space<vmem>>, %arg3: memref<64x1xf32, #tpu.memory_space<vmem>>, %arg4: memref<64x128xf32, #tpu.memory_space<vmem>>) attributes {dimension_semantics = [#tpu.dimension_semantics<parallel>], iteration_bounds = array<i64: 1>, scalar_prefetch = 0 : i64, scratch_operands = 0 : i64, tpu.core_type = #tpu.core_type<tc>, window_params = [{pipeline_mode = #tpu.pipeline_mode<synchronous>, transform_indices = @transform_0, window_bounds = array<i64: 64, 576>}, {transform_indices = @transform_1, window_bounds = array<i64: 576, 128>}, {pipeline_mode = #tpu.pipeline_mode<synchronous>, transform_indices = @transform_2, window_bounds = array<i64: 64, 1>}, {transform_indices = @transform_3, window_bounds = array<i64: 64, 128>}]} {
    %c0 = arith.constant 0 : index
    %c0_0 = arith.constant 0 : index
    %0 = vector.load %arg1[%c0, %c0_0] : memref<64x576xbf16, #tpu.memory_space<vmem>>, vector<64x576xbf16>
    %c0_1 = arith.constant 0 : index
    %c0_2 = arith.constant 0 : index
    %1 = vector.load %arg2[%c0_1, %c0_2] : memref<576x128xbf16, #tpu.memory_space<vmem>>, vector<576x128xbf16>
    %cst = arith.constant dense<0.000000e+00> : vector<64x128xf32>
    %2 = tpu.matmul %0, %1, %cst {dimension_numbers = #tpu.dot_dimension_numbers<[1], [0], [0], [1], [0, 0, 1, 1], [], []>} : vector<64x576xbf16>, vector<576x128xbf16>, vector<64x128xf32> -> vector<64x128xf32>
    %c0_3 = arith.constant 0 : index
    %c0_4 = arith.constant 0 : index
    %3 = vector.load %arg3[%c0_3, %c0_4] : memref<64x1xf32, #tpu.memory_space<vmem>>, vector<64x1xf32>
    %4 = vector.broadcast %3 : vector<64x1xf32> to vector<64x128xf32>
    %5 = arith.addf %2, %4 : vector<64x128xf32>
    %cst_5 = arith.constant 0.000000e+00 : f32
    %6 = vector.broadcast %cst_5 : f32 to vector<64x128xf32>
    %7 = arith.cmpf oge, %5, %6 : vector<64x128xf32>
    %cst_6 = arith.constant 1.000000e-01 : f32
    %8 = vector.broadcast %cst_6 : f32 to vector<64x128xf32>
    %9 = arith.mulf %8, %5 : vector<64x128xf32>
    %10 = arith.select %7, %5, %9 : vector<64x128xi1>, vector<64x128xf32>
    %c0_7 = arith.constant 0 : index
    %c0_8 = arith.constant 0 : index
    %11 = vector.load %arg4[%c0_7, %c0_8] : memref<64x128xf32, #tpu.memory_space<vmem>>, vector<64x128xf32>
    tpu.vector_store %arg4[%c0_7, %c0_8], %10 {strides = array<i32>} : memref<64x128xf32, #tpu.memory_space<vmem>>, vector<64x128xf32>,
    return
  }
  func.func @transform_0(%arg0: i32) -> (i32, i32) {
    %c0_i32 = arith.constant 0 : i32
    %c0_i32_0 = arith.constant 0 : i32
    %c0_i32_1 = arith.constant 0 : i32
    return %c0_i32, %c0_i32_0 : i32, i32
  }
  func.func @transform_1(%arg0: i32) -> (i32, i32) {
    %c0_i32 = arith.constant 0 : i32
    %c0_i32_0 = arith.constant 0 : i32
    return %c0_i32, %arg0 : i32, i32
  }
  func.func @transform_2(%arg0: i32) -> (i32, i32) {
    %c0_i32 = arith.constant 0 : i32
    %c0_i32_0 = arith.constant 0 : i32
    %c0_i32_1 = arith.constant 0 : i32
    return %c0_i32, %c0_i32_0 : i32, i32
  }
  func.func @transform_3(%arg0: i32) -> (i32, i32) {
    %c0_i32 = arith.constant 0 : i32
    %c0_i32_0 = arith.constant 0 : i32
    return %c0_i32, %arg0 : i32, i32
  }
}

module attributes {stable_mosaic.version = 11 : i64} {
  func.func @_conv_res_kernel(%arg0: i32, %arg1: memref<64x576xbf16, #tpu.memory_space<vmem>>, %arg2: memref<576x128xbf16, #tpu.memory_space<vmem>>, %arg3: memref<64x1xf32, #tpu.memory_space<vmem>>, %arg4: memref<64x128xf32, #tpu.memory_space<vmem>>, %arg5: memref<64x128xf32, #tpu.memory_space<vmem>>) attributes {dimension_semantics = [#tpu.dimension_semantics<parallel>], iteration_bounds = array<i64: 1>, scalar_prefetch = 0 : i64, scratch_operands = 0 : i64, tpu.core_type = #tpu.core_type<tc>, window_params = [{pipeline_mode = #tpu.pipeline_mode<synchronous>, transform_indices = @transform_0, window_bounds = array<i64: 64, 576>}, {transform_indices = @transform_1, window_bounds = array<i64: 576, 128>}, {pipeline_mode = #tpu.pipeline_mode<synchronous>, transform_indices = @transform_2, window_bounds = array<i64: 64, 1>}, {transform_indices = @transform_3, window_bounds = array<i64: 64, 128>}, {transform_indices = @transform_4, window_bounds = array<i64: 64, 128>}]} {
    %c0 = arith.constant 0 : index
    %c0_0 = arith.constant 0 : index
    %0 = vector.load %arg1[%c0, %c0_0] : memref<64x576xbf16, #tpu.memory_space<vmem>>, vector<64x576xbf16>
    %c0_1 = arith.constant 0 : index
    %c0_2 = arith.constant 0 : index
    %1 = vector.load %arg2[%c0_1, %c0_2] : memref<576x128xbf16, #tpu.memory_space<vmem>>, vector<576x128xbf16>
    %cst = arith.constant dense<0.000000e+00> : vector<64x128xf32>
    %2 = tpu.matmul %0, %1, %cst {dimension_numbers = #tpu.dot_dimension_numbers<[1], [0], [0], [1], [0, 0, 1, 1], [], []>} : vector<64x576xbf16>, vector<576x128xbf16>, vector<64x128xf32> -> vector<64x128xf32>
    %c0_3 = arith.constant 0 : index
    %c0_4 = arith.constant 0 : index
    %3 = vector.load %arg3[%c0_3, %c0_4] : memref<64x1xf32, #tpu.memory_space<vmem>>, vector<64x1xf32>
    %4 = vector.broadcast %3 : vector<64x1xf32> to vector<64x128xf32>
    %5 = arith.addf %2, %4 : vector<64x128xf32>
    %c0_5 = arith.constant 0 : index
    %c0_6 = arith.constant 0 : index
    %6 = vector.load %arg4[%c0_5, %c0_6] : memref<64x128xf32, #tpu.memory_space<vmem>>, vector<64x128xf32>
    %7 = arith.addf %5, %6 : vector<64x128xf32>
    %c0_7 = arith.constant 0 : index
    %c0_8 = arith.constant 0 : index
    %8 = vector.load %arg5[%c0_7, %c0_8] : memref<64x128xf32, #tpu.memory_space<vmem>>, vector<64x128xf32>
    tpu.vector_store %arg5[%c0_7, %c0_8], %7 {strides = array<i32>} : memref<64x128xf32, #tpu.memory_space<vmem>>, vector<64x128xf32>,
    return
  }
  func.func @transform_0(%arg0: i32) -> (i32, i32) {
    %c0_i32 = arith.constant 0 : i32
    %c0_i32_0 = arith.constant 0 : i32
    %c0_i32_1 = arith.constant 0 : i32
    return %c0_i32, %c0_i32_0 : i32, i32
  }
  func.func @transform_1(%arg0: i32) -> (i32, i32) {
    %c0_i32 = arith.constant 0 : i32
    %c0_i32_0 = arith.constant 0 : i32
    return %c0_i32, %arg0 : i32, i32
  }
  func.func @transform_2(%arg0: i32) -> (i32, i32) {
    %c0_i32 = arith.constant 0 : i32
    %c0_i32_0 = arith.constant 0 : i32
    %c0_i32_1 = arith.constant 0 : i32
    return %c0_i32, %c0_i32_0 : i32, i32
  }
  func.func @transform_3(%arg0: i32) -> (i32, i32) {
    %c0_i32 = arith.constant 0 : i32
    %c0_i32_0 = arith.constant 0 : i32
    return %c0_i32, %arg0 : i32, i32
  }
  func.func @transform_4(%arg0: i32) -> (i32, i32) {
    %c0_i32 = arith.constant 0 : i32
    %c0_i32_0 = arith.constant 0 : i32
    return %c0_i32, %arg0 : i32, i32
  }
}

</mosaic_0001>

<bundles_post_ra>
// kernel: resnet_encoder_forward.15
= control target key start
LH: loop header
LB: loop body
LE: loop exit
PB: predicated region body
PF: predicated region fallthrough
CT: control target
= control target key end

     0   :  { %s695_s12 = smov 0   ;;  %s697_s13 = smov 0   ;;  %s811_s0 = inlined_call_operand.vmem [shape: bf16[32,32], index: 0, kind: input, shape index: {}]   ;;  %s812_s1 = inlined_call_operand.vmem [shape: bf16[32,2048], index: 1, kind: input, shape index: {}]   ;;  %s813_s2 = inlined_call_operand.vmem [shape: f32[32,1], index: 2, kind: input, shape index: {}]   ;;  %s814_s3 = inlined_call_operand.vmem [shape: f32[32,2048], index: 3, kind: output, shape index: {}]  }
   0x1   :  { %s699_s14 = smov 0  }
   0x2 LB: > { %s578_s15 = sadd.s32 4294967295, %s672_s14   ;;  %s712_s16 = sadd.s32 1, %s672_s14   ;;  %s672_s14 = sphi %s699_s14, %s818_s14   ;;  %s668_s13 = sphi %s697_s13, %s817_s13   ;;  %s664_s12 = sphi %s695_s12, %s816_s12  }
   0x3   : > { %s38_s17 = ssub.s32 %s672_s14, %s712_s16  ;;  %s41_s18 = sadd.s32 1, %s668_s13 }
   0x4   : > { %p39_p0 = scmp.eq.s32.totalorder %s38_s17, 0  ;;  %p48_p1 = scmp.ne.s32.totalorder %s668_s13, %s664_s12 }
   0x5   : > { %p49_p2 = scmp.eq.s32.totalorder %s672_s14, 0  ;;  %p99_p3 = scmp.eq.s32.totalorder %s578_s15, 3 }
   0x6   : > { %s723_s19 = scalar_select %p39_p0, %s668_s13, %s41_s18  }
   0x7   : > { %p50_p4 = por %p49_p2, %p48_p1  ;;  %p725_p5 = por %p99_p3, %p48_p1 }
   0x8   : > { %p581_p6 = scmp.ge.s32.totalorder %s672_s14, 4 }
   0xa   : > { %127 = sbr.rel (%p581_p6) target bundleno = 25 (0x19), region = 24 }
  0x11   : > { %130 = sbr.rel (!%p50_p4) target bundleno = 25 (0x19), region = 28  ;;  %s132_s21 = sand.u32 (%p50_p4), 1, %s668_s13  }
  0x12   : > { %s607_s22 = sshll.u32 (%p50_p4), %s672_s14, 4  ;;  %s582_s23 = sshll.u32 (%p50_p4), %s132_s21, 6 }
  0x13   : > { %s137_s26 = scalar_lea.vmem (%p50_p4), %s812_s1, %s607_s22  ;;  %s134_s27 = scalar_lea.vmem (%p50_p4), [#allocation2], %s582_s23 }
  0x14   : > { %v150_v0 = vld [vmem:[%s137_s26] sm:$0xff] (%p50_p4)  ;;  %v152_v1 = vld [vmem:[%s137_s26 + $0x8] sm:$0xff] (%p50_p4) }
  0x15   : > { %v154_v2 = vld [vmem:[%s137_s26 + $0x40] sm:$0xff] (%p50_p4)  ;;  %151 = vst [vmem:[%s134_s27] sm:$0xff] (%p50_p4), %v150_v0  ;;  %153 = vst [vmem:[%s134_s27 + $0x8] sm:$0xff] (%p50_p4), %v152_v1  ;;  %v156_v3 = vld [vmem:[%s137_s26 + $0x48] sm:$0xff] (%p50_p4) }
  0x16   : > { %155 = vst [vmem:[%s134_s27 + $0x10] sm:$0xff] (%p50_p4), %v154_v2  ;;  %v158_v4 = vld [vmem:[%s137_s26 + $0x80] sm:$0xff] (%p50_p4)  ;;  %v160_v5 = vld [vmem:[%s137_s26 + $0x88] sm:$0xff] (%p50_p4)  ;;  %157 = vst [vmem:[%s134_s27 + $0x18] sm:$0xff] (%p50_p4), %v156_v3 }
  0x17   : > { %159 = vst [vmem:[%s134_s27 + $0x20] sm:$0xff] (%p50_p4), %v158_v4  ;;  %161 = vst [vmem:[%s134_s27 + $0x28] sm:$0xff] (%p50_p4), %v160_v5  ;;  %v162_v6 = vld [vmem:[%s137_s26 + $0xc0] sm:$0xff] (%p50_p4)  ;;  %v164_v7 = vld [vmem:[%s137_s26 + $0xc8] sm:$0xff] (%p50_p4) }
  0x18   : > { %163 = vst [vmem:[%s134_s27 + $0x30] sm:$0xff] %v162_v6  ;;  %165 = vst [vmem:[%s134_s27 + $0x38] sm:$0xff] %v164_v7 }
  0x19 PF: > { %p585_p7 = scmp.ge.s32.totalorder %s672_s14, 1  ;;  %p170_p8 = scmp.lt.s32.totalorder %s672_s14, 5 }
  0x1b   : > { %p171_p9 = pnand %p585_p7, %p170_p8 }
  0x1c   : > { %s177_s28 = sand.u32 (!%p171_p9), 1, %s664_s12   ;;  %v674_v8 = vmov (!%p171_p9), 0   ;;  %v214_v9 = vld [vmem:[%s813_s2] sm:$0xff] (!%p171_p9)  ;;  %v215_v18 = vld [vmem:[%s813_s2 + $0x8] sm:$0xff] (!%p171_p9)  ;;  %v216_v19 = vld [vmem:[%s813_s2 + $0x10] sm:$0xff] (!%p171_p9)  ;;  %vm288_vm0 = vcmask (!%p171_p9), 261120  }
  0x1d   : > { %174 = sbr.rel (%p171_p9) target bundleno = 280 (0x118), region = 51  ;;  %s586_s29 = sshll.u32 (!%p171_p9), %s177_s28, 6  ;;  %327 = vmatprep.mubr.bf16.mxu0 (!%p171_p9), %v674_v8  ;;  %380 = vmatprep.mubr.bf16.mxu1 (!%p171_p9), %v674_v8  ;;  %v648_v20 = vld [vmem:[%s811_s0] sm:$0xff] (!%p171_p9)   ;;  %v217_v21 = vld [vmem:[%s813_s2 + $0x18] sm:$0xff] (!%p171_p9)  ;;  %v649_v22 = vld [vmem:[%s811_s0 + $0x8] sm:$0xff] (!%p171_p9)  }
  0x1e   : > { %634 = vset.pattern.permute.xlu0 (!%p171_p9), %v674_v8  ;;  %635 = vset.pattern.permute.xlu1 (!%p171_p9), %v674_v8  ;;  %s179_s5 = scalar_lea.vmem (!%p171_p9), [#allocation2], %s586_s29  ;;  %s587_s23 = sshll.u32 (!%p171_p9), %s177_s28, 7 }
  0x1f   : > { %v636_v10 = vld [vmem:[%s179_s5 + $0x4] ss:$16 sps:$4 sm:$0xff] (!%p171_p9)   ;;  %220 = vperm.xlu0 (!%p171_p9), %634, %v214_v9   ;;  %v638_v11 = vld [vmem:[%s179_s5 + $0xc] ss:$16 sps:$4 sm:$0xff] (!%p171_p9)   ;;  %v640_v12 = vld [vmem:[%s179_s5] ss:$16 sps:$4 sm:$0xff] (!%p171_p9)   ;;  %230 = vperm.xlu1 (!%p171_p9), %635, %v216_v19  }
  0x20   : > { %295 = vmatprep.subr.bf16.mxu0 (!%p171_p9), %v636_v10  ;;  %v641_v13 = vld [vmem:[%s179_s5 + $0x8] ss:$16 sps:$4 sm:$0xff] (!%p171_p9)   ;;  %348 = vmatprep.subr.bf16.mxu1 (!%p171_p9), %v638_v11  ;;  %v642_v14 = vld [vmem:[%s179_s5 + $0x24] ss:$16 sps:$4 sm:$0xff] (!%p171_p9)   ;;  %v644_v15 = vld [vmem:[%s179_s5 + $0x2c] ss:$16 sps:$4 sm:$0xff] (!%p171_p9)  }
  0x21   : > { %296 = vmatpush1.bf16.msra.mxu0 (!%p171_p9), %v640_v12  ;;  %349 = vmatpush1.bf16.msra.mxu1 (!%p171_p9), %v641_v13  ;;  %v646_v16 = vld [vmem:[%s179_s5 + $0x20] ss:$16 sps:$4 sm:$0xff] (!%p171_p9)   ;;  %v647_v17 = vld [vmem:[%s179_s5 + $0x28] ss:$16 sps:$4 sm:$0xff] (!%p171_p9)   ;;  %s760_s12 = scalar_lea.vmem (!%p171_p9), [#allocation3], %s587_s23 }
  0x22   : > { %297 = vmatprep.subr.bf16.mxu0 (!%p171_p9), %v642_v14  ;;  %350 = vmatprep.subr.bf16.mxu1 (!%p171_p9), %v644_v15 }
  0x23   : > { %225 = vperm.xlu0 (!%p171_p9), %634, %v215_v18   ;;  %235 = vperm.xlu1 (!%p171_p9), %635, %v217_v21  }
  0x24   : > { %s608_s24 = sshll.u32 (%p725_p5), %s578_s15, 5 }
  0x25   : > { %298 = vmatpush1.bf16.msra.mxu0 %v646_v16  ;;  %351 = vmatpush1.bf16.msra.mxu1 %v647_v17  ;;  %s474_s20 = scalar_lea.vmem (%p725_p5), %s814_s3, %s608_s24 }
  0x28   : > { %598 = vmatmul.mubr.msk.bf16.vlgmr.msra.gmra.mrb[0].mxu0 %vm288_vm0, %v648_v20  ;;  %600 = vmatmul.mubr.msk.bf16.vlgmr.msra.gmra.mrb[0].mxu1 %vm288_vm0, %v648_v20 }
  0x29   : > { %337 = vmatprep.mubr.bf16.mxu0 %v674_v8  ;;  %390 = vmatprep.mubr.bf16.mxu1 %v674_v8 }
  0x30   : > { %599 = vmatmul.mubr.msk.bf16.gmra.mrb[4].mxu0 %vm288_vm0, %v649_v22  ;;  %601 = vmatmul.mubr.msk.bf16.gmra.mrb[4].mxu1 %vm288_vm0, %v649_v22 }
  0x9e   : > { %v221_v23 = vpop.permute.xlu0 %220  ;;  %v231_v51 = vpop.permute.xlu1 %230 }
  0xa2   : > { %v226_v24 = vpop.permute.xlu0 %225  ;;  %v236_v6 = vpop.permute.xlu1 %235 }
  0xfb   : > { %v329_v25 = vpop.f32.mrb[0].mxu0  ;;  %v382_v26 = vpop.f32.mrb[0].mxu1 }
  0xfc   : > { %v330_v27 = vadd.f32 %v329_v25, %v221_v23  ;;  %v383_v28 = vadd.f32 %v382_v26, %v221_v23  ;;  %v331_v29 = vpop.f32.mrb[1].mxu0  ;;  %v384_v30 = vpop.f32.mrb[1].mxu1 }
  0xfd   : > { %v332_v31 = vadd.f32 %v331_v29, %v221_v23  ;;  %v385_v32 = vadd.f32 %v384_v30, %v221_v23  ;;  %v333_v33 = vpop.f32.mrb[2].mxu0  ;;  %v386_v34 = vpop.f32.mrb[2].mxu1 }
  0xfe   : > { %vm401_vm1 = vcmp.ge.f32.partialorder %v330_v27, 0.0  ;;  %v417_v35 = vmul.f32 0.1, %v330_v27  ;;  %vm403_vm2 = vcmp.ge.f32.partialorder %v383_v28, 0.0  ;;  %v419_v36 = vmul.f32 0.1, %v383_v28 }
  0xff   : > { %vm402_vm3 = vcmp.ge.f32.partialorder %v332_v31, 0.0  ;;  %v418_v37 = vmul.f32 0.1, %v332_v31  ;;  %vm404_vm4 = vcmp.ge.f32.partialorder %v385_v32, 0.0  ;;  %v420_v38 = vmul.f32 0.1, %v385_v32 }
 0x100   : > { %v433_v39 = vsel %vm401_vm1, %v330_v27, %v417_v35  ;;  %v435_v40 = vsel %vm403_vm2, %v383_v28, %v419_v36  ;;  %v334_v41 = vadd.f32 %v333_v33, %v226_v24  ;;  %v387_v42 = vadd.f32 %v386_v34, %v226_v24  ;;  %v335_v43 = vpop.f32.mrb[3].mxu0  ;;  %v388_v44 = vpop.f32.mrb[3].mxu1 }
 0x101   : > { %449 = vst [vmem:[%s760_s12] sm:$0xff] %v433_v39  ;;  %451 = vst [vmem:[%s760_s12 + $0x10] sm:$0xff] %v435_v40  ;;  %v434_v45 = vsel %vm402_vm3, %v332_v31, %v418_v37  ;;  %v436_v46 = vsel %vm404_vm4, %v385_v32, %v420_v38  ;;  %v336_v47 = vadd.f32 %v335_v43, %v226_v24 }
 0x102   : > { %v389_v48 = vadd.f32 %v388_v44, %v226_v24  ;;  %450 = vst [vmem:[%s760_s12 + $0x8] sm:$0xff] %v434_v45  ;;  %452 = vst [vmem:[%s760_s12 + $0x18] sm:$0xff] %v436_v46  ;;  %vm405_vm5 = vcmp.ge.f32.partialorder %v334_v41, 0.0  ;;  %v421_v49 = vmul.f32 0.1, %v334_v41  ;;  %vm407_vm6 = vcmp.ge.f32.partialorder %v387_v42, 0.0 }
 0x103   : > { %v423_v50 = vmul.f32 0.1, %v387_v42  ;;  %vm406_vm7 = vcmp.ge.f32.partialorder %v336_v47, 0.0  ;;  %v422_v52 = vmul.f32 0.1, %v336_v47  ;;  %v339_v56 = vpop.f32.mrb[4].mxu0 }
 0x104   : > { %vm408_vm8 = vcmp.ge.f32.partialorder %v389_v48, 0.0  ;;  %v424_v53 = vmul.f32 0.1, %v389_v48  ;;  %v437_v54 = vsel %vm405_vm5, %v334_v41, %v421_v49  ;;  %v392_v57 = vpop.f32.mrb[4].mxu1  ;;  %v340_v60 = vadd.f32 %v339_v56, %v231_v51  ;;  %v341_v62 = vpop.f32.mrb[5].mxu0 }
 0x105   : > { %v439_v55 = vsel %vm407_vm6, %v387_v42, %v423_v50  ;;  %453 = vst [vmem:[%s760_s12 + $0x20] sm:$0xff] %v437_v54  ;;  %v438_v58 = vsel %vm406_vm7, %v336_v47, %v422_v52  ;;  %v393_v61 = vadd.f32 %v392_v57, %v231_v51  ;;  %v394_v63 = vpop.f32.mrb[5].mxu1  ;;  %v342_v0 = vadd.f32 %v341_v62, %v231_v51  ;;  %v343_v2 = vpop.f32.mrb[6].mxu0 }
 0x106   : > { %455 = vst [vmem:[%s760_s12 + $0x30] sm:$0xff] %v439_v55  ;;  %v440_v59 = vsel %vm408_vm8, %v389_v48, %v424_v53  ;;  %454 = vst [vmem:[%s760_s12 + $0x28] sm:$0xff] %v438_v58  ;;  %v395_v1 = vadd.f32 %v394_v63, %v231_v51  ;;  %v396_v3 = vpop.f32.mrb[6].mxu1  ;;  %vm409_vm9 = vcmp.ge.f32.partialorder %v340_v60, 0.0  ;;  %v425_v4 = vmul.f32 0.1, %v340_v60 }
 0x107   : > { %456 = vst [vmem:[%s760_s12 + $0x38] sm:$0xff] %v440_v59  ;;  %vm411_vm10 = vcmp.ge.f32.partialorder %v393_v61, 0.0  ;;  %v427_v5 = vmul.f32 0.1, %v393_v61  ;;  %vm410_vm11 = vcmp.ge.f32.partialorder %v342_v0, 0.0  ;;  %v344_v11 = vadd.f32 %v343_v2, %v236_v6  ;;  %v345_v13 = vpop.f32.mrb[7].mxu0 }
 0x108   : > { %v426_v7 = vmul.f32 0.1, %v342_v0  ;;  %vm412_vm12 = vcmp.ge.f32.partialorder %v395_v1, 0.0  ;;  %v428_v8 = vmul.f32 0.1, %v395_v1  ;;  %v441_v9 = vsel %vm409_vm9, %v340_v60, %v425_v4  ;;  %v398_v14 = vpop.f32.mrb[7].mxu1 }
 0x109   : > { %v443_v10 = vsel %vm411_vm10, %v393_v61, %v427_v5  ;;  %v397_v12 = vadd.f32 %v396_v3, %v236_v6  ;;  %457 = vst [vmem:[%s760_s12 + $0x40] sm:$0xff] %v441_v9  ;;  %v346_v17 = vadd.f32 %v345_v13, %v236_v6  ;;  %v399_v18 = vadd.f32 %v398_v14, %v236_v6  ;;  %471 = sbr.rel (!%p725_p5) target bundleno = 280 (0x118), region = 59  ;;  %v487_v27 = vld [vmem:[%s760_s12] sm:$0xff] (%p725_p5)  ;;  %v489_v28 = vld [vmem:[%s760_s12 + $0x8] sm:$0xff] (%p725_p5)  ;;  %v491_v29 = vld [vmem:[%s760_s12 + $0x10] sm:$0xff] (%p725_p5) }
 0x10a   : > { %459 = vst [vmem:[%s760_s12 + $0x50] sm:$0xff] %v443_v10  ;;  %v442_v15 = vsel %vm410_vm11, %v342_v0, %v426_v7  ;;  %v444_v16 = vsel %vm412_vm12, %v395_v1, %v428_v8  ;;  %vm413_vm13 = vcmp.ge.f32.partialorder %v344_v11, 0.0  ;;  %v429_v19 = vmul.f32 0.1, %v344_v11  ;;  %v493_v30 = vld [vmem:[%s760_s12 + $0x18] sm:$0xff] (%p725_p5)  ;;  %488 = vst [vmem:[%s474_s20] sm:$0xff] (%p725_p5), %v487_v27 }
 0x10b   : > { %458 = vst [vmem:[%s760_s12 + $0x48] sm:$0xff] %v442_v15  ;;  %460 = vst [vmem:[%s760_s12 + $0x58] sm:$0xff] %v444_v16  ;;  %vm415_vm14 = vcmp.ge.f32.partialorder %v397_v12, 0.0  ;;  %v431_v20 = vmul.f32 0.1, %v397_v12  ;;  %vm414_vm15 = vcmp.ge.f32.partialorder %v346_v17, 0.0 }
 0x10c   : > { %v430_v21 = vmul.f32 0.1, %v346_v17  ;;  %vm416_vm0 = vcmp.ge.f32.partialorder %v399_v18, 0.0  ;;  %v432_v22 = vmul.f32 0.1, %v399_v18  ;;  %v445_v23 = vsel %vm413_vm13, %v344_v11, %v429_v19  ;;  %v495_v31 = vld [vmem:[%s760_s12 + $0x20] sm:$0xff] (%p725_p5) }
 0x10d   : > { %v447_v24 = vsel %vm415_vm14, %v397_v12, %v431_v20  ;;  %461 = vst [vmem:[%s760_s12 + $0x60] sm:$0xff] %v445_v23  ;;  %v497_v32 = vld [vmem:[%s760_s12 + $0x28] sm:$0xff] (%p725_p5)  ;;  %490 = vst [vmem:[%s474_s20 + $0x8] sm:$0xff] (%p725_p5), %v489_v28  ;;  %v499_v33 = vld [vmem:[%s760_s12 + $0x30] sm:$0xff] (%p725_p5) }
 0x10e   : > { %463 = vst [vmem:[%s760_s12 + $0x70] sm:$0xff] %v447_v24  ;;  %v446_v25 = vsel %vm414_vm15, %v346_v17, %v430_v21  ;;  %v448_v26 = vsel %vm416_vm0, %v399_v18, %v432_v22  ;;  %492 = vst [vmem:[%s474_s20 + $0x10] sm:$0xff] (%p725_p5), %v491_v29  ;;  %v501_v34 = vld [vmem:[%s760_s12 + $0x38] sm:$0xff] (%p725_p5) }
 0x10f   : > { %462 = vst [vmem:[%s760_s12 + $0x68] sm:$0xff] %v446_v25  ;;  %464 = vst [vmem:[%s760_s12 + $0x78] sm:$0xff] %v448_v26 }
 0x110   : > { %494 = vst [vmem:[%s474_s20 + $0x18] sm:$0xff] %v493_v30  ;;  %496 = vst [vmem:[%s474_s20 + $0x80] sm:$0xff] %v495_v31  ;;  %v503_v35 = vld [vmem:[%s760_s12 + $0x40] sm:$0xff] }
 0x111   : > { %498 = vst [vmem:[%s474_s20 + $0x88] sm:$0xff] %v497_v32  ;;  %500 = vst [vmem:[%s474_s20 + $0x90] sm:$0xff] %v499_v33  ;;  %v507_v37 = vld [vmem:[%s760_s12 + $0x50] sm:$0xff] }
 0x112   : > { %502 = vst [vmem:[%s474_s20 + $0x98] sm:$0xff] %v501_v34  ;;  %504 = vst [vmem:[%s474_s20 + $0x100] sm:$0xff] %v503_v35  ;;  %v505_v36 = vld [vmem:[%s760_s12 + $0x48] sm:$0xff]  ;;  %v509_v38 = vld [vmem:[%s760_s12 + $0x58] sm:$0xff] }
 0x113   : > { %506 = vst [vmem:[%s474_s20 + $0x108] sm:$0xff] %v505_v36  ;;  %508 = vst [vmem:[%s474_s20 + $0x110] sm:$0xff] %v507_v37 }
 0x114   : > { %510 = vst [vmem:[%s474_s20 + $0x118] sm:$0xff] %v509_v38  ;;  %v511_v39 = vld [vmem:[%s760_s12 + $0x60] sm:$0xff] }
 0x115   : > { %v515_v41 = vld [vmem:[%s760_s12 + $0x70] sm:$0xff]  ;;  %512 = vst [vmem:[%s474_s20 + $0x180] sm:$0xff] %v511_v39 }
 0x116   : > { %v513_v40 = vld [vmem:[%s760_s12 + $0x68] sm:$0xff]  ;;  %516 = vst [vmem:[%s474_s20 + $0x190] sm:$0xff] %v515_v41  ;;  %v517_v42 = vld [vmem:[%s760_s12 + $0x78] sm:$0xff] }
 0x117   : > { %514 = vst [vmem:[%s474_s20 + $0x188] sm:$0xff] %v513_v40  ;;  %518 = vst [vmem:[%s474_s20 + $0x198] sm:$0xff] %v517_v42 }
 0x118 PF: > { %p10_p10 = scmp.ge.s32.totalorder %s712_s16, 6   ;;  %s816_s12 = smov %s668_s13 }
 0x119   : > { %s817_s13 = smov %s723_s19  ;;  %s818_s14 = smov %s712_s16 }
 0x11a   :  { %12 = sbr.rel (!%p10_p10) target bundleno = 2 (0x2), region = 113 }

// kernel: resnet_encoder_forward.16
= control target key start
LH: loop header
LB: loop body
LE: loop exit
PB: predicated region body
PF: predicated region fallthrough
CT: control target
= control target key end

     0   :  { %s1539_s12 = smov 0   ;;  %s1541_s13 = smov 0   ;;  %s1895_s0 = inlined_call_operand.vmem [shape: bf16[32,288], index: 0, kind: input, shape index: {}]   ;;  %s1896_s1 = inlined_call_operand.vmem [shape: bf16[288,2048], index: 1, kind: input, shape index: {}]   ;;  %s1897_s2 = inlined_call_operand.vmem [shape: f32[32,1], index: 2, kind: input, shape index: {}]   ;;  %s1898_s3 = inlined_call_operand.vmem [shape: f32[32,2048], index: 3, kind: output, shape index: {}]  }
   0x1   :  { %s1543_s14 = smov 0  }
   0x2 LB: > { %s1220_s15 = sadd.s32 4294967295, %s1516_s14   ;;  %s1556_s16 = sadd.s32 1, %s1516_s14   ;;  %s1516_s14 = sphi %s1543_s14, %s1902_s14   ;;  %s1512_s13 = sphi %s1541_s13, %s1901_s13   ;;  %s1508_s12 = sphi %s1539_s12, %s1900_s12  }
   0x3   : > { %s38_s17 = ssub.s32 %s1516_s14, %s1556_s16  ;;  %s41_s18 = sadd.s32 1, %s1512_s13 }
   0x4   : > { %p39_p0 = scmp.eq.s32.totalorder %s38_s17, 0  ;;  %p48_p1 = scmp.ne.s32.totalorder %s1512_s13, %s1508_s12 }
   0x5   : > { %p49_p2 = scmp.eq.s32.totalorder %s1516_s14, 0  ;;  %p99_p3 = scmp.eq.s32.totalorder %s1220_s15, 3 }
   0x6   : > { %s1567_s19 = scalar_select %p39_p0, %s1512_s13, %s41_s18  }
   0x7   : > { %p50_p4 = por %p49_p2, %p48_p1  ;;  %p1569_p5 = por %p99_p3, %p48_p1 }
   0x8   : > { %p1223_p6 = scmp.ge.s32.totalorder %s1516_s14, 4 }
   0xa   : > { %127 = sbr.rel (%p1223_p6) target bundleno = 57 (0x39), region = 24 }
  0x11   : > { %130 = sbr.rel (!%p50_p4) target bundleno = 57 (0x39), region = 28  ;;  %s132_s21 = sand.u32 (%p50_p4), 1, %s1512_s13  }
  0x12   : > { %s1315_s22 = sshll.u32 (%p50_p4), %s1516_s14, 4  ;;  %s1349_s23 = smul.u32 (%p50_p4), 576, %s132_s21 }
  0x13   : > { %s1579_s26 = scalar_lea.vmem (%p50_p4), %s1896_s1, %s1315_s22 }
  0x14   : > { %v150_v0 = vld [vmem:[%s1579_s26] sm:$0xff] (%p50_p4)  ;;  %v152_v1 = vld [vmem:[%s1579_s26 + $0x8] sm:$0xff] (%p50_p4)  ;;  %s1587_s27 = scalar_lea.vmem (%p50_p4), [#allocation2], %s1349_s23 }
  0x15   : > { %v154_v2 = vld [vmem:[%s1579_s26 + $0x40] sm:$0xff] (%p50_p4)  ;;  %v156_v3 = vld [vmem:[%s1579_s26 + $0x48] sm:$0xff] (%p50_p4)  ;;  %151 = vst [vmem:[%s1587_s27] sm:$0xff] (%p50_p4), %v150_v0  ;;  %153 = vst [vmem:[%s1587_s27 + $0x8] sm:$0xff] (%p50_p4), %v152_v1 }
  0x16   : > { %v158_v4 = vld [vmem:[%s1579_s26 + $0x80] sm:$0xff] (%p50_p4)  ;;  %v160_v5 = vld [vmem:[%s1579_s26 + $0x88] sm:$0xff] (%p50_p4)  ;;  %155 = vst [vmem:[%s1587_s27 + $0x10] sm:$0xff] (%p50_p4), %v154_v2  ;;  %157 = vst [vmem:[%s1587_s27 + $0x18] sm:$0xff] (%p50_p4), %v156_v3 }
  0x17   : > { %159 = vst [vmem:[%s1587_s27 + $0x20] sm:$0xff] (%p50_p4), %v158_v4  ;;  %161 = vst [vmem:[%s1587_s27 + $0x28] sm:$0xff] (%p50_p4), %v160_v5  ;;  %v162_v6 = vld [vmem:[%s1579_s26 + $0xc0] sm:$0xff] (%p50_p4)  ;;  %v164_v7 = vld [vmem:[%s1579_s26 + $0xc8] sm:$0xff] (%p50_p4) }
  0x18   : > { %v166_v8 = vld [vmem:[%s1579_s26 + $0x100] sm:$0xff]  ;;  %163 = vst [vmem:[%s1587_s27 + $0x30] sm:$0xff] %v162_v6  ;;  %165 = vst [vmem:[%s1587_s27 + $0x38] sm:$0xff] %v164_v7  ;;  %v168_v9 = vld [vmem:[%s1579_s26 + $0x108] sm:$0xff] }
  0x19   : > { %167 = vst [vmem:[%s1587_s27 + $0x40] sm:$0xff] %v166_v8  ;;  %v170_v10 = vld [vmem:[%s1579_s26 + $0x140] sm:$0xff]  ;;  %v172_v11 = vld [vmem:[%s1579_s26 + $0x148] sm:$0xff]  ;;  %169 = vst [vmem:[%s1587_s27 + $0x48] sm:$0xff] %v168_v9 }
  0x1a   : > { %171 = vst [vmem:[%s1587_s27 + $0x50] sm:$0xff] %v170_v10  ;;  %173 = vst [vmem:[%s1587_s27 + $0x58] sm:$0xff] %v172_v11  ;;  %v174_v12 = vld [vmem:[%s1579_s26 + $0x180] sm:$0xff]  ;;  %v176_v13 = vld [vmem:[%s1579_s26 + $0x188] sm:$0xff] }
  0x1b   : > { %v178_v14 = vld [vmem:[%s1579_s26 + $0x1c0] sm:$0xff]  ;;  %175 = vst [vmem:[%s1587_s27 + $0x60] sm:$0xff] %v174_v12  ;;  %177 = vst [vmem:[%s1587_s27 + $0x68] sm:$0xff] %v176_v13  ;;  %v180_v15 = vld [vmem:[%s1579_s26 + $0x1c8] sm:$0xff] }
  0x1c   : > { %179 = vst [vmem:[%s1587_s27 + $0x70] sm:$0xff] %v178_v14  ;;  %v182_v16 = vld [vmem:[%s1579_s26 + $0x200] sm:$0xff]  ;;  %v184_v17 = vld [vmem:[%s1579_s26 + $0x208] sm:$0xff]  ;;  %181 = vst [vmem:[%s1587_s27 + $0x78] sm:$0xff] %v180_v15 }
  0x1d   : > { %183 = vst [vmem:[%s1587_s27 + $0x80] sm:$0xff] %v182_v16  ;;  %185 = vst [vmem:[%s1587_s27 + $0x88] sm:$0xff] %v184_v17  ;;  %v186_v18 = vld [vmem:[%s1579_s26 + $0x240] sm:$0xff]  ;;  %v188_v19 = vld [vmem:[%s1579_s26 + $0x248] sm:$0xff] }
  0x1e   : > { %v190_v20 = vld [vmem:[%s1579_s26 + $0x280] sm:$0xff]  ;;  %187 = vst [vmem:[%s1587_s27 + $0x90] sm:$0xff] %v186_v18  ;;  %189 = vst [vmem:[%s1587_s27 + $0x98] sm:$0xff] %v188_v19  ;;  %v192_v21 = vld [vmem:[%s1579_s26 + $0x288] sm:$0xff] }
  0x1f   : > { %191 = vst [vmem:[%s1587_s27 + $0xa0] sm:$0xff] %v190_v20  ;;  %v194_v22 = vld [vmem:[%s1579_s26 + $0x2c0] sm:$0xff]  ;;  %v196_v23 = vld [vmem:[%s1579_s26 + $0x2c8] sm:$0xff]  ;;  %193 = vst [vmem:[%s1587_s27 + $0xa8] sm:$0xff] %v192_v21 }
  0x20   : > { %195 = vst [vmem:[%s1587_s27 + $0xb0] sm:$0xff] %v194_v22  ;;  %197 = vst [vmem:[%s1587_s27 + $0xb8] sm:$0xff] %v196_v23  ;;  %v198_v24 = vld [vmem:[%s1579_s26 + $0x300] sm:$0xff]  ;;  %v200_v25 = vld [vmem:[%s1579_s26 + $0x308] sm:$0xff] }
  0x21   : > { %v202_v26 = vld [vmem:[%s1579_s26 + $0x340] sm:$0xff]  ;;  %199 = vst [vmem:[%s1587_s27 + $0xc0] sm:$0xff] %v198_v24  ;;  %201 = vst [vmem:[%s1587_s27 + $0xc8] sm:$0xff] %v200_v25  ;;  %v204_v27 = vld [vmem:[%s1579_s26 + $0x348] sm:$0xff] }
  0x22   : > { %203 = vst [vmem:[%s1587_s27 + $0xd0] sm:$0xff] %v202_v26  ;;  %v206_v28 = vld [vmem:[%s1579_s26 + $0x380] sm:$0xff]  ;;  %v208_v29 = vld [vmem:[%s1579_s26 + $0x388] sm:$0xff]  ;;  %205 = vst [vmem:[%s1587_s27 + $0xd8] sm:$0xff] %v204_v27 }
  0x23   : > { %207 = vst [vmem:[%s1587_s27 + $0xe0] sm:$0xff] %v206_v28  ;;  %209 = vst [vmem:[%s1587_s27 + $0xe8] sm:$0xff] %v208_v29  ;;  %v210_v30 = vld [vmem:[%s1579_s26 + $0x3c0] sm:$0xff]  ;;  %v212_v31 = vld [vmem:[%s1579_s26 + $0x3c8] sm:$0xff] }
  0x24   : > { %v214_v32 = vld [vmem:[%s1579_s26 + $0x400] sm:$0xff]  ;;  %211 = vst [vmem:[%s1587_s27 + $0xf0] sm:$0xff] %v210_v30  ;;  %213 = vst [vmem:[%s1587_s27 + $0xf8] sm:$0xff] %v212_v31  ;;  %v216_v33 = vld [vmem:[%s1579_s26 + $0x408] sm:$0xff] }
  0x25   : > { %215 = vst [vmem:[%s1587_s27 + $0x100] sm:$0xff] %v214_v32  ;;  %v218_v34 = vld [vmem:[%s1579_s26 + $0x440] sm:$0xff]  ;;  %v220_v35 = vld [vmem:[%s1579_s26 + $0x448] sm:$0xff]  ;;  %217 = vst [vmem:[%s1587_s27 + $0x108] sm:$0xff] %v216_v33 }
  0x26   : > { %219 = vst [vmem:[%s1587_s27 + $0x110] sm:$0xff] %v218_v34  ;;  %221 = vst [vmem:[%s1587_s27 + $0x118] sm:$0xff] %v220_v35  ;;  %v222_v36 = vld [vmem:[%s1579_s26 + $0x480] sm:$0xff]  ;;  %v224_v37 = vld [vmem:[%s1579_s26 + $0x488] sm:$0xff] }
  0x27   : > { %v226_v38 = vld [vmem:[%s1579_s26 + $0x4c0] sm:$0xff]  ;;  %223 = vst [vmem:[%s1587_s27 + $0x120] sm:$0xff] %v222_v36  ;;  %225 = vst [vmem:[%s1587_s27 + $0x128] sm:$0xff] %v224_v37  ;;  %v228_v39 = vld [vmem:[%s1579_s26 + $0x4c8] sm:$0xff] }
  0x28   : > { %227 = vst [vmem:[%s1587_s27 + $0x130] sm:$0xff] %v226_v38  ;;  %v230_v40 = vld [vmem:[%s1579_s26 + $0x500] sm:$0xff]  ;;  %v232_v41 = vld [vmem:[%s1579_s26 + $0x508] sm:$0xff]  ;;  %229 = vst [vmem:[%s1587_s27 + $0x138] sm:$0xff] %v228_v39 }
  0x29   : > { %231 = vst [vmem:[%s1587_s27 + $0x140] sm:$0xff] %v230_v40  ;;  %233 = vst [vmem:[%s1587_s27 + $0x148] sm:$0xff] %v232_v41  ;;  %v234_v42 = vld [vmem:[%s1579_s26 + $0x540] sm:$0xff]  ;;  %v236_v43 = vld [vmem:[%s1579_s26 + $0x548] sm:$0xff] }
  0x2a   : > { %v238_v44 = vld [vmem:[%s1579_s26 + $0x580] sm:$0xff]  ;;  %235 = vst [vmem:[%s1587_s27 + $0x150] sm:$0xff] %v234_v42  ;;  %237 = vst [vmem:[%s1587_s27 + $0x158] sm:$0xff] %v236_v43  ;;  %v240_v45 = vld [vmem:[%s1579_s26 + $0x588] sm:$0xff] }
  0x2b   : > { %239 = vst [vmem:[%s1587_s27 + $0x160] sm:$0xff] %v238_v44  ;;  %v242_v46 = vld [vmem:[%s1579_s26 + $0x5c0] sm:$0xff]  ;;  %v244_v47 = vld [vmem:[%s1579_s26 + $0x5c8] sm:$0xff]  ;;  %241 = vst [vmem:[%s1587_s27 + $0x168] sm:$0xff] %v240_v45 }
  0x2c   : > { %243 = vst [vmem:[%s1587_s27 + $0x170] sm:$0xff] %v242_v46  ;;  %245 = vst [vmem:[%s1587_s27 + $0x178] sm:$0xff] %v244_v47  ;;  %v246_v48 = vld [vmem:[%s1579_s26 + $0x600] sm:$0xff]  ;;  %v248_v49 = vld [vmem:[%s1579_s26 + $0x608] sm:$0xff] }
  0x2d   : > { %v250_v50 = vld [vmem:[%s1579_s26 + $0x640] sm:$0xff]  ;;  %247 = vst [vmem:[%s1587_s27 + $0x180] sm:$0xff] %v246_v48  ;;  %249 = vst [vmem:[%s1587_s27 + $0x188] sm:$0xff] %v248_v49  ;;  %v252_v51 = vld [vmem:[%s1579_s26 + $0x648] sm:$0xff] }
  0x2e   : > { %251 = vst [vmem:[%s1587_s27 + $0x190] sm:$0xff] %v250_v50  ;;  %v254_v52 = vld [vmem:[%s1579_s26 + $0x680] sm:$0xff]  ;;  %v256_v53 = vld [vmem:[%s1579_s26 + $0x688] sm:$0xff]  ;;  %253 = vst [vmem:[%s1587_s27 + $0x198] sm:$0xff] %v252_v51 }
  0x2f   : > { %255 = vst [vmem:[%s1587_s27 + $0x1a0] sm:$0xff] %v254_v52  ;;  %257 = vst [vmem:[%s1587_s27 + $0x1a8] sm:$0xff] %v256_v53  ;;  %v258_v54 = vld [vmem:[%s1579_s26 + $0x6c0] sm:$0xff]  ;;  %v260_v55 = vld [vmem:[%s1579_s26 + $0x6c8] sm:$0xff] }
  0x30   : > { %v262_v56 = vld [vmem:[%s1579_s26 + $0x700] sm:$0xff]  ;;  %259 = vst [vmem:[%s1587_s27 + $0x1b0] sm:$0xff] %v258_v54  ;;  %261 = vst [vmem:[%s1587_s27 + $0x1b8] sm:$0xff] %v260_v55  ;;  %v264_v57 = vld [vmem:[%s1579_s26 + $0x708] sm:$0xff] }
  0x31   : > { %263 = vst [vmem:[%s1587_s27 + $0x1c0] sm:$0xff] %v262_v56  ;;  %v266_v58 = vld [vmem:[%s1579_s26 + $0x740] sm:$0xff]  ;;  %v268_v59 = vld [vmem:[%s1579_s26 + $0x748] sm:$0xff]  ;;  %265 = vst [vmem:[%s1587_s27 + $0x1c8] sm:$0xff] %v264_v57 }
  0x32   : > { %267 = vst [vmem:[%s1587_s27 + $0x1d0] sm:$0xff] %v266_v58  ;;  %269 = vst [vmem:[%s1587_s27 + $0x1d8] sm:$0xff] %v268_v59  ;;  %v270_v60 = vld [vmem:[%s1579_s26 + $0x780] sm:$0xff]  ;;  %v272_v61 = vld [vmem:[%s1579_s26 + $0x788] sm:$0xff] }
  0x33   : > { %v274_v62 = vld [vmem:[%s1579_s26 + $0x7c0] sm:$0xff]  ;;  %271 = vst [vmem:[%s1587_s27 + $0x1e0] sm:$0xff] %v270_v60  ;;  %273 = vst [vmem:[%s1587_s27 + $0x1e8] sm:$0xff] %v272_v61  ;;  %v276_v63 = vld [vmem:[%s1579_s26 + $0x7c8] sm:$0xff] }
  0x34   : > { %275 = vst [vmem:[%s1587_s27 + $0x1f0] sm:$0xff] %v274_v62  ;;  %v278_v0 = vld [vmem:[%s1579_s26 + $0x800] sm:$0xff]  ;;  %v280_v1 = vld [vmem:[%s1579_s26 + $0x808] sm:$0xff]  ;;  %277 = vst [vmem:[%s1587_s27 + $0x1f8] sm:$0xff] %v276_v63 }
  0x35   : > { %279 = vst [vmem:[%s1587_s27 + $0x200] sm:$0xff] %v278_v0  ;;  %281 = vst [vmem:[%s1587_s27 + $0x208] sm:$0xff] %v280_v1  ;;  %v282_v2 = vld [vmem:[%s1579_s26 + $0x840] sm:$0xff]  ;;  %v284_v3 = vld [vmem:[%s1579_s26 + $0x848] sm:$0xff] }
  0x36   : > { %v286_v4 = vld [vmem:[%s1579_s26 + $0x880] sm:$0xff]  ;;  %283 = vst [vmem:[%s1587_s27 + $0x210] sm:$0xff] %v282_v2  ;;  %285 = vst [vmem:[%s1587_s27 + $0x218] sm:$0xff] %v284_v3  ;;  %v288_v5 = vld [vmem:[%s1579_s26 + $0x888] sm:$0xff] }
  0x37   : > { %287 = vst [vmem:[%s1587_s27 + $0x220] sm:$0xff] %v286_v4  ;;  %v290_v6 = vld [vmem:[%s1579_s26 + $0x8c0] sm:$0xff]  ;;  %v292_v7 = vld [vmem:[%s1579_s26 + $0x8c8] sm:$0xff]  ;;  %289 = vst [vmem:[%s1587_s27 + $0x228] sm:$0xff] %v288_v5 }
  0x38   : > { %291 = vst [vmem:[%s1587_s27 + $0x230] sm:$0xff] %v290_v6  ;;  %293 = vst [vmem:[%s1587_s27 + $0x238] sm:$0xff] %v292_v7 }
  0x39 PF: > { %p1226_p7 = scmp.ge.s32.totalorder %s1516_s14, 1  ;;  %p298_p8 = scmp.lt.s32.totalorder %s1516_s14, 5 }
  0x3b   : > { %p299_p9 = pnand %p1226_p7, %p298_p8 }
  0x3c   : > { %s305_s28 = sand.u32 (!%p299_p9), 1, %s1508_s12   ;;  %v1476_v8 = vld [vmem:[%s1895_s0 + $0x4] ss:$12 sps:$4 sm:$0xff] (!%p299_p9)   ;;  %v1518_v9 = vmov (!%p299_p9), 0   ;;  %v411_v1 = vld [vmem:[%s1897_s2 + $0x8] sm:$0xff] (!%p299_p9)  ;;  %v413_v3 = vld [vmem:[%s1897_s2 + $0x18] sm:$0xff] (!%p299_p9) }
  0x3d   : > { %302 = sbr.rel (%p299_p9) target bundleno = 386 (0x182), region = 51  ;;  %1376 = vset.pattern.permute.xlu0 (!%p299_p9), %v1518_v9  ;;  %1377 = vset.pattern.permute.xlu1 (!%p299_p9), %v1518_v9  ;;  %v410_v10 = vld [vmem:[%s1897_s2] sm:$0xff] (!%p299_p9)  ;;  %v412_v2 = vld [vmem:[%s1897_s2 + $0x10] sm:$0xff] (!%p299_p9)  ;;  %vm824_vm0 = vcmask (!%p299_p9), 261120   ;;  %s1227_s5 = sshll.u32 (!%p299_p9), %s305_s28, 7 }
  0x3e   : > { %s1350_s29 = smul.u32 (!%p299_p9), 576, %s305_s28  ;;  %863 = vmatprep.mubr.bf16.mxu0 (!%p299_p9), %v1476_v8  ;;  %969 = vmatprep.mubr.bf16.mxu1 (!%p299_p9), %v1476_v8  ;;  %s1844_s12 = scalar_lea.vmem (!%p299_p9), [#allocation3], %s1227_s5 }
  0x3f   : > { %416 = vperm.xlu0 (!%p299_p9), %1376, %v410_v10   ;;  %426 = vperm.xlu1 (!%p299_p9), %1377, %v412_v2  }
  0x40   : > { %s1740_s7 = scalar_lea.vmem (!%p299_p9), [#allocation2], %s1350_s29 }
  0x41   : > { %v1378_v11 = vld [vmem:[%s1740_s7 + $0x4] ss:$16 sps:$4 sm:$0xff] (!%p299_p9)   ;;  %v1380_v12 = vld [vmem:[%s1740_s7 + $0xc] ss:$16 sps:$4 sm:$0xff] (!%p299_p9)   ;;  %v1382_v13 = vld [vmem:[%s1740_s7] ss:$16 sps:$4 sm:$0xff] (!%p299_p9)  }
  0x42   : > { %831 = vmatprep.subr.bf16.mxu0 (!%p299_p9), %v1378_v11  ;;  %v1383_v14 = vld [vmem:[%s1740_s7 + $0x8] ss:$16 sps:$4 sm:$0xff] (!%p299_p9)   ;;  %937 = vmatprep.subr.bf16.mxu1 (!%p299_p9), %v1380_v12  ;;  %v1384_v15 = vld [vmem:[%s1740_s7 + $0x24] ss:$16 sps:$4 sm:$0xff] (!%p299_p9)   ;;  %v1386_v16 = vld [vmem:[%s1740_s7 + $0x2c] ss:$16 sps:$4 sm:$0xff] (!%p299_p9)  }
  0x43   : > { %832 = vmatpush1.bf16.msra.mxu0 (!%p299_p9), %v1382_v13  ;;  %938 = vmatpush1.bf16.msra.mxu1 (!%p299_p9), %v1383_v14  ;;  %v1388_v17 = vld [vmem:[%s1740_s7 + $0x20] ss:$16 sps:$4 sm:$0xff] (!%p299_p9)   ;;  %v1389_v18 = vld [vmem:[%s1740_s7 + $0x28] ss:$16 sps:$4 sm:$0xff] (!%p299_p9)   ;;  %v1390_v19 = vld [vmem:[%s1740_s7 + $0x44] ss:$16 sps:$4 sm:$0xff] (!%p299_p9)  }
  0x44   : > { %833 = vmatprep.subr.bf16.mxu0 %v1384_v15  ;;  %939 = vmatprep.subr.bf16.mxu1 %v1386_v16  ;;  %v1392_v20 = vld [vmem:[%s1740_s7 + $0x4c] ss:$16 sps:$4 sm:$0xff]   ;;  %v1394_v21 = vld [vmem:[%s1740_s7 + $0x40] ss:$16 sps:$4 sm:$0xff]   ;;  %v1395_v22 = vld [vmem:[%s1740_s7 + $0x48] ss:$16 sps:$4 sm:$0xff]  }
  0x45   : > { %v1396_v23 = vld [vmem:[%s1740_s7 + $0x64] ss:$16 sps:$4 sm:$0xff]   ;;  %v1398_v24 = vld [vmem:[%s1740_s7 + $0x6c] ss:$16 sps:$4 sm:$0xff]   ;;  %v1400_v25 = vld [vmem:[%s1740_s7 + $0x60] ss:$16 sps:$4 sm:$0xff]   ;;  %421 = vperm.xlu0 %1376, %v411_v1   ;;  %431 = vperm.xlu1 %1377, %v413_v3  }
  0x46   : > { %v1401_v26 = vld [vmem:[%s1740_s7 + $0x68] ss:$16 sps:$4 sm:$0xff]   ;;  %v1402_v27 = vld [vmem:[%s1740_s7 + $0x84] ss:$16 sps:$4 sm:$0xff]   ;;  %v1404_v28 = vld [vmem:[%s1740_s7 + $0x8c] ss:$16 sps:$4 sm:$0xff]  }
  0x47   : > { %834 = vmatpush1.bf16.msra.mxu0 %v1388_v17  ;;  %940 = vmatpush1.bf16.msra.mxu1 %v1389_v18  ;;  %v1406_v29 = vld [vmem:[%s1740_s7 + $0x80] ss:$16 sps:$4 sm:$0xff]   ;;  %v1407_v30 = vld [vmem:[%s1740_s7 + $0x88] ss:$16 sps:$4 sm:$0xff]   ;;  %v1408_v31 = vld [vmem:[%s1740_s7 + $0xa4] ss:$16 sps:$4 sm:$0xff]  }
  0x48   : > { %835 = vmatprep.subr.bf16.mxu0 %v1390_v19  ;;  %941 = vmatprep.subr.bf16.mxu1 %v1392_v20  ;;  %v1410_v32 = vld [vmem:[%s1740_s7 + $0xac] ss:$16 sps:$4 sm:$0xff]   ;;  %v1412_v33 = vld [vmem:[%s1740_s7 + $0xa0] ss:$16 sps:$4 sm:$0xff]   ;;  %v1413_v34 = vld [vmem:[%s1740_s7 + $0xa8] ss:$16 sps:$4 sm:$0xff]  }
  0x49   : > { %v1414_v35 = vld [vmem:[%s1740_s7 + $0xc4] ss:$16 sps:$4 sm:$0xff]   ;;  %v1416_v36 = vld [vmem:[%s1740_s7 + $0xcc] ss:$16 sps:$4 sm:$0xff]   ;;  %v1418_v37 = vld [vmem:[%s1740_s7 + $0xc0] ss:$16 sps:$4 sm:$0xff]  }
  0x4a   : > { %v1419_v38 = vld [vmem:[%s1740_s7 + $0xc8] ss:$16 sps:$4 sm:$0xff]   ;;  %v1420_v39 = vld [vmem:[%s1740_s7 + $0xe4] ss:$16 sps:$4 sm:$0xff]   ;;  %v1422_v40 = vld [vmem:[%s1740_s7 + $0xec] ss:$16 sps:$4 sm:$0xff]  }
  0x4b   : > { %836 = vmatpush1.bf16.msra.mxu0 %v1394_v21  ;;  %942 = vmatpush1.bf16.msra.mxu1 %v1395_v22  ;;  %v1424_v41 = vld [vmem:[%s1740_s7 + $0xe0] ss:$16 sps:$4 sm:$0xff]   ;;  %v1425_v42 = vld [vmem:[%s1740_s7 + $0xe8] ss:$16 sps:$4 sm:$0xff]   ;;  %v1426_v43 = vld [vmem:[%s1740_s7 + $0x104] ss:$16 sps:$4 sm:$0xff]  }
  0x4c   : > { %837 = vmatprep.subr.bf16.mxu0 %v1396_v23  ;;  %943 = vmatprep.subr.bf16.mxu1 %v1398_v24  ;;  %v1428_v44 = vld [vmem:[%s1740_s7 + $0x10c] ss:$16 sps:$4 sm:$0xff]   ;;  %v1430_v45 = vld [vmem:[%s1740_s7 + $0x100] ss:$16 sps:$4 sm:$0xff]   ;;  %v1431_v46 = vld [vmem:[%s1740_s7 + $0x108] ss:$16 sps:$4 sm:$0xff]  }
  0x4d   : > { %v1432_v47 = vld [vmem:[%s1740_s7 + $0x124] ss:$16 sps:$4 sm:$0xff]   ;;  %v1434_v48 = vld [vmem:[%s1740_s7 + $0x12c] ss:$16 sps:$4 sm:$0xff]   ;;  %v1436_v49 = vld [vmem:[%s1740_s7 + $0x120] ss:$16 sps:$4 sm:$0xff]  }
  0x4e   : > { %v1437_v50 = vld [vmem:[%s1740_s7 + $0x128] ss:$16 sps:$4 sm:$0xff]   ;;  %v1438_v51 = vld [vmem:[%s1740_s7 + $0x144] ss:$16 sps:$4 sm:$0xff]   ;;  %v1440_v52 = vld [vmem:[%s1740_s7 + $0x14c] ss:$16 sps:$4 sm:$0xff]  }
  0x4f   : > { %838 = vmatpush1.bf16.msra.mxu0 %v1400_v25  ;;  %944 = vmatpush1.bf16.msra.mxu1 %v1401_v26  ;;  %v1442_v53 = vld [vmem:[%s1740_s7 + $0x140] ss:$16 sps:$4 sm:$0xff]   ;;  %v1443_v54 = vld [vmem:[%s1740_s7 + $0x148] ss:$16 sps:$4 sm:$0xff]   ;;  %v1444_v55 = vld [vmem:[%s1740_s7 + $0x164] ss:$16 sps:$4 sm:$0xff]  }
  0x50   : > { %839 = vmatprep.subr.bf16.mxu0 %v1402_v27  ;;  %945 = vmatprep.subr.bf16.mxu1 %v1404_v28  ;;  %v1446_v56 = vld [vmem:[%s1740_s7 + $0x16c] ss:$16 sps:$4 sm:$0xff]   ;;  %v1448_v57 = vld [vmem:[%s1740_s7 + $0x160] ss:$16 sps:$4 sm:$0xff]   ;;  %v1449_v58 = vld [vmem:[%s1740_s7 + $0x168] ss:$16 sps:$4 sm:$0xff]  }
  0x51   : > { %v1450_v59 = vld [vmem:[%s1740_s7 + $0x184] ss:$16 sps:$4 sm:$0xff]   ;;  %v1452_v60 = vld [vmem:[%s1740_s7 + $0x18c] ss:$16 sps:$4 sm:$0xff]   ;;  %v1454_v61 = vld [vmem:[%s1740_s7 + $0x180] ss:$16 sps:$4 sm:$0xff]  }
  0x52   : > { %v1455_v62 = vld [vmem:[%s1740_s7 + $0x188] ss:$16 sps:$4 sm:$0xff]   ;;  %v1456_v63 = vld [vmem:[%s1740_s7 + $0x1a4] ss:$16 sps:$4 sm:$0xff]   ;;  %v1458_v0 = vld [vmem:[%s1740_s7 + $0x1ac] ss:$16 sps:$4 sm:$0xff]  }
  0x53   : > { %840 = vmatpush1.bf16.msra.mxu0 %v1406_v29  ;;  %946 = vmatpush1.bf16.msra.mxu1 %v1407_v30  ;;  %v1460_v4 = vld [vmem:[%s1740_s7 + $0x1a0] ss:$16 sps:$4 sm:$0xff]   ;;  %v1461_v5 = vld [vmem:[%s1740_s7 + $0x1a8] ss:$16 sps:$4 sm:$0xff]   ;;  %v1462_v6 = vld [vmem:[%s1740_s7 + $0x1c4] ss:$16 sps:$4 sm:$0xff]  }
  0x54   : > { %841 = vmatprep.subr.bf16.mxu0 %v1408_v31  ;;  %947 = vmatprep.subr.bf16.mxu1 %v1410_v32  ;;  %v1464_v7 = vld [vmem:[%s1740_s7 + $0x1cc] ss:$16 sps:$4 sm:$0xff]   ;;  %v1466_v8 = vld [vmem:[%s1740_s7 + $0x1c0] ss:$16 sps:$4 sm:$0xff]   ;;  %v1467_v10 = vld [vmem:[%s1740_s7 + $0x1c8] ss:$16 sps:$4 sm:$0xff]  }
  0x55   : > { %v1468_v11 = vld [vmem:[%s1740_s7 + $0x1e4] ss:$16 sps:$4 sm:$0xff]   ;;  %v1470_v12 = vld [vmem:[%s1740_s7 + $0x1ec] ss:$16 sps:$4 sm:$0xff]   ;;  %v1472_v13 = vld [vmem:[%s1740_s7 + $0x1e0] ss:$16 sps:$4 sm:$0xff]  }
  0x56   : > { %v1473_v14 = vld [vmem:[%s1740_s7 + $0x1e8] ss:$16 sps:$4 sm:$0xff]   ;;  %v1479_v15 = vld [vmem:[%s1740_s7 + $0x204] ss:$16 sps:$4 sm:$0xff]   ;;  %v1482_v16 = vld [vmem:[%s1740_s7 + $0x20c] ss:$16 sps:$4 sm:$0xff]  }
  0x57   : > { %842 = vmatpush1.bf16.msra.mxu0 %v1412_v33  ;;  %948 = vmatpush1.bf16.msra.mxu1 %v1413_v34  ;;  %v1474_v17 = vld [vmem:[%s1895_s0] ss:$12 sps:$4 sm:$0xff]   ;;  %v1480_v19 = vld [vmem:[%s1740_s7 + $0x208] ss:$16 sps:$4 sm:$0xff]   ;;  %v1488_v21 = vld [vmem:[%s1740_s7 + $0x224] ss:$16 sps:$4 sm:$0xff]  }
  0x58   : > { %843 = vmatprep.subr.bf16.mxu0 %v1414_v35  ;;  %949 = vmatprep.subr.bf16.mxu1 %v1416_v36  ;;  %v1477_v18 = vld [vmem:[%s1740_s7 + $0x200] ss:$16 sps:$4 sm:$0xff]   ;;  %v1483_v20 = vld [vmem:[%s1895_s0 + $0x1c] ss:$12 sps:$4 sm:$0xff]   ;;  %v1485_v25 = vld [vmem:[%s1895_s0 + $0x18] ss:$12 sps:$4 sm:$0xff]  }
  0x59   : > { %v1491_v22 = vld [vmem:[%s1740_s7 + $0x22c] ss:$16 sps:$4 sm:$0xff]   ;;  %v1486_v23 = vld [vmem:[%s1740_s7 + $0x220] ss:$16 sps:$4 sm:$0xff]   ;;  %v1489_v24 = vld [vmem:[%s1740_s7 + $0x228] ss:$16 sps:$4 sm:$0xff]  }
  0x5a   : > { %v1492_v26 = vld [vmem:[%s1895_s0 + $0x8] ss:$12 sps:$4 sm:$0xff]   ;;  %v1493_v27 = vld [vmem:[%s1895_s0 + $0x20] ss:$12 sps:$4 sm:$0xff]   ;;  %s1316_s28 = sshll.u32 (%p1569_p5), %s1220_s15, 5 }
  0x5b   : > { %844 = vmatpush1.bf16.msra.mxu0 %v1418_v37  ;;  %950 = vmatpush1.bf16.msra.mxu1 %v1419_v38  ;;  %s1116_s20 = scalar_lea.vmem (%p1569_p5), %s1898_s3, %s1316_s28 }
  0x5c   : > { %845 = vmatprep.subr.bf16.mxu0 %v1420_v39  ;;  %951 = vmatprep.subr.bf16.mxu1 %v1422_v40 }
  0x5f   : > { %846 = vmatpush1.bf16.msra.mxu0 %v1424_v41  ;;  %952 = vmatpush1.bf16.msra.mxu1 %v1425_v42 }
  0x60   : > { %847 = vmatprep.subr.bf16.mxu0 %v1426_v43  ;;  %953 = vmatprep.subr.bf16.mxu1 %v1428_v44 }
  0x63   : > { %848 = vmatpush1.bf16.msra.mxu0 %v1430_v45  ;;  %954 = vmatpush1.bf16.msra.mxu1 %v1431_v46 }
  0x64   : > { %849 = vmatprep.subr.bf16.mxu0 %v1432_v47  ;;  %955 = vmatprep.subr.bf16.mxu1 %v1434_v48 }
  0x67   : > { %850 = vmatpush1.bf16.msra.mxu0 %v1436_v49  ;;  %956 = vmatpush1.bf16.msra.mxu1 %v1437_v50 }
  0x68   : > { %851 = vmatprep.subr.bf16.mxu0 %v1438_v51  ;;  %957 = vmatprep.subr.bf16.mxu1 %v1440_v52 }
  0x6b   : > { %852 = vmatpush1.bf16.msra.mxu0 %v1442_v53  ;;  %958 = vmatpush1.bf16.msra.mxu1 %v1443_v54 }
  0x6c   : > { %853 = vmatprep.subr.bf16.mxu0 %v1444_v55  ;;  %959 = vmatprep.subr.bf16.mxu1 %v1446_v56 }
  0x6f   : > { %854 = vmatpush1.bf16.msra.mxu0 %v1448_v57  ;;  %960 = vmatpush1.bf16.msra.mxu1 %v1449_v58 }
  0x70   : > { %855 = vmatprep.subr.bf16.mxu0 %v1450_v59  ;;  %961 = vmatprep.subr.bf16.mxu1 %v1452_v60 }
  0x73   : > { %856 = vmatpush1.bf16.msra.mxu0 %v1454_v61  ;;  %962 = vmatpush1.bf16.msra.mxu1 %v1455_v62 }
  0x74   : > { %857 = vmatprep.subr.bf16.mxu0 %v1456_v63  ;;  %963 = vmatprep.subr.bf16.mxu1 %v1458_v0 }
  0x77   : > { %858 = vmatpush1.bf16.msra.mxu0 %v1460_v4  ;;  %964 = vmatpush1.bf16.msra.mxu1 %v1461_v5 }
  0x78   : > { %859 = vmatprep.subr.bf16.mxu0 %v1462_v6  ;;  %965 = vmatprep.subr.bf16.mxu1 %v1464_v7 }
  0x7b   : > { %860 = vmatpush1.bf16.msra.mxu0 %v1466_v8  ;;  %966 = vmatpush1.bf16.msra.mxu1 %v1467_v10 }
  0x7c   : > { %861 = vmatprep.subr.bf16.mxu0 %v1468_v11  ;;  %967 = vmatprep.subr.bf16.mxu1 %v1470_v12 }
  0x7f   : > { %862 = vmatpush1.bf16.msra.mxu0 %v1472_v13  ;;  %968 = vmatpush1.bf16.msra.mxu1 %v1473_v14 }
  0x80   : > { %884 = vmatprep.subr.bf16.mxu0 %v1479_v15  ;;  %990 = vmatprep.subr.bf16.mxu1 %v1482_v16 }
  0x82   : > { %864 = vmatmul.mubr.bf16.vlgmr.msra.gmra.mrb[0].mxu0 %v1474_v17  ;;  %970 = vmatmul.mubr.bf16.vlgmr.msra.gmra.mrb[0].mxu1 %v1474_v17 }
  0x83   : > { %885 = vmatpush1.bf16.msra.mxu0 %v1477_v18  ;;  %991 = vmatpush1.bf16.msra.mxu1 %v1480_v19 }
  0x84   : > { %873 = vmatprep.mubr.bf16.mxu0 %v1483_v20  ;;  %979 = vmatprep.mubr.bf16.mxu1 %v1483_v20 }
  0x85   : > { %886 = vmatprep.subr.bf16.mxu0 %v1488_v21  ;;  %992 = vmatprep.subr.bf16.mxu1 %v1491_v22 }
  0x87   : > { %887 = vmatpush1.bf16.msra.mxu0 %v1486_v23  ;;  %993 = vmatpush1.bf16.msra.mxu1 %v1489_v24 }
  0x8a   : > { %874 = vmatmul.mubr.bf16.gmra.mrb[4].mxu0 %v1485_v25  ;;  %980 = vmatmul.mubr.bf16.gmra.mrb[4].mxu1 %v1485_v25 }
  0x8b   : > { %916 = vmatprep.mubr.bf16.mxu0 %v1518_v9  ;;  %1022 = vmatprep.mubr.bf16.mxu1 %v1518_v9 }
  0x92   : > { %1306 = vmatmul.mubr.msk.bf16.vlgmr.msra.gmra.mrb[0].mxu0 %vm824_vm0, %v1492_v26  ;;  %1308 = vmatmul.mubr.msk.bf16.vlgmr.msra.gmra.mrb[0].mxu1 %vm824_vm0, %v1492_v26 }
  0x93   : > { %926 = vmatprep.mubr.bf16.mxu0 %v1518_v9  ;;  %1032 = vmatprep.mubr.bf16.mxu1 %v1518_v9 }
  0x9a   : > { %1307 = vmatmul.mubr.msk.bf16.gmra.mrb[4].mxu0 %vm824_vm0, %v1493_v27  ;;  %1309 = vmatmul.mubr.msk.bf16.gmra.mrb[4].mxu1 %vm824_vm0, %v1493_v27 }
  0xbe   : > { %v417_v28 = vpop.permute.xlu0 %416  ;;  %v427_v55 = vpop.permute.xlu1 %426 }
  0xc4   : > { %v422_v29 = vpop.permute.xlu0 %421  ;;  %v432_v11 = vpop.permute.xlu1 %431 }
 0x165   : > { %v918_v30 = vpop.f32.mrb[0].mxu0  ;;  %v1024_v31 = vpop.f32.mrb[0].mxu1 }
 0x166   : > { %v1317_v32 = vadd.f32 %v918_v30, %v417_v28  ;;  %v1325_v33 = vadd.f32 %v1024_v31, %v417_v28  ;;  %v920_v34 = vpop.f32.mrb[1].mxu0  ;;  %v1026_v35 = vpop.f32.mrb[1].mxu1 }
 0x167   : > { %v1318_v36 = vadd.f32 %v920_v34, %v417_v28  ;;  %v1326_v37 = vadd.f32 %v1026_v35, %v417_v28  ;;  %v922_v38 = vpop.f32.mrb[2].mxu0  ;;  %v1028_v9 = vpop.f32.mrb[2].mxu1 }
 0x168   : > { %vm1043_vm1 = vcmp.ge.f32.partialorder %v1317_v32, 0.0  ;;  %v1059_v39 = vmul.f32 0.1, %v1317_v32  ;;  %vm1045_vm2 = vcmp.ge.f32.partialorder %v1325_v33, 0.0  ;;  %v1061_v40 = vmul.f32 0.1, %v1325_v33 }
 0x169   : > { %vm1044_vm3 = vcmp.ge.f32.partialorder %v1318_v36, 0.0  ;;  %v1060_v41 = vmul.f32 0.1, %v1318_v36  ;;  %vm1046_vm4 = vcmp.ge.f32.partialorder %v1326_v37, 0.0  ;;  %v1062_v42 = vmul.f32 0.1, %v1326_v37 }
 0x16a   : > { %v1075_v43 = vsel %vm1043_vm1, %v1317_v32, %v1059_v39  ;;  %v1077_v44 = vsel %vm1045_vm2, %v1325_v33, %v1061_v40  ;;  %v1319_v45 = vadd.f32 %v922_v38, %v422_v29  ;;  %v1327_v46 = vadd.f32 %v1028_v9, %v422_v29  ;;  %v924_v47 = vpop.f32.mrb[3].mxu0  ;;  %v1030_v48 = vpop.f32.mrb[3].mxu1 }
 0x16b   : > { %1091 = vst [vmem:[%s1844_s12] sm:$0xff] %v1075_v43  ;;  %1093 = vst [vmem:[%s1844_s12 + $0x10] sm:$0xff] %v1077_v44  ;;  %v1076_v49 = vsel %vm1044_vm3, %v1318_v36, %v1060_v41  ;;  %v1078_v50 = vsel %vm1046_vm4, %v1326_v37, %v1062_v42  ;;  %v1320_v51 = vadd.f32 %v924_v47, %v422_v29 }
 0x16c   : > { %v1328_v52 = vadd.f32 %v1030_v48, %v422_v29  ;;  %1092 = vst [vmem:[%s1844_s12 + $0x8] sm:$0xff] %v1076_v49  ;;  %1094 = vst [vmem:[%s1844_s12 + $0x18] sm:$0xff] %v1078_v50  ;;  %vm1047_vm5 = vcmp.ge.f32.partialorder %v1319_v45, 0.0  ;;  %v1063_v53 = vmul.f32 0.1, %v1319_v45  ;;  %vm1049_vm6 = vcmp.ge.f32.partialorder %v1327_v46, 0.0 }
 0x16d   : > { %v1065_v54 = vmul.f32 0.1, %v1327_v46  ;;  %vm1048_vm7 = vcmp.ge.f32.partialorder %v1320_v51, 0.0  ;;  %v1064_v56 = vmul.f32 0.1, %v1320_v51  ;;  %v928_v60 = vpop.f32.mrb[4].mxu0 }
 0x16e   : > { %vm1050_vm8 = vcmp.ge.f32.partialorder %v1328_v52, 0.0  ;;  %v1066_v57 = vmul.f32 0.1, %v1328_v52  ;;  %v1079_v58 = vsel %vm1047_vm5, %v1319_v45, %v1063_v53  ;;  %v1034_v61 = vpop.f32.mrb[4].mxu1  ;;  %v1321_v0 = vadd.f32 %v928_v60, %v427_v55  ;;  %v930_v2 = vpop.f32.mrb[5].mxu0 }
 0x16f   : > { %v1081_v59 = vsel %vm1049_vm6, %v1327_v46, %v1065_v54  ;;  %1095 = vst [vmem:[%s1844_s12 + $0x20] sm:$0xff] %v1079_v58  ;;  %v1080_v62 = vsel %vm1048_vm7, %v1320_v51, %v1064_v56  ;;  %v1329_v1 = vadd.f32 %v1034_v61, %v427_v55  ;;  %v1036_v3 = vpop.f32.mrb[5].mxu1  ;;  %v1322_v4 = vadd.f32 %v930_v2, %v427_v55  ;;  %v932_v6 = vpop.f32.mrb[6].mxu0 }
 0x170   : > { %1097 = vst [vmem:[%s1844_s12 + $0x30] sm:$0xff] %v1081_v59  ;;  %v1082_v63 = vsel %vm1050_vm8, %v1328_v52, %v1066_v57  ;;  %1096 = vst [vmem:[%s1844_s12 + $0x28] sm:$0xff] %v1080_v62  ;;  %v1330_v5 = vadd.f32 %v1036_v3, %v427_v55  ;;  %v1038_v7 = vpop.f32.mrb[6].mxu1  ;;  %vm1051_vm9 = vcmp.ge.f32.partialorder %v1321_v0, 0.0  ;;  %v1067_v8 = vmul.f32 0.1, %v1321_v0 }
 0x171   : > { %1098 = vst [vmem:[%s1844_s12 + $0x38] sm:$0xff] %v1082_v63  ;;  %vm1053_vm10 = vcmp.ge.f32.partialorder %v1329_v1, 0.0  ;;  %v1069_v10 = vmul.f32 0.1, %v1329_v1  ;;  %vm1052_vm11 = vcmp.ge.f32.partialorder %v1322_v4, 0.0  ;;  %v1323_v16 = vadd.f32 %v932_v6, %v432_v11  ;;  %v934_v18 = vpop.f32.mrb[7].mxu0 }
 0x172   : > { %v1068_v12 = vmul.f32 0.1, %v1322_v4  ;;  %vm1054_vm12 = vcmp.ge.f32.partialorder %v1330_v5, 0.0  ;;  %v1070_v13 = vmul.f32 0.1, %v1330_v5  ;;  %v1083_v14 = vsel %vm1051_vm9, %v1321_v0, %v1067_v8  ;;  %v1040_v19 = vpop.f32.mrb[7].mxu1 }
 0x173   : > { %v1085_v15 = vsel %vm1053_vm10, %v1329_v1, %v1069_v10  ;;  %v1331_v17 = vadd.f32 %v1038_v7, %v432_v11  ;;  %1099 = vst [vmem:[%s1844_s12 + $0x40] sm:$0xff] %v1083_v14  ;;  %v1324_v22 = vadd.f32 %v934_v18, %v432_v11  ;;  %v1332_v23 = vadd.f32 %v1040_v19, %v432_v11  ;;  %1113 = sbr.rel (!%p1569_p5) target bundleno = 386 (0x182), region = 59  ;;  %v1129_v32 = vld [vmem:[%s1844_s12] sm:$0xff] (%p1569_p5)  ;;  %v1131_v33 = vld [vmem:[%s1844_s12 + $0x8] sm:$0xff] (%p1569_p5)  ;;  %v1133_v34 = vld [vmem:[%s1844_s12 + $0x10] sm:$0xff] (%p1569_p5) }
 0x174   : > { %1101 = vst [vmem:[%s1844_s12 + $0x50] sm:$0xff] %v1085_v15  ;;  %v1084_v20 = vsel %vm1052_vm11, %v1322_v4, %v1068_v12  ;;  %v1086_v21 = vsel %vm1054_vm12, %v1330_v5, %v1070_v13  ;;  %vm1055_vm13 = vcmp.ge.f32.partialorder %v1323_v16, 0.0  ;;  %v1071_v24 = vmul.f32 0.1, %v1323_v16  ;;  %v1135_v35 = vld [vmem:[%s1844_s12 + $0x18] sm:$0xff] (%p1569_p5)  ;;  %1130 = vst [vmem:[%s1116_s20] sm:$0xff] (%p1569_p5), %v1129_v32 }
 0x175   : > { %1100 = vst [vmem:[%s1844_s12 + $0x48] sm:$0xff] %v1084_v20  ;;  %1102 = vst [vmem:[%s1844_s12 + $0x58] sm:$0xff] %v1086_v21  ;;  %vm1057_vm14 = vcmp.ge.f32.partialorder %v1331_v17, 0.0  ;;  %v1073_v25 = vmul.f32 0.1, %v1331_v17  ;;  %vm1056_vm15 = vcmp.ge.f32.partialorder %v1324_v22, 0.0 }
 0x176   : > { %v1072_v26 = vmul.f32 0.1, %v1324_v22  ;;  %vm1058_vm0 = vcmp.ge.f32.partialorder %v1332_v23, 0.0  ;;  %v1074_v27 = vmul.f32 0.1, %v1332_v23  ;;  %v1087_v28 = vsel %vm1055_vm13, %v1323_v16, %v1071_v24  ;;  %v1137_v36 = vld [vmem:[%s1844_s12 + $0x20] sm:$0xff] (%p1569_p5) }
 0x177   : > { %v1089_v29 = vsel %vm1057_vm14, %v1331_v17, %v1073_v25  ;;  %1103 = vst [vmem:[%s1844_s12 + $0x60] sm:$0xff] %v1087_v28  ;;  %v1139_v37 = vld [vmem:[%s1844_s12 + $0x28] sm:$0xff] (%p1569_p5)  ;;  %1132 = vst [vmem:[%s1116_s20 + $0x8] sm:$0xff] (%p1569_p5), %v1131_v33  ;;  %v1141_v38 = vld [vmem:[%s1844_s12 + $0x30] sm:$0xff] (%p1569_p5) }
 0x178   : > { %1105 = vst [vmem:[%s1844_s12 + $0x70] sm:$0xff] %v1089_v29  ;;  %v1088_v30 = vsel %vm1056_vm15, %v1324_v22, %v1072_v26  ;;  %v1090_v31 = vsel %vm1058_vm0, %v1332_v23, %v1074_v27  ;;  %1134 = vst [vmem:[%s1116_s20 + $0x10] sm:$0xff] (%p1569_p5), %v1133_v34  ;;  %v1143_v9 = vld [vmem:[%s1844_s12 + $0x38] sm:$0xff] (%p1569_p5) }
 0x179   : > { %1104 = vst [vmem:[%s1844_s12 + $0x68] sm:$0xff] %v1088_v30  ;;  %1106 = vst [vmem:[%s1844_s12 + $0x78] sm:$0xff] %v1090_v31 }
 0x17a   : > { %1136 = vst [vmem:[%s1116_s20 + $0x18] sm:$0xff] %v1135_v35  ;;  %1138 = vst [vmem:[%s1116_s20 + $0x80] sm:$0xff] %v1137_v36  ;;  %v1145_v39 = vld [vmem:[%s1844_s12 + $0x40] sm:$0xff] }
 0x17b   : > { %1140 = vst [vmem:[%s1116_s20 + $0x88] sm:$0xff] %v1139_v37  ;;  %1142 = vst [vmem:[%s1116_s20 + $0x90] sm:$0xff] %v1141_v38  ;;  %v1149_v41 = vld [vmem:[%s1844_s12 + $0x50] sm:$0xff] }
 0x17c   : > { %1144 = vst [vmem:[%s1116_s20 + $0x98] sm:$0xff] %v1143_v9  ;;  %1146 = vst [vmem:[%s1116_s20 + $0x100] sm:$0xff] %v1145_v39  ;;  %v1147_v40 = vld [vmem:[%s1844_s12 + $0x48] sm:$0xff]  ;;  %v1151_v42 = vld [vmem:[%s1844_s12 + $0x58] sm:$0xff] }
 0x17d   : > { %1148 = vst [vmem:[%s1116_s20 + $0x108] sm:$0xff] %v1147_v40  ;;  %1150 = vst [vmem:[%s1116_s20 + $0x110] sm:$0xff] %v1149_v41 }
 0x17e   : > { %1152 = vst [vmem:[%s1116_s20 + $0x118] sm:$0xff] %v1151_v42  ;;  %v1153_v43 = vld [vmem:[%s1844_s12 + $0x60] sm:$0xff] }
 0x17f   : > { %v1157_v45 = vld [vmem:[%s1844_s12 + $0x70] sm:$0xff]  ;;  %1154 = vst [vmem:[%s1116_s20 + $0x180] sm:$0xff] %v1153_v43 }
 0x180   : > { %v1155_v44 = vld [vmem:[%s1844_s12 + $0x68] sm:$0xff]  ;;  %1158 = vst [vmem:[%s1116_s20 + $0x190] sm:$0xff] %v1157_v45  ;;  %v1159_v46 = vld [vmem:[%s1844_s12 + $0x78] sm:$0xff] }
 0x181   : > { %1156 = vst [vmem:[%s1116_s20 + $0x188] sm:$0xff] %v1155_v44  ;;  %1160 = vst [vmem:[%s1116_s20 + $0x198] sm:$0xff] %v1159_v46 }
 0x182 PF: > { %p10_p10 = scmp.ge.s32.totalorder %s1556_s16, 6   ;;  %s1900_s12 = smov %s1512_s13 }
 0x183   : > { %s1901_s13 = smov %s1567_s19  ;;  %s1902_s14 = smov %s1556_s16 }
 0x184   :  { %12 = sbr.rel (!%p10_p10) target bundleno = 2 (0x2), region = 113 }

// kernel: resnet_encoder_forward.18
= control target key start
LH: loop header
LB: loop body
LE: loop exit
PB: predicated region body
PF: predicated region fallthrough
CT: control target
= control target key end

     0   :  { %v1029_v1 = vmov 0   ;;  %vm509_vm0 = vcmask 261120   ;;  %s1350_s1 = inlined_call_operand.vmem [shape: bf16[288,512], index: 1, kind: input, shape index: {}]   ;;  %s1351_s0 = inlined_call_operand.vmem [shape: bf16[32,288], index: 0, kind: input, shape index: {}]   ;;  %s1352_s2 = inlined_call_operand.vmem [shape: f32[32,1], index: 2, kind: input, shape index: {}]   ;;  %s1353_s3 = inlined_call_operand.vmem [shape: f32[32,512], index: 3, kind: output, shape index: {}]  }
   0x1   :  { %v913_v0 = vld [vmem:[%s1350_s1 + $0x4] ss:$16 sps:$4 sm:$0xff]   ;;  %911 = vset.pattern.permute.xlu0 %v1029_v1  ;;  %912 = vset.pattern.permute.xlu1 %v1029_v1  ;;  %v915_v2 = vld [vmem:[%s1350_s1 + $0xc] ss:$16 sps:$4 sm:$0xff]   ;;  %v917_v3 = vld [vmem:[%s1350_s1] ss:$16 sps:$4 sm:$0xff]  }
   0x2   :  { %516 = vmatprep.subr.bf16.mxu0 %v913_v0  ;;  %v918_v4 = vld [vmem:[%s1350_s1 + $0x8] ss:$16 sps:$4 sm:$0xff]   ;;  %622 = vmatprep.subr.bf16.mxu1 %v915_v2  ;;  %v919_v5 = vld [vmem:[%s1350_s1 + $0x24] ss:$16 sps:$4 sm:$0xff]   ;;  %v921_v6 = vld [vmem:[%s1350_s1 + $0x2c] ss:$16 sps:$4 sm:$0xff]  }
   0x3   :  { %517 = vmatpush1.bf16.msra.mxu0 %v917_v3  ;;  %623 = vmatpush1.bf16.msra.mxu1 %v918_v4  ;;  %v923_v7 = vld [vmem:[%s1350_s1 + $0x20] ss:$16 sps:$4 sm:$0xff]   ;;  %v924_v8 = vld [vmem:[%s1350_s1 + $0x28] ss:$16 sps:$4 sm:$0xff]   ;;  %v925_v9 = vld [vmem:[%s1350_s1 + $0x44] ss:$16 sps:$4 sm:$0xff]  }
   0x4   :  { %518 = vmatprep.subr.bf16.mxu0 %v919_v5  ;;  %624 = vmatprep.subr.bf16.mxu1 %v921_v6  ;;  %v927_v10 = vld [vmem:[%s1350_s1 + $0x4c] ss:$16 sps:$4 sm:$0xff]   ;;  %v929_v11 = vld [vmem:[%s1350_s1 + $0x40] ss:$16 sps:$4 sm:$0xff]   ;;  %v930_v12 = vld [vmem:[%s1350_s1 + $0x48] ss:$16 sps:$4 sm:$0xff]  }
   0x5   :  { %v931_v13 = vld [vmem:[%s1350_s1 + $0x64] ss:$16 sps:$4 sm:$0xff]   ;;  %v933_v14 = vld [vmem:[%s1350_s1 + $0x6c] ss:$16 sps:$4 sm:$0xff]   ;;  %v935_v15 = vld [vmem:[%s1350_s1 + $0x60] ss:$16 sps:$4 sm:$0xff]  }
   0x6   :  { %v936_v16 = vld [vmem:[%s1350_s1 + $0x68] ss:$16 sps:$4 sm:$0xff]   ;;  %v937_v17 = vld [vmem:[%s1350_s1 + $0x84] ss:$16 sps:$4 sm:$0xff]   ;;  %v939_v18 = vld [vmem:[%s1350_s1 + $0x8c] ss:$16 sps:$4 sm:$0xff]  }
   0x7   :  { %519 = vmatpush1.bf16.msra.mxu0 %v923_v7  ;;  %625 = vmatpush1.bf16.msra.mxu1 %v924_v8  ;;  %v941_v19 = vld [vmem:[%s1350_s1 + $0x80] ss:$16 sps:$4 sm:$0xff]   ;;  %v942_v20 = vld [vmem:[%s1350_s1 + $0x88] ss:$16 sps:$4 sm:$0xff]   ;;  %v943_v21 = vld [vmem:[%s1350_s1 + $0xa4] ss:$16 sps:$4 sm:$0xff]  }
   0x8   :  { %520 = vmatprep.subr.bf16.mxu0 %v925_v9  ;;  %626 = vmatprep.subr.bf16.mxu1 %v927_v10  ;;  %v945_v22 = vld [vmem:[%s1350_s1 + $0xac] ss:$16 sps:$4 sm:$0xff]   ;;  %v947_v23 = vld [vmem:[%s1350_s1 + $0xa0] ss:$16 sps:$4 sm:$0xff]   ;;  %v948_v24 = vld [vmem:[%s1350_s1 + $0xa8] ss:$16 sps:$4 sm:$0xff]  }
   0x9   :  { %v949_v25 = vld [vmem:[%s1350_s1 + $0xc4] ss:$16 sps:$4 sm:$0xff]   ;;  %v951_v26 = vld [vmem:[%s1350_s1 + $0xcc] ss:$16 sps:$4 sm:$0xff]   ;;  %v953_v27 = vld [vmem:[%s1350_s1 + $0xc0] ss:$16 sps:$4 sm:$0xff]  }
   0xa   :  { %v954_v28 = vld [vmem:[%s1350_s1 + $0xc8] ss:$16 sps:$4 sm:$0xff]   ;;  %v955_v29 = vld [vmem:[%s1350_s1 + $0xe4] ss:$16 sps:$4 sm:$0xff]   ;;  %v957_v30 = vld [vmem:[%s1350_s1 + $0xec] ss:$16 sps:$4 sm:$0xff]  }
   0xb   :  { %521 = vmatpush1.bf16.msra.mxu0 %v929_v11  ;;  %627 = vmatpush1.bf16.msra.mxu1 %v930_v12  ;;  %v959_v31 = vld [vmem:[%s1350_s1 + $0xe0] ss:$16 sps:$4 sm:$0xff]   ;;  %v960_v32 = vld [vmem:[%s1350_s1 + $0xe8] ss:$16 sps:$4 sm:$0xff]   ;;  %v961_v33 = vld [vmem:[%s1350_s1 + $0x104] ss:$16 sps:$4 sm:$0xff]  }
   0xc   :  { %522 = vmatprep.subr.bf16.mxu0 %v931_v13  ;;  %628 = vmatprep.subr.bf16.mxu1 %v933_v14  ;;  %v963_v34 = vld [vmem:[%s1350_s1 + $0x10c] ss:$16 sps:$4 sm:$0xff]   ;;  %v965_v35 = vld [vmem:[%s1350_s1 + $0x100] ss:$16 sps:$4 sm:$0xff]   ;;  %v966_v36 = vld [vmem:[%s1350_s1 + $0x108] ss:$16 sps:$4 sm:$0xff]  }
   0xd   :  { %v967_v37 = vld [vmem:[%s1350_s1 + $0x124] ss:$16 sps:$4 sm:$0xff]   ;;  %v969_v38 = vld [vmem:[%s1350_s1 + $0x12c] ss:$16 sps:$4 sm:$0xff]   ;;  %v971_v39 = vld [vmem:[%s1350_s1 + $0x120] ss:$16 sps:$4 sm:$0xff]  }
   0xe   :  { %v972_v40 = vld [vmem:[%s1350_s1 + $0x128] ss:$16 sps:$4 sm:$0xff]   ;;  %v973_v41 = vld [vmem:[%s1350_s1 + $0x144] ss:$16 sps:$4 sm:$0xff]   ;;  %v975_v42 = vld [vmem:[%s1350_s1 + $0x14c] ss:$16 sps:$4 sm:$0xff]  }
   0xf   :  { %523 = vmatpush1.bf16.msra.mxu0 %v935_v15  ;;  %629 = vmatpush1.bf16.msra.mxu1 %v936_v16  ;;  %v977_v43 = vld [vmem:[%s1350_s1 + $0x140] ss:$16 sps:$4 sm:$0xff]   ;;  %v978_v44 = vld [vmem:[%s1350_s1 + $0x148] ss:$16 sps:$4 sm:$0xff]   ;;  %v979_v45 = vld [vmem:[%s1350_s1 + $0x164] ss:$16 sps:$4 sm:$0xff]  }
  0x10   :  { %524 = vmatprep.subr.bf16.mxu0 %v937_v17  ;;  %630 = vmatprep.subr.bf16.mxu1 %v939_v18  ;;  %v981_v46 = vld [vmem:[%s1350_s1 + $0x16c] ss:$16 sps:$4 sm:$0xff]   ;;  %v983_v47 = vld [vmem:[%s1350_s1 + $0x160] ss:$16 sps:$4 sm:$0xff]   ;;  %v984_v48 = vld [vmem:[%s1350_s1 + $0x168] ss:$16 sps:$4 sm:$0xff]  }
  0x11   :  { %v1011_v49 = vld [vmem:[%s1351_s0 + $0x4] ss:$12 sps:$4 sm:$0xff]   ;;  %v987_v51 = vld [vmem:[%s1350_s1 + $0x18c] ss:$16 sps:$4 sm:$0xff]   ;;  %v990_v53 = vld [vmem:[%s1350_s1 + $0x188] ss:$16 sps:$4 sm:$0xff]  }
  0x12   :  { %v985_v50 = vld [vmem:[%s1350_s1 + $0x184] ss:$16 sps:$4 sm:$0xff]   ;;  %548 = vmatprep.mubr.bf16.mxu0 %v1011_v49  ;;  %654 = vmatprep.mubr.bf16.mxu1 %v1011_v49  ;;  %v989_v52 = vld [vmem:[%s1350_s1 + $0x180] ss:$16 sps:$4 sm:$0xff]   ;;  %v993_v55 = vld [vmem:[%s1350_s1 + $0x1ac] ss:$16 sps:$4 sm:$0xff]  }
  0x13   :  { %525 = vmatpush1.bf16.msra.mxu0 %v941_v19  ;;  %631 = vmatpush1.bf16.msra.mxu1 %v942_v20  ;;  %v991_v54 = vld [vmem:[%s1350_s1 + $0x1a4] ss:$16 sps:$4 sm:$0xff]   ;;  %v995_v56 = vld [vmem:[%s1350_s1 + $0x1a0] ss:$16 sps:$4 sm:$0xff]   ;;  %v996_v57 = vld [vmem:[%s1350_s1 + $0x1a8] ss:$16 sps:$4 sm:$0xff]  }
  0x14   :  { %526 = vmatprep.subr.bf16.mxu0 %v943_v21  ;;  %632 = vmatprep.subr.bf16.mxu1 %v945_v22  ;;  %v95_v58 = vld [vmem:[%s1352_s2] sm:$0xff]  ;;  %v999_v60 = vld [vmem:[%s1350_s1 + $0x1cc] ss:$16 sps:$4 sm:$0xff]   ;;  %v97_v61 = vld [vmem:[%s1352_s2 + $0x10] sm:$0xff] }
  0x15   :  { %v997_v59 = vld [vmem:[%s1350_s1 + $0x1c4] ss:$16 sps:$4 sm:$0xff]   ;;  %101 = vperm.xlu0 %911, %v95_v58   ;;  %111 = vperm.xlu1 %912, %v97_v61   ;;  %v96_v62 = vld [vmem:[%s1352_s2 + $0x8] sm:$0xff]  ;;  %v98_v63 = vld [vmem:[%s1352_s2 + $0x18] sm:$0xff] }
  0x16   :  { %v1001_v0 = vld [vmem:[%s1350_s1 + $0x1c0] ss:$16 sps:$4 sm:$0xff]   ;;  %v1002_v2 = vld [vmem:[%s1350_s1 + $0x1c8] ss:$16 sps:$4 sm:$0xff]   ;;  %v1003_v3 = vld [vmem:[%s1350_s1 + $0x1e4] ss:$16 sps:$4 sm:$0xff]  }
  0x17   :  { %527 = vmatpush1.bf16.msra.mxu0 %v947_v23  ;;  %633 = vmatpush1.bf16.msra.mxu1 %v948_v24  ;;  %v1005_v4 = vld [vmem:[%s1350_s1 + $0x1ec] ss:$16 sps:$4 sm:$0xff]   ;;  %v1007_v5 = vld [vmem:[%s1350_s1 + $0x1e0] ss:$16 sps:$4 sm:$0xff]   ;;  %v1008_v6 = vld [vmem:[%s1350_s1 + $0x1e8] ss:$16 sps:$4 sm:$0xff]  }
  0x18   :  { %528 = vmatprep.subr.bf16.mxu0 %v949_v25  ;;  %634 = vmatprep.subr.bf16.mxu1 %v951_v26  ;;  %v1014_v7 = vld [vmem:[%s1350_s1 + $0x204] ss:$16 sps:$4 sm:$0xff]   ;;  %v1017_v8 = vld [vmem:[%s1350_s1 + $0x20c] ss:$16 sps:$4 sm:$0xff]   ;;  %v1012_v10 = vld [vmem:[%s1350_s1 + $0x200] ss:$16 sps:$4 sm:$0xff]  }
  0x19   :  { %106 = vperm.xlu0 %911, %v96_v62   ;;  %116 = vperm.xlu1 %912, %v98_v63   ;;  %v1009_v9 = vld [vmem:[%s1351_s0] ss:$12 sps:$4 sm:$0xff]   ;;  %v1015_v11 = vld [vmem:[%s1350_s1 + $0x208] ss:$16 sps:$4 sm:$0xff]   ;;  %v1023_v13 = vld [vmem:[%s1350_s1 + $0x224] ss:$16 sps:$4 sm:$0xff]  }
  0x1a   :  { %v1018_v12 = vld [vmem:[%s1351_s0 + $0x1c] ss:$12 sps:$4 sm:$0xff]   ;;  %v1021_v15 = vld [vmem:[%s1350_s1 + $0x220] ss:$16 sps:$4 sm:$0xff]   ;;  %v1020_v17 = vld [vmem:[%s1351_s0 + $0x18] ss:$12 sps:$4 sm:$0xff]  }
  0x1b   :  { %529 = vmatpush1.bf16.msra.mxu0 %v953_v27  ;;  %635 = vmatpush1.bf16.msra.mxu1 %v954_v28  ;;  %v1026_v14 = vld [vmem:[%s1350_s1 + $0x22c] ss:$16 sps:$4 sm:$0xff]   ;;  %v1024_v16 = vld [vmem:[%s1350_s1 + $0x228] ss:$16 sps:$4 sm:$0xff]  }
  0x1c   :  { %530 = vmatprep.subr.bf16.mxu0 %v955_v29  ;;  %636 = vmatprep.subr.bf16.mxu1 %v957_v30  ;;  %v1027_v18 = vld [vmem:[%s1351_s0 + $0x8] ss:$12 sps:$4 sm:$0xff]   ;;  %v1028_v19 = vld [vmem:[%s1351_s0 + $0x20] ss:$12 sps:$4 sm:$0xff]  }
  0x1f   :  { %531 = vmatpush1.bf16.msra.mxu0 %v959_v31  ;;  %637 = vmatpush1.bf16.msra.mxu1 %v960_v32 }
  0x20   :  { %532 = vmatprep.subr.bf16.mxu0 %v961_v33  ;;  %638 = vmatprep.subr.bf16.mxu1 %v963_v34 }
  0x23   :  { %533 = vmatpush1.bf16.msra.mxu0 %v965_v35  ;;  %639 = vmatpush1.bf16.msra.mxu1 %v966_v36 }
  0x24   :  { %534 = vmatprep.subr.bf16.mxu0 %v967_v37  ;;  %640 = vmatprep.subr.bf16.mxu1 %v969_v38 }
  0x27   :  { %535 = vmatpush1.bf16.msra.mxu0 %v971_v39  ;;  %641 = vmatpush1.bf16.msra.mxu1 %v972_v40 }
  0x28   :  { %536 = vmatprep.subr.bf16.mxu0 %v973_v41  ;;  %642 = vmatprep.subr.bf16.mxu1 %v975_v42 }
  0x2b   :  { %537 = vmatpush1.bf16.msra.mxu0 %v977_v43  ;;  %643 = vmatpush1.bf16.msra.mxu1 %v978_v44 }
  0x2c   :  { %538 = vmatprep.subr.bf16.mxu0 %v979_v45  ;;  %644 = vmatprep.subr.bf16.mxu1 %v981_v46 }
  0x2f   :  { %539 = vmatpush1.bf16.msra.mxu0 %v983_v47  ;;  %645 = vmatpush1.bf16.msra.mxu1 %v984_v48 }
  0x30   :  { %540 = vmatprep.subr.bf16.mxu0 %v985_v50  ;;  %646 = vmatprep.subr.bf16.mxu1 %v987_v51 }
  0x33   :  { %541 = vmatpush1.bf16.msra.mxu0 %v989_v52  ;;  %647 = vmatpush1.bf16.msra.mxu1 %v990_v53 }
  0x34   :  { %542 = vmatprep.subr.bf16.mxu0 %v991_v54  ;;  %648 = vmatprep.subr.bf16.mxu1 %v993_v55 }
  0x37   :  { %543 = vmatpush1.bf16.msra.mxu0 %v995_v56  ;;  %649 = vmatpush1.bf16.msra.mxu1 %v996_v57 }
  0x38   :  { %544 = vmatprep.subr.bf16.mxu0 %v997_v59  ;;  %650 = vmatprep.subr.bf16.mxu1 %v999_v60 }
  0x3b   :  { %545 = vmatpush1.bf16.msra.mxu0 %v1001_v0  ;;  %651 = vmatpush1.bf16.msra.mxu1 %v1002_v2 }
  0x3c   :  { %546 = vmatprep.subr.bf16.mxu0 %v1003_v3  ;;  %652 = vmatprep.subr.bf16.mxu1 %v1005_v4 }
  0x3f   :  { %547 = vmatpush1.bf16.msra.mxu0 %v1007_v5  ;;  %653 = vmatpush1.bf16.msra.mxu1 %v1008_v6 }
  0x40   :  { %569 = vmatprep.subr.bf16.mxu0 %v1014_v7  ;;  %675 = vmatprep.subr.bf16.mxu1 %v1017_v8 }
  0x42   :  { %549 = vmatmul.mubr.bf16.vlgmr.msra.gmra.mrb[0].mxu0 %v1009_v9  ;;  %655 = vmatmul.mubr.bf16.vlgmr.msra.gmra.mrb[0].mxu1 %v1009_v9 }
  0x43   :  { %570 = vmatpush1.bf16.msra.mxu0 %v1012_v10  ;;  %676 = vmatpush1.bf16.msra.mxu1 %v1015_v11 }
  0x44   :  { %558 = vmatprep.mubr.bf16.mxu0 %v1018_v12  ;;  %664 = vmatprep.mubr.bf16.mxu1 %v1018_v12 }
  0x45   :  { %571 = vmatprep.subr.bf16.mxu0 %v1023_v13  ;;  %677 = vmatprep.subr.bf16.mxu1 %v1026_v14 }
  0x47   :  { %572 = vmatpush1.bf16.msra.mxu0 %v1021_v15  ;;  %678 = vmatpush1.bf16.msra.mxu1 %v1024_v16 }
  0x4a   :  { %559 = vmatmul.mubr.bf16.gmra.mrb[4].mxu0 %v1020_v17  ;;  %665 = vmatmul.mubr.bf16.gmra.mrb[4].mxu1 %v1020_v17 }
  0x4b   :  { %601 = vmatprep.mubr.bf16.mxu0 %v1029_v1  ;;  %707 = vmatprep.mubr.bf16.mxu1 %v1029_v1 }
  0x52   :  { %874 = vmatmul.mubr.msk.bf16.vlgmr.msra.gmra.mrb[0].mxu0 %vm509_vm0, %v1027_v18  ;;  %876 = vmatmul.mubr.msk.bf16.vlgmr.msra.gmra.mrb[0].mxu1 %vm509_vm0, %v1027_v18 }
  0x53   :  { %611 = vmatprep.mubr.bf16.mxu0 %v1029_v1  ;;  %717 = vmatprep.mubr.bf16.mxu1 %v1029_v1 }
  0x5a   :  { %875 = vmatmul.mubr.msk.bf16.gmra.mrb[4].mxu0 %vm509_vm0, %v1028_v19  ;;  %877 = vmatmul.mubr.msk.bf16.gmra.mrb[4].mxu1 %vm509_vm0, %v1028_v19 }
  0x94   :  { %v102_v20 = vpop.permute.xlu0 %101  ;;  %v112_v47 = vpop.permute.xlu1 %111 }
  0x98   :  { %v107_v21 = vpop.permute.xlu0 %106  ;;  %v117_v3 = vpop.permute.xlu1 %116 }
 0x125   :  { %v603_v22 = vpop.f32.mrb[0].mxu0  ;;  %v709_v23 = vpop.f32.mrb[0].mxu1 }
 0x126   :  { %v878_v24 = vadd.f32 %v603_v22, %v102_v20  ;;  %v886_v25 = vadd.f32 %v709_v23, %v102_v20  ;;  %v605_v26 = vpop.f32.mrb[1].mxu0  ;;  %v711_v27 = vpop.f32.mrb[1].mxu1 }
 0x127   :  { %v879_v28 = vadd.f32 %v605_v26, %v102_v20  ;;  %v887_v29 = vadd.f32 %v711_v27, %v102_v20  ;;  %v607_v30 = vpop.f32.mrb[2].mxu0  ;;  %v713_v31 = vpop.f32.mrb[2].mxu1 }
 0x128   :  { %vm728_vm1 = vcmp.ge.f32.partialorder %v878_v24, 0.0  ;;  %v744_v1 = vmul.f32 0.1, %v878_v24  ;;  %vm730_vm2 = vcmp.ge.f32.partialorder %v886_v25, 0.0  ;;  %v746_v32 = vmul.f32 0.1, %v886_v25 }
 0x129   :  { %vm729_vm3 = vcmp.ge.f32.partialorder %v879_v28, 0.0  ;;  %v745_v33 = vmul.f32 0.1, %v879_v28  ;;  %vm731_vm4 = vcmp.ge.f32.partialorder %v887_v29, 0.0  ;;  %v747_v34 = vmul.f32 0.1, %v887_v29 }
 0x12a   :  { %v760_v35 = vsel %vm728_vm1, %v878_v24, %v744_v1  ;;  %v762_v36 = vsel %vm730_vm2, %v886_v25, %v746_v32  ;;  %v880_v37 = vadd.f32 %v607_v30, %v107_v21  ;;  %v888_v38 = vadd.f32 %v713_v31, %v107_v21  ;;  %v609_v39 = vpop.f32.mrb[3].mxu0  ;;  %v715_v40 = vpop.f32.mrb[3].mxu1 }
 0x12b   :  { %776 = vst [vmem:[%s1353_s3] sm:$0xff] %v760_v35  ;;  %778 = vst [vmem:[%s1353_s3 + $0x10] sm:$0xff] %v762_v36  ;;  %v761_v41 = vsel %vm729_vm3, %v879_v28, %v745_v33  ;;  %v763_v42 = vsel %vm731_vm4, %v887_v29, %v747_v34  ;;  %v881_v43 = vadd.f32 %v609_v39, %v107_v21 }
 0x12c   :  { %v889_v44 = vadd.f32 %v715_v40, %v107_v21  ;;  %777 = vst [vmem:[%s1353_s3 + $0x8] sm:$0xff] %v761_v41  ;;  %779 = vst [vmem:[%s1353_s3 + $0x18] sm:$0xff] %v763_v42  ;;  %vm732_vm5 = vcmp.ge.f32.partialorder %v880_v37, 0.0  ;;  %v748_v45 = vmul.f32 0.1, %v880_v37  ;;  %vm734_vm6 = vcmp.ge.f32.partialorder %v888_v38, 0.0 }
 0x12d   :  { %v750_v46 = vmul.f32 0.1, %v888_v38  ;;  %vm733_vm7 = vcmp.ge.f32.partialorder %v881_v43, 0.0  ;;  %v749_v48 = vmul.f32 0.1, %v881_v43  ;;  %v613_v52 = vpop.f32.mrb[4].mxu0 }
 0x12e   :  { %vm735_vm8 = vcmp.ge.f32.partialorder %v889_v44, 0.0  ;;  %v751_v49 = vmul.f32 0.1, %v889_v44  ;;  %v764_v50 = vsel %vm732_vm5, %v880_v37, %v748_v45  ;;  %v719_v53 = vpop.f32.mrb[4].mxu1  ;;  %v882_v56 = vadd.f32 %v613_v52, %v112_v47  ;;  %v615_v58 = vpop.f32.mrb[5].mxu0 }
 0x12f   :  { %v766_v51 = vsel %vm734_vm6, %v888_v38, %v750_v46  ;;  %780 = vst [vmem:[%s1353_s3 + $0x20] sm:$0xff] %v764_v50  ;;  %v765_v54 = vsel %vm733_vm7, %v881_v43, %v749_v48  ;;  %v890_v57 = vadd.f32 %v719_v53, %v112_v47  ;;  %v721_v59 = vpop.f32.mrb[5].mxu1  ;;  %v883_v60 = vadd.f32 %v615_v58, %v112_v47  ;;  %v617_v62 = vpop.f32.mrb[6].mxu0 }
 0x130   :  { %782 = vst [vmem:[%s1353_s3 + $0x30] sm:$0xff] %v766_v51  ;;  %v767_v55 = vsel %vm735_vm8, %v889_v44, %v751_v49  ;;  %781 = vst [vmem:[%s1353_s3 + $0x28] sm:$0xff] %v765_v54  ;;  %v891_v61 = vadd.f32 %v721_v59, %v112_v47  ;;  %v723_v63 = vpop.f32.mrb[6].mxu1  ;;  %vm736_vm9 = vcmp.ge.f32.partialorder %v882_v56, 0.0  ;;  %v752_v0 = vmul.f32 0.1, %v882_v56 }
 0x131   :  { %783 = vst [vmem:[%s1353_s3 + $0x38] sm:$0xff] %v767_v55  ;;  %vm738_vm10 = vcmp.ge.f32.partialorder %v890_v57, 0.0  ;;  %v754_v2 = vmul.f32 0.1, %v890_v57  ;;  %vm737_vm11 = vcmp.ge.f32.partialorder %v883_v60, 0.0  ;;  %v884_v8 = vadd.f32 %v617_v62, %v117_v3  ;;  %v619_v10 = vpop.f32.mrb[7].mxu0 }
 0x132   :  { %v753_v4 = vmul.f32 0.1, %v883_v60  ;;  %vm739_vm12 = vcmp.ge.f32.partialorder %v891_v61, 0.0  ;;  %v755_v5 = vmul.f32 0.1, %v891_v61  ;;  %v768_v6 = vsel %vm736_vm9, %v882_v56, %v752_v0  ;;  %v725_v11 = vpop.f32.mrb[7].mxu1 }
 0x133   :  { %v770_v7 = vsel %vm738_vm10, %v890_v57, %v754_v2  ;;  %v892_v9 = vadd.f32 %v723_v63, %v117_v3  ;;  %784 = vst [vmem:[%s1353_s3 + $0x40] sm:$0xff] %v768_v6  ;;  %v885_v14 = vadd.f32 %v619_v10, %v117_v3  ;;  %v893_v15 = vadd.f32 %v725_v11, %v117_v3 }
 0x134   :  { %786 = vst [vmem:[%s1353_s3 + $0x50] sm:$0xff] %v770_v7  ;;  %v769_v12 = vsel %vm737_vm11, %v883_v60, %v753_v4  ;;  %v771_v13 = vsel %vm739_vm12, %v891_v61, %v755_v5  ;;  %vm740_vm13 = vcmp.ge.f32.partialorder %v884_v8, 0.0  ;;  %v756_v16 = vmul.f32 0.1, %v884_v8 }
 0x135   :  { %785 = vst [vmem:[%s1353_s3 + $0x48] sm:$0xff] %v769_v12  ;;  %787 = vst [vmem:[%s1353_s3 + $0x58] sm:$0xff] %v771_v13  ;;  %vm742_vm14 = vcmp.ge.f32.partialorder %v892_v9, 0.0  ;;  %v758_v17 = vmul.f32 0.1, %v892_v9  ;;  %vm741_vm15 = vcmp.ge.f32.partialorder %v885_v14, 0.0 }
 0x136   :  { %v757_v18 = vmul.f32 0.1, %v885_v14  ;;  %vm743_vm0 = vcmp.ge.f32.partialorder %v893_v15, 0.0  ;;  %v759_v19 = vmul.f32 0.1, %v893_v15  ;;  %v772_v20 = vsel %vm740_vm13, %v884_v8, %v756_v16 }
 0x137   :  { %v774_v21 = vsel %vm742_vm14, %v892_v9, %v758_v17  ;;  %788 = vst [vmem:[%s1353_s3 + $0x60] sm:$0xff] %v772_v20 }
 0x138   :  { %790 = vst [vmem:[%s1353_s3 + $0x70] sm:$0xff] %v774_v21  ;;  %v773_v22 = vsel %vm741_vm15, %v885_v14, %v757_v18  ;;  %v775_v23 = vsel %vm743_vm0, %v893_v15, %v759_v19 }
 0x139   :  { %789 = vst [vmem:[%s1353_s3 + $0x68] sm:$0xff] %v773_v22  ;;  %791 = vst [vmem:[%s1353_s3 + $0x78] sm:$0xff] %v775_v23 }

// kernel: resnet_encoder_forward.19
= control target key start
LH: loop header
LB: loop body
LE: loop exit
PB: predicated region body
PF: predicated region fallthrough
CT: control target
= control target key end

     0   :  { %v1205_v1 = vmov 0   ;;  %vm163_vm0 = vcmask 261120   ;;  %s1578_s4 = inlined_call_operand.vmem [shape: bf16[32,512], index: 4, kind: input, shape index: {}]   ;;  %s1579_s1 = inlined_call_operand.vmem [shape: bf16[288,512], index: 1, kind: input, shape index: {}]   ;;  %s1580_s3 = inlined_call_operand.vmem [shape: bf16[32,32], index: 3, kind: input, shape index: {}]   ;;  %s1581_s0 = inlined_call_operand.vmem [shape: bf16[32,288], index: 0, kind: input, shape index: {}]   ;;  %s1582_s2 = inlined_call_operand.vmem [shape: f32[32,1], index: 2, kind: input, shape index: {}]   ;;  %s1583_s5 = inlined_call_operand.vmem [shape: f32[32,512], index: 5, kind: output, shape index: {}]  }
   0x1   :  { %v1075_v0 = vld [vmem:[%s1578_s4 + $0x4] ss:$16 sps:$4 sm:$0xff]   ;;  %202 = vmatprep.mubr.bf16.mxu0 %v1205_v1  ;;  %255 = vmatprep.mubr.bf16.mxu1 %v1205_v1  ;;  %v1077_v2 = vld [vmem:[%s1578_s4 + $0xc] ss:$16 sps:$4 sm:$0xff]   ;;  %v1079_v3 = vld [vmem:[%s1578_s4] ss:$16 sps:$4 sm:$0xff]  }
   0x2   :  { %1073 = vset.pattern.permute.xlu0 %v1205_v1  ;;  %1074 = vset.pattern.permute.xlu1 %v1205_v1  ;;  %v1080_v4 = vld [vmem:[%s1578_s4 + $0x8] ss:$16 sps:$4 sm:$0xff]   ;;  %v1081_v5 = vld [vmem:[%s1578_s4 + $0x24] ss:$16 sps:$4 sm:$0xff]   ;;  %v1083_v6 = vld [vmem:[%s1578_s4 + $0x2c] ss:$16 sps:$4 sm:$0xff]  }
   0x3   :  { %170 = vmatprep.subr.bf16.mxu0 %v1075_v0  ;;  %223 = vmatprep.subr.bf16.mxu1 %v1077_v2  ;;  %v1085_v7 = vld [vmem:[%s1578_s4 + $0x20] ss:$16 sps:$4 sm:$0xff]   ;;  %v1086_v8 = vld [vmem:[%s1578_s4 + $0x28] ss:$16 sps:$4 sm:$0xff]   ;;  %v1089_v10 = vld [vmem:[%s1579_s1 + $0x4] ss:$16 sps:$4 sm:$0xff]  }
   0x4   :  { %171 = vmatpush1.bf16.msra.mxu0 %v1079_v3  ;;  %224 = vmatpush1.bf16.msra.mxu1 %v1080_v4  ;;  %v1087_v9 = vld [vmem:[%s1579_s1] ss:$16 sps:$4 sm:$0xff]   ;;  %v1090_v11 = vld [vmem:[%s1579_s1 + $0x8] ss:$16 sps:$4 sm:$0xff]   ;;  %v1092_v12 = vld [vmem:[%s1579_s1 + $0xc] ss:$16 sps:$4 sm:$0xff]  }
   0x5   :  { %172 = vmatprep.subr.bf16.mxu0 %v1081_v5  ;;  %225 = vmatprep.subr.bf16.mxu1 %v1083_v6  ;;  %v1093_v13 = vld [vmem:[%s1580_s3] sm:$0xff]   ;;  %v1099_v15 = vld [vmem:[%s1579_s1 + $0x2c] ss:$16 sps:$4 sm:$0xff]   ;;  %v1097_v17 = vld [vmem:[%s1579_s1 + $0x28] ss:$16 sps:$4 sm:$0xff]  }
   0x6   :  { %v1096_v14 = vld [vmem:[%s1579_s1 + $0x24] ss:$16 sps:$4 sm:$0xff]   ;;  %v1094_v16 = vld [vmem:[%s1579_s1 + $0x20] ss:$16 sps:$4 sm:$0xff]   ;;  %v1105_v19 = vld [vmem:[%s1579_s1 + $0x4c] ss:$16 sps:$4 sm:$0xff]  }
   0x7   :  { %v1102_v18 = vld [vmem:[%s1579_s1 + $0x44] ss:$16 sps:$4 sm:$0xff]   ;;  %v1100_v20 = vld [vmem:[%s1579_s1 + $0x40] ss:$16 sps:$4 sm:$0xff]   ;;  %v1103_v21 = vld [vmem:[%s1579_s1 + $0x48] ss:$16 sps:$4 sm:$0xff]  }
   0x8   :  { %173 = vmatpush1.bf16.msra.mxu0 %v1085_v7  ;;  %226 = vmatpush1.bf16.msra.mxu1 %v1086_v8  ;;  %v1108_v22 = vld [vmem:[%s1579_s1 + $0x64] ss:$16 sps:$4 sm:$0xff]   ;;  %v1111_v23 = vld [vmem:[%s1579_s1 + $0x6c] ss:$16 sps:$4 sm:$0xff]   ;;  %v1106_v24 = vld [vmem:[%s1579_s1 + $0x60] ss:$16 sps:$4 sm:$0xff]  }
   0x9   :  { %672 = vmatprep.subr.bf16.mxu0 %v1089_v10  ;;  %778 = vmatprep.subr.bf16.mxu1 %v1092_v12  ;;  %v1109_v25 = vld [vmem:[%s1579_s1 + $0x68] ss:$16 sps:$4 sm:$0xff]   ;;  %v1114_v26 = vld [vmem:[%s1579_s1 + $0x84] ss:$16 sps:$4 sm:$0xff]   ;;  %v1117_v27 = vld [vmem:[%s1579_s1 + $0x8c] ss:$16 sps:$4 sm:$0xff]  }
   0xa   :  { %v1112_v28 = vld [vmem:[%s1579_s1 + $0x80] ss:$16 sps:$4 sm:$0xff]   ;;  %v1115_v29 = vld [vmem:[%s1579_s1 + $0x88] ss:$16 sps:$4 sm:$0xff]   ;;  %v1120_v30 = vld [vmem:[%s1579_s1 + $0xa4] ss:$16 sps:$4 sm:$0xff]  }
   0xb   :  { %954 = vmatmul.mubr.msk.bf16.vlgmr.msra.gmra.mrb[0].mxu0 %vm163_vm0, %v1093_v13  ;;  %956 = vmatmul.mubr.msk.bf16.vlgmr.msra.gmra.mrb[0].mxu1 %vm163_vm0, %v1093_v13  ;;  %v1123_v31 = vld [vmem:[%s1579_s1 + $0xac] ss:$16 sps:$4 sm:$0xff]   ;;  %v1118_v32 = vld [vmem:[%s1579_s1 + $0xa0] ss:$16 sps:$4 sm:$0xff]   ;;  %v1121_v33 = vld [vmem:[%s1579_s1 + $0xa8] ss:$16 sps:$4 sm:$0xff]  }
   0xc   :  { %673 = vmatpush1.bf16.msra.mxu0 %v1087_v9  ;;  %779 = vmatpush1.bf16.msra.mxu1 %v1090_v11  ;;  %v1126_v34 = vld [vmem:[%s1579_s1 + $0xc4] ss:$16 sps:$4 sm:$0xff]   ;;  %v1129_v35 = vld [vmem:[%s1579_s1 + $0xcc] ss:$16 sps:$4 sm:$0xff]   ;;  %v1124_v36 = vld [vmem:[%s1579_s1 + $0xc0] ss:$16 sps:$4 sm:$0xff]  }
   0xd   :  { %674 = vmatprep.subr.bf16.mxu0 %v1096_v14  ;;  %780 = vmatprep.subr.bf16.mxu1 %v1099_v15  ;;  %v1127_v37 = vld [vmem:[%s1579_s1 + $0xc8] ss:$16 sps:$4 sm:$0xff]   ;;  %v1132_v38 = vld [vmem:[%s1579_s1 + $0xe4] ss:$16 sps:$4 sm:$0xff]   ;;  %v1135_v39 = vld [vmem:[%s1579_s1 + $0xec] ss:$16 sps:$4 sm:$0xff]  }
   0xe   :  { %212 = vmatprep.mubr.bf16.mxu0 %v1205_v1  ;;  %265 = vmatprep.mubr.bf16.mxu1 %v1205_v1  ;;  %v1130_v40 = vld [vmem:[%s1579_s1 + $0xe0] ss:$16 sps:$4 sm:$0xff]   ;;  %v1133_v41 = vld [vmem:[%s1579_s1 + $0xe8] ss:$16 sps:$4 sm:$0xff]   ;;  %v1138_v42 = vld [vmem:[%s1579_s1 + $0x104] ss:$16 sps:$4 sm:$0xff]  }
   0xf   :  { %v1141_v43 = vld [vmem:[%s1579_s1 + $0x10c] ss:$16 sps:$4 sm:$0xff]   ;;  %v1136_v44 = vld [vmem:[%s1579_s1 + $0x100] ss:$16 sps:$4 sm:$0xff]   ;;  %v1139_v45 = vld [vmem:[%s1579_s1 + $0x108] ss:$16 sps:$4 sm:$0xff]  }
  0x10   :  { %675 = vmatpush1.bf16.msra.mxu0 %v1094_v16  ;;  %781 = vmatpush1.bf16.msra.mxu1 %v1097_v17  ;;  %v1144_v46 = vld [vmem:[%s1579_s1 + $0x124] ss:$16 sps:$4 sm:$0xff]   ;;  %v1147_v47 = vld [vmem:[%s1579_s1 + $0x12c] ss:$16 sps:$4 sm:$0xff]   ;;  %v1142_v48 = vld [vmem:[%s1579_s1 + $0x120] ss:$16 sps:$4 sm:$0xff]  }
  0x11   :  { %676 = vmatprep.subr.bf16.mxu0 %v1102_v18  ;;  %782 = vmatprep.subr.bf16.mxu1 %v1105_v19  ;;  %v1145_v49 = vld [vmem:[%s1579_s1 + $0x128] ss:$16 sps:$4 sm:$0xff]   ;;  %v1150_v51 = vld [vmem:[%s1579_s1 + $0x144] ss:$16 sps:$4 sm:$0xff]   ;;  %v1153_v52 = vld [vmem:[%s1579_s1 + $0x14c] ss:$16 sps:$4 sm:$0xff]  }
  0x12   :  { %v1172_v50 = vld [vmem:[%s1580_s3 + $0x8] sm:$0xff]   ;;  %v1148_v53 = vld [vmem:[%s1579_s1 + $0x140] ss:$16 sps:$4 sm:$0xff]   ;;  %v1156_v55 = vld [vmem:[%s1579_s1 + $0x164] ss:$16 sps:$4 sm:$0xff]  }
  0x13   :  { %955 = vmatmul.mubr.msk.bf16.gmra.mrb[4].mxu0 %vm163_vm0, %v1172_v50  ;;  %957 = vmatmul.mubr.msk.bf16.gmra.mrb[4].mxu1 %vm163_vm0, %v1172_v50  ;;  %v1151_v54 = vld [vmem:[%s1579_s1 + $0x148] ss:$16 sps:$4 sm:$0xff]   ;;  %v1159_v56 = vld [vmem:[%s1579_s1 + $0x16c] ss:$16 sps:$4 sm:$0xff]   ;;  %v1187_v57 = vld [vmem:[%s1581_s0 + $0x4] ss:$12 sps:$4 sm:$0xff]  }
  0x14   :  { %677 = vmatpush1.bf16.msra.mxu0 %v1100_v20  ;;  %783 = vmatpush1.bf16.msra.mxu1 %v1103_v21  ;;  %v1154_v58 = vld [vmem:[%s1579_s1 + $0x160] ss:$16 sps:$4 sm:$0xff]   ;;  %v1157_v59 = vld [vmem:[%s1579_s1 + $0x168] ss:$16 sps:$4 sm:$0xff]   ;;  %v1162_v60 = vld [vmem:[%s1579_s1 + $0x184] ss:$16 sps:$4 sm:$0xff]  }
  0x15   :  { %678 = vmatprep.subr.bf16.mxu0 %v1108_v22  ;;  %784 = vmatprep.subr.bf16.mxu1 %v1111_v23  ;;  %v1165_v61 = vld [vmem:[%s1579_s1 + $0x18c] ss:$16 sps:$4 sm:$0xff]   ;;  %v1160_v62 = vld [vmem:[%s1579_s1 + $0x180] ss:$16 sps:$4 sm:$0xff]   ;;  %v1163_v63 = vld [vmem:[%s1579_s1 + $0x188] ss:$16 sps:$4 sm:$0xff]  }
  0x16   :  { %704 = vmatprep.mubr.bf16.mxu0 %v1187_v57  ;;  %810 = vmatprep.mubr.bf16.mxu1 %v1187_v57  ;;  %v1168_v0 = vld [vmem:[%s1579_s1 + $0x1a4] ss:$16 sps:$4 sm:$0xff]   ;;  %v1171_v2 = vld [vmem:[%s1579_s1 + $0x1ac] ss:$16 sps:$4 sm:$0xff]   ;;  %v1166_v3 = vld [vmem:[%s1579_s1 + $0x1a0] ss:$16 sps:$4 sm:$0xff]  }
  0x17   :  { %v1169_v4 = vld [vmem:[%s1579_s1 + $0x1a8] ss:$16 sps:$4 sm:$0xff]   ;;  %v884_v5 = vld [vmem:[%s1582_s2] sm:$0xff]  ;;  %v886_v6 = vld [vmem:[%s1582_s2 + $0x10] sm:$0xff] }
  0x18   :  { %679 = vmatpush1.bf16.msra.mxu0 %v1106_v24  ;;  %785 = vmatpush1.bf16.msra.mxu1 %v1109_v25  ;;  %v1175_v7 = vld [vmem:[%s1579_s1 + $0x1c4] ss:$16 sps:$4 sm:$0xff]   ;;  %v1178_v8 = vld [vmem:[%s1579_s1 + $0x1cc] ss:$16 sps:$4 sm:$0xff]   ;;  %v1173_v11 = vld [vmem:[%s1579_s1 + $0x1c0] ss:$16 sps:$4 sm:$0xff]  }
  0x19   :  { %680 = vmatprep.subr.bf16.mxu0 %v1114_v26  ;;  %786 = vmatprep.subr.bf16.mxu1 %v1117_v27  ;;  %v885_v9 = vld [vmem:[%s1582_s2 + $0x8] sm:$0xff]  ;;  %v887_v10 = vld [vmem:[%s1582_s2 + $0x18] sm:$0xff]  ;;  %v1181_v13 = vld [vmem:[%s1579_s1 + $0x1e4] ss:$16 sps:$4 sm:$0xff]  }
  0x1a   :  { %890 = vperm.xlu0 %1073, %v884_v5   ;;  %900 = vperm.xlu1 %1074, %v886_v6   ;;  %v1176_v12 = vld [vmem:[%s1579_s1 + $0x1c8] ss:$16 sps:$4 sm:$0xff]   ;;  %v1184_v14 = vld [vmem:[%s1579_s1 + $0x1ec] ss:$16 sps:$4 sm:$0xff]   ;;  %v1179_v15 = vld [vmem:[%s1579_s1 + $0x1e0] ss:$16 sps:$4 sm:$0xff]  }
  0x1b   :  { %v1182_v16 = vld [vmem:[%s1579_s1 + $0x1e8] ss:$16 sps:$4 sm:$0xff]   ;;  %v1190_v17 = vld [vmem:[%s1579_s1 + $0x204] ss:$16 sps:$4 sm:$0xff]   ;;  %v1193_v18 = vld [vmem:[%s1579_s1 + $0x20c] ss:$16 sps:$4 sm:$0xff]  }
  0x1c   :  { %681 = vmatpush1.bf16.msra.mxu0 %v1112_v28  ;;  %787 = vmatpush1.bf16.msra.mxu1 %v1115_v29  ;;  %v1185_v19 = vld [vmem:[%s1581_s0] ss:$12 sps:$4 sm:$0xff]   ;;  %v1191_v21 = vld [vmem:[%s1579_s1 + $0x208] ss:$16 sps:$4 sm:$0xff]   ;;  %v1199_v23 = vld [vmem:[%s1579_s1 + $0x224] ss:$16 sps:$4 sm:$0xff]  }
  0x1d   :  { %682 = vmatprep.subr.bf16.mxu0 %v1120_v30  ;;  %788 = vmatprep.subr.bf16.mxu1 %v1123_v31  ;;  %v1188_v20 = vld [vmem:[%s1579_s1 + $0x200] ss:$16 sps:$4 sm:$0xff]   ;;  %v1194_v22 = vld [vmem:[%s1581_s0 + $0x1c] ss:$12 sps:$4 sm:$0xff]   ;;  %v1196_v27 = vld [vmem:[%s1581_s0 + $0x18] ss:$12 sps:$4 sm:$0xff]  }
  0x1e   :  { %895 = vperm.xlu0 %1073, %v885_v9   ;;  %905 = vperm.xlu1 %1074, %v887_v10   ;;  %v1202_v24 = vld [vmem:[%s1579_s1 + $0x22c] ss:$16 sps:$4 sm:$0xff]   ;;  %v1197_v25 = vld [vmem:[%s1579_s1 + $0x220] ss:$16 sps:$4 sm:$0xff]   ;;  %v1200_v26 = vld [vmem:[%s1579_s1 + $0x228] ss:$16 sps:$4 sm:$0xff]  }
  0x1f   :  { %v1203_v28 = vld [vmem:[%s1581_s0 + $0x8] ss:$12 sps:$4 sm:$0xff]   ;;  %v1204_v29 = vld [vmem:[%s1581_s0 + $0x20] ss:$12 sps:$4 sm:$0xff]  }
  0x20   :  { %683 = vmatpush1.bf16.msra.mxu0 %v1118_v32  ;;  %789 = vmatpush1.bf16.msra.mxu1 %v1121_v33 }
  0x21   :  { %684 = vmatprep.subr.bf16.mxu0 %v1126_v34  ;;  %790 = vmatprep.subr.bf16.mxu1 %v1129_v35 }
  0x24   :  { %685 = vmatpush1.bf16.msra.mxu0 %v1124_v36  ;;  %791 = vmatpush1.bf16.msra.mxu1 %v1127_v37 }
  0x25   :  { %686 = vmatprep.subr.bf16.mxu0 %v1132_v38  ;;  %792 = vmatprep.subr.bf16.mxu1 %v1135_v39 }
  0x28   :  { %687 = vmatpush1.bf16.msra.mxu0 %v1130_v40  ;;  %793 = vmatpush1.bf16.msra.mxu1 %v1133_v41 }
  0x29   :  { %688 = vmatprep.subr.bf16.mxu0 %v1138_v42  ;;  %794 = vmatprep.subr.bf16.mxu1 %v1141_v43 }
  0x2c   :  { %689 = vmatpush1.bf16.msra.mxu0 %v1136_v44  ;;  %795 = vmatpush1.bf16.msra.mxu1 %v1139_v45 }
  0x2d   :  { %690 = vmatprep.subr.bf16.mxu0 %v1144_v46  ;;  %796 = vmatprep.subr.bf16.mxu1 %v1147_v47 }
  0x30   :  { %691 = vmatpush1.bf16.msra.mxu0 %v1142_v48  ;;  %797 = vmatpush1.bf16.msra.mxu1 %v1145_v49 }
  0x31   :  { %692 = vmatprep.subr.bf16.mxu0 %v1150_v51  ;;  %798 = vmatprep.subr.bf16.mxu1 %v1153_v52 }
  0x34   :  { %693 = vmatpush1.bf16.msra.mxu0 %v1148_v53  ;;  %799 = vmatpush1.bf16.msra.mxu1 %v1151_v54 }
  0x35   :  { %694 = vmatprep.subr.bf16.mxu0 %v1156_v55  ;;  %800 = vmatprep.subr.bf16.mxu1 %v1159_v56 }
  0x38   :  { %695 = vmatpush1.bf16.msra.mxu0 %v1154_v58  ;;  %801 = vmatpush1.bf16.msra.mxu1 %v1157_v59 }
  0x39   :  { %696 = vmatprep.subr.bf16.mxu0 %v1162_v60  ;;  %802 = vmatprep.subr.bf16.mxu1 %v1165_v61 }
  0x3c   :  { %697 = vmatpush1.bf16.msra.mxu0 %v1160_v62  ;;  %803 = vmatpush1.bf16.msra.mxu1 %v1163_v63 }
  0x3d   :  { %698 = vmatprep.subr.bf16.mxu0 %v1168_v0  ;;  %804 = vmatprep.subr.bf16.mxu1 %v1171_v2 }
  0x40   :  { %699 = vmatpush1.bf16.msra.mxu0 %v1166_v3  ;;  %805 = vmatpush1.bf16.msra.mxu1 %v1169_v4 }
  0x41   :  { %700 = vmatprep.subr.bf16.mxu0 %v1175_v7  ;;  %806 = vmatprep.subr.bf16.mxu1 %v1178_v8 }
  0x44   :  { %701 = vmatpush1.bf16.msra.mxu0 %v1173_v11  ;;  %807 = vmatpush1.bf16.msra.mxu1 %v1176_v12 }
  0x45   :  { %702 = vmatprep.subr.bf16.mxu0 %v1181_v13  ;;  %808 = vmatprep.subr.bf16.mxu1 %v1184_v14 }
  0x48   :  { %703 = vmatpush1.bf16.msra.mxu0 %v1179_v15  ;;  %809 = vmatpush1.bf16.msra.mxu1 %v1182_v16 }
  0x49   :  { %725 = vmatprep.subr.bf16.mxu0 %v1190_v17  ;;  %831 = vmatprep.subr.bf16.mxu1 %v1193_v18 }
  0x4b   :  { %705 = vmatmul.mubr.bf16.vlgmr.msra.gmra.mrb[0].mxu0 %v1185_v19  ;;  %811 = vmatmul.mubr.bf16.vlgmr.msra.gmra.mrb[0].mxu1 %v1185_v19 }
  0x4c   :  { %726 = vmatpush1.bf16.msra.mxu0 %v1188_v20  ;;  %832 = vmatpush1.bf16.msra.mxu1 %v1191_v21 }
  0x4d   :  { %714 = vmatprep.mubr.bf16.mxu0 %v1194_v22  ;;  %820 = vmatprep.mubr.bf16.mxu1 %v1194_v22 }
  0x4e   :  { %727 = vmatprep.subr.bf16.mxu0 %v1199_v23  ;;  %833 = vmatprep.subr.bf16.mxu1 %v1202_v24 }
  0x50   :  { %728 = vmatpush1.bf16.msra.mxu0 %v1197_v25  ;;  %834 = vmatpush1.bf16.msra.mxu1 %v1200_v26 }
  0x53   :  { %715 = vmatmul.mubr.bf16.gmra.mrb[4].mxu0 %v1196_v27  ;;  %821 = vmatmul.mubr.bf16.gmra.mrb[4].mxu1 %v1196_v27 }
  0x54   :  { %757 = vmatprep.mubr.bf16.mxu0 %v1205_v1  ;;  %863 = vmatprep.mubr.bf16.mxu1 %v1205_v1 }
  0x5b   :  { %1036 = vmatmul.mubr.msk.bf16.vlgmr.msra.gmra.mrb[0].mxu0 %vm163_vm0, %v1203_v28  ;;  %1038 = vmatmul.mubr.msk.bf16.vlgmr.msra.gmra.mrb[0].mxu1 %vm163_vm0, %v1203_v28 }
  0x5c   :  { %767 = vmatprep.mubr.bf16.mxu0 %v1205_v1  ;;  %873 = vmatprep.mubr.bf16.mxu1 %v1205_v1 }
  0x63   :  { %1037 = vmatmul.mubr.msk.bf16.gmra.mrb[4].mxu0 %vm163_vm0, %v1204_v29  ;;  %1039 = vmatmul.mubr.msk.bf16.gmra.mrb[4].mxu1 %vm163_vm0, %v1204_v29 }
  0x99   :  { %v891_v30 = vpop.permute.xlu0 %890  ;;  %v901_v32 = vpop.permute.xlu1 %900 }
  0x9d   :  { %v896_v31 = vpop.permute.xlu0 %895  ;;  %v906_v48 = vpop.permute.xlu1 %905 }
 0x12e   :  { %v759_v33 = vpop.f32.mrb[0].mxu0  ;;  %v865_v34 = vpop.f32.mrb[0].mxu1 }
 0x12f   :  { %v908_v35 = vadd.f32 %v891_v30, %v759_v33  ;;  %v910_v36 = vadd.f32 %v891_v30, %v865_v34  ;;  %v761_v37 = vpop.f32.mrb[1].mxu0  ;;  %v867_v38 = vpop.f32.mrb[1].mxu1 }
 0x130   :  { %v909_v39 = vadd.f32 %v891_v30, %v761_v37  ;;  %v911_v40 = vadd.f32 %v891_v30, %v867_v38  ;;  %v763_v1 = vpop.f32.mrb[2].mxu0  ;;  %v869_v41 = vpop.f32.mrb[2].mxu1 }
 0x131   :  { %924 = vst [vmem:[%s1583_s5] sm:$0xff] %v908_v35  ;;  %926 = vst [vmem:[%s1583_s5 + $0x10] sm:$0xff] %v910_v36  ;;  %v912_v42 = vadd.f32 %v896_v31, %v763_v1  ;;  %v914_v43 = vadd.f32 %v896_v31, %v869_v41  ;;  %v765_v44 = vpop.f32.mrb[3].mxu0  ;;  %v871_v45 = vpop.f32.mrb[3].mxu1 }
 0x132   :  { %925 = vst [vmem:[%s1583_s5 + $0x8] sm:$0xff] %v909_v39  ;;  %927 = vst [vmem:[%s1583_s5 + $0x18] sm:$0xff] %v911_v40  ;;  %v913_v46 = vadd.f32 %v896_v31, %v765_v44  ;;  %v915_v47 = vadd.f32 %v896_v31, %v871_v45 }
 0x133   :  { %928 = vst [vmem:[%s1583_s5 + $0x20] sm:$0xff] %v912_v42  ;;  %930 = vst [vmem:[%s1583_s5 + $0x30] sm:$0xff] %v914_v43 }
 0x134   :  { %929 = vst [vmem:[%s1583_s5 + $0x28] sm:$0xff] %v913_v46  ;;  %931 = vst [vmem:[%s1583_s5 + $0x38] sm:$0xff] %v915_v47 }
 0x136   :  { %v769_v49 = vpop.f32.mrb[4].mxu0  ;;  %v875_v50 = vpop.f32.mrb[4].mxu1 }
 0x137   :  { %v916_v51 = vadd.f32 %v901_v32, %v769_v49  ;;  %v918_v52 = vadd.f32 %v901_v32, %v875_v50  ;;  %v771_v53 = vpop.f32.mrb[5].mxu0  ;;  %v877_v54 = vpop.f32.mrb[5].mxu1 }
 0x138   :  { %v917_v55 = vadd.f32 %v901_v32, %v771_v53  ;;  %v919_v56 = vadd.f32 %v901_v32, %v877_v54  ;;  %v773_v57 = vpop.f32.mrb[6].mxu0  ;;  %v879_v58 = vpop.f32.mrb[6].mxu1 }
 0x139   :  { %932 = vst [vmem:[%s1583_s5 + $0x40] sm:$0xff] %v916_v51  ;;  %934 = vst [vmem:[%s1583_s5 + $0x50] sm:$0xff] %v918_v52  ;;  %v920_v59 = vadd.f32 %v906_v48, %v773_v57  ;;  %v922_v60 = vadd.f32 %v906_v48, %v879_v58  ;;  %v775_v61 = vpop.f32.mrb[7].mxu0  ;;  %v881_v62 = vpop.f32.mrb[7].mxu1 }
 0x13a   :  { %933 = vst [vmem:[%s1583_s5 + $0x48] sm:$0xff] %v917_v55  ;;  %935 = vst [vmem:[%s1583_s5 + $0x58] sm:$0xff] %v919_v56  ;;  %v921_v63 = vadd.f32 %v906_v48, %v775_v61  ;;  %v923_v0 = vadd.f32 %v906_v48, %v881_v62 }
 0x13b   :  { %936 = vst [vmem:[%s1583_s5 + $0x60] sm:$0xff] %v920_v59  ;;  %938 = vst [vmem:[%s1583_s5 + $0x70] sm:$0xff] %v922_v60 }
 0x13c   :  { %937 = vst [vmem:[%s1583_s5 + $0x68] sm:$0xff] %v921_v63  ;;  %939 = vst [vmem:[%s1583_s5 + $0x78] sm:$0xff] %v923_v0 }

// kernel: resnet_encoder_forward.21
= control target key start
LH: loop header
LB: loop body
LE: loop exit
PB: predicated region body
PF: predicated region fallthrough
CT: control target
= control target key end

     0   :  { %v1016_v1 = vmov 0   ;;  %vm512_vm0 = vcmask 261120   ;;  %s1390_s1 = inlined_call_operand.vmem [shape: bf16[288,512], index: 1, kind: input, shape index: {}]   ;;  %s1391_s0 = inlined_call_operand.vmem [shape: bf16[32,288], index: 0, kind: input, shape index: {}]   ;;  %s1392_s2 = inlined_call_operand.vmem [shape: f32[32,1], index: 2, kind: input, shape index: {}]   ;;  %s1393_s3 = inlined_call_operand.vmem [shape: f32[32,512], index: 3, kind: input, shape index: {}]   ;;  %s1394_s4 = inlined_call_operand.vmem [shape: f32[32,512], index: 4, kind: output, shape index: {}]  }
   0x1   :  { %v900_v0 = vld [vmem:[%s1390_s1 + $0x4] ss:$16 sps:$4 sm:$0xff]   ;;  %898 = vset.pattern.permute.xlu0 %v1016_v1  ;;  %899 = vset.pattern.permute.xlu1 %v1016_v1  ;;  %v902_v2 = vld [vmem:[%s1390_s1 + $0xc] ss:$16 sps:$4 sm:$0xff]   ;;  %v904_v3 = vld [vmem:[%s1390_s1] ss:$16 sps:$4 sm:$0xff]  }
   0x2   :  { %519 = vmatprep.subr.bf16.mxu0 %v900_v0  ;;  %v905_v4 = vld [vmem:[%s1390_s1 + $0x8] ss:$16 sps:$4 sm:$0xff]   ;;  %625 = vmatprep.subr.bf16.mxu1 %v902_v2  ;;  %v906_v5 = vld [vmem:[%s1390_s1 + $0x24] ss:$16 sps:$4 sm:$0xff]   ;;  %v908_v6 = vld [vmem:[%s1390_s1 + $0x2c] ss:$16 sps:$4 sm:$0xff]  }
   0x3   :  { %520 = vmatpush1.bf16.msra.mxu0 %v904_v3  ;;  %626 = vmatpush1.bf16.msra.mxu1 %v905_v4  ;;  %v910_v7 = vld [vmem:[%s1390_s1 + $0x20] ss:$16 sps:$4 sm:$0xff]   ;;  %v911_v8 = vld [vmem:[%s1390_s1 + $0x28] ss:$16 sps:$4 sm:$0xff]   ;;  %v912_v9 = vld [vmem:[%s1390_s1 + $0x44] ss:$16 sps:$4 sm:$0xff]  }
   0x4   :  { %521 = vmatprep.subr.bf16.mxu0 %v906_v5  ;;  %627 = vmatprep.subr.bf16.mxu1 %v908_v6  ;;  %v914_v10 = vld [vmem:[%s1390_s1 + $0x4c] ss:$16 sps:$4 sm:$0xff]   ;;  %v916_v11 = vld [vmem:[%s1390_s1 + $0x40] ss:$16 sps:$4 sm:$0xff]   ;;  %v917_v12 = vld [vmem:[%s1390_s1 + $0x48] ss:$16 sps:$4 sm:$0xff]  }
   0x5   :  { %v918_v13 = vld [vmem:[%s1390_s1 + $0x64] ss:$16 sps:$4 sm:$0xff]   ;;  %v920_v14 = vld [vmem:[%s1390_s1 + $0x6c] ss:$16 sps:$4 sm:$0xff]   ;;  %v922_v15 = vld [vmem:[%s1390_s1 + $0x60] ss:$16 sps:$4 sm:$0xff]  }
   0x6   :  { %v923_v16 = vld [vmem:[%s1390_s1 + $0x68] ss:$16 sps:$4 sm:$0xff]   ;;  %v924_v17 = vld [vmem:[%s1390_s1 + $0x84] ss:$16 sps:$4 sm:$0xff]   ;;  %v926_v18 = vld [vmem:[%s1390_s1 + $0x8c] ss:$16 sps:$4 sm:$0xff]  }
   0x7   :  { %522 = vmatpush1.bf16.msra.mxu0 %v910_v7  ;;  %628 = vmatpush1.bf16.msra.mxu1 %v911_v8  ;;  %v928_v19 = vld [vmem:[%s1390_s1 + $0x80] ss:$16 sps:$4 sm:$0xff]   ;;  %v929_v20 = vld [vmem:[%s1390_s1 + $0x88] ss:$16 sps:$4 sm:$0xff]   ;;  %v930_v21 = vld [vmem:[%s1390_s1 + $0xa4] ss:$16 sps:$4 sm:$0xff]  }
   0x8   :  { %523 = vmatprep.subr.bf16.mxu0 %v912_v9  ;;  %629 = vmatprep.subr.bf16.mxu1 %v914_v10  ;;  %v932_v22 = vld [vmem:[%s1390_s1 + $0xac] ss:$16 sps:$4 sm:$0xff]   ;;  %v934_v23 = vld [vmem:[%s1390_s1 + $0xa0] ss:$16 sps:$4 sm:$0xff]   ;;  %v935_v24 = vld [vmem:[%s1390_s1 + $0xa8] ss:$16 sps:$4 sm:$0xff]  }
   0x9   :  { %v936_v25 = vld [vmem:[%s1390_s1 + $0xc4] ss:$16 sps:$4 sm:$0xff]   ;;  %v938_v26 = vld [vmem:[%s1390_s1 + $0xcc] ss:$16 sps:$4 sm:$0xff]   ;;  %v940_v27 = vld [vmem:[%s1390_s1 + $0xc0] ss:$16 sps:$4 sm:$0xff]  }
   0xa   :  { %v941_v28 = vld [vmem:[%s1390_s1 + $0xc8] ss:$16 sps:$4 sm:$0xff]   ;;  %v942_v29 = vld [vmem:[%s1390_s1 + $0xe4] ss:$16 sps:$4 sm:$0xff]   ;;  %v944_v30 = vld [vmem:[%s1390_s1 + $0xec] ss:$16 sps:$4 sm:$0xff]  }
   0xb   :  { %524 = vmatpush1.bf16.msra.mxu0 %v916_v11  ;;  %630 = vmatpush1.bf16.msra.mxu1 %v917_v12  ;;  %v946_v31 = vld [vmem:[%s1390_s1 + $0xe0] ss:$16 sps:$4 sm:$0xff]   ;;  %v947_v32 = vld [vmem:[%s1390_s1 + $0xe8] ss:$16 sps:$4 sm:$0xff]   ;;  %v948_v33 = vld [vmem:[%s1390_s1 + $0x104] ss:$16 sps:$4 sm:$0xff]  }
   0xc   :  { %525 = vmatprep.subr.bf16.mxu0 %v918_v13  ;;  %631 = vmatprep.subr.bf16.mxu1 %v920_v14  ;;  %v950_v34 = vld [vmem:[%s1390_s1 + $0x10c] ss:$16 sps:$4 sm:$0xff]   ;;  %v952_v35 = vld [vmem:[%s1390_s1 + $0x100] ss:$16 sps:$4 sm:$0xff]   ;;  %v953_v36 = vld [vmem:[%s1390_s1 + $0x108] ss:$16 sps:$4 sm:$0xff]  }
   0xd   :  { %v954_v37 = vld [vmem:[%s1390_s1 + $0x124] ss:$16 sps:$4 sm:$0xff]   ;;  %v956_v38 = vld [vmem:[%s1390_s1 + $0x12c] ss:$16 sps:$4 sm:$0xff]   ;;  %v958_v39 = vld [vmem:[%s1390_s1 + $0x120] ss:$16 sps:$4 sm:$0xff]  }
   0xe   :  { %v959_v40 = vld [vmem:[%s1390_s1 + $0x128] ss:$16 sps:$4 sm:$0xff]   ;;  %v960_v41 = vld [vmem:[%s1390_s1 + $0x144] ss:$16 sps:$4 sm:$0xff]   ;;  %v962_v42 = vld [vmem:[%s1390_s1 + $0x14c] ss:$16 sps:$4 sm:$0xff]  }
   0xf   :  { %526 = vmatpush1.bf16.msra.mxu0 %v922_v15  ;;  %632 = vmatpush1.bf16.msra.mxu1 %v923_v16  ;;  %v964_v43 = vld [vmem:[%s1390_s1 + $0x140] ss:$16 sps:$4 sm:$0xff]   ;;  %v965_v44 = vld [vmem:[%s1390_s1 + $0x148] ss:$16 sps:$4 sm:$0xff]   ;;  %v966_v45 = vld [vmem:[%s1390_s1 + $0x164] ss:$16 sps:$4 sm:$0xff]  }
  0x10   :  { %527 = vmatprep.subr.bf16.mxu0 %v924_v17  ;;  %633 = vmatprep.subr.bf16.mxu1 %v926_v18  ;;  %v968_v46 = vld [vmem:[%s1390_s1 + $0x16c] ss:$16 sps:$4 sm:$0xff]   ;;  %v970_v47 = vld [vmem:[%s1390_s1 + $0x160] ss:$16 sps:$4 sm:$0xff]   ;;  %v971_v48 = vld [vmem:[%s1390_s1 + $0x168] ss:$16 sps:$4 sm:$0xff]  }
  0x11   :  { %v998_v49 = vld [vmem:[%s1391_s0 + $0x4] ss:$12 sps:$4 sm:$0xff]   ;;  %v974_v51 = vld [vmem:[%s1390_s1 + $0x18c] ss:$16 sps:$4 sm:$0xff]   ;;  %v977_v53 = vld [vmem:[%s1390_s1 + $0x188] ss:$16 sps:$4 sm:$0xff]  }
  0x12   :  { %v972_v50 = vld [vmem:[%s1390_s1 + $0x184] ss:$16 sps:$4 sm:$0xff]   ;;  %551 = vmatprep.mubr.bf16.mxu0 %v998_v49  ;;  %657 = vmatprep.mubr.bf16.mxu1 %v998_v49  ;;  %v976_v52 = vld [vmem:[%s1390_s1 + $0x180] ss:$16 sps:$4 sm:$0xff]   ;;  %v980_v55 = vld [vmem:[%s1390_s1 + $0x1ac] ss:$16 sps:$4 sm:$0xff]  }
  0x13   :  { %528 = vmatpush1.bf16.msra.mxu0 %v928_v19  ;;  %634 = vmatpush1.bf16.msra.mxu1 %v929_v20  ;;  %v978_v54 = vld [vmem:[%s1390_s1 + $0x1a4] ss:$16 sps:$4 sm:$0xff]   ;;  %v982_v56 = vld [vmem:[%s1390_s1 + $0x1a0] ss:$16 sps:$4 sm:$0xff]   ;;  %v983_v57 = vld [vmem:[%s1390_s1 + $0x1a8] ss:$16 sps:$4 sm:$0xff]  }
  0x14   :  { %529 = vmatprep.subr.bf16.mxu0 %v930_v21  ;;  %635 = vmatprep.subr.bf16.mxu1 %v932_v22  ;;  %v98_v58 = vld [vmem:[%s1392_s2] sm:$0xff]  ;;  %v986_v60 = vld [vmem:[%s1390_s1 + $0x1cc] ss:$16 sps:$4 sm:$0xff]   ;;  %v100_v61 = vld [vmem:[%s1392_s2 + $0x10] sm:$0xff] }
  0x15   :  { %v984_v59 = vld [vmem:[%s1390_s1 + $0x1c4] ss:$16 sps:$4 sm:$0xff]   ;;  %104 = vperm.xlu0 %898, %v98_v58   ;;  %114 = vperm.xlu1 %899, %v100_v61   ;;  %v99_v62 = vld [vmem:[%s1392_s2 + $0x8] sm:$0xff]  ;;  %v101_v63 = vld [vmem:[%s1392_s2 + $0x18] sm:$0xff] }
  0x16   :  { %v988_v0 = vld [vmem:[%s1390_s1 + $0x1c0] ss:$16 sps:$4 sm:$0xff]   ;;  %v989_v2 = vld [vmem:[%s1390_s1 + $0x1c8] ss:$16 sps:$4 sm:$0xff]   ;;  %v990_v3 = vld [vmem:[%s1390_s1 + $0x1e4] ss:$16 sps:$4 sm:$0xff]  }
  0x17   :  { %530 = vmatpush1.bf16.msra.mxu0 %v934_v23  ;;  %636 = vmatpush1.bf16.msra.mxu1 %v935_v24  ;;  %v992_v4 = vld [vmem:[%s1390_s1 + $0x1ec] ss:$16 sps:$4 sm:$0xff]   ;;  %v994_v5 = vld [vmem:[%s1390_s1 + $0x1e0] ss:$16 sps:$4 sm:$0xff]   ;;  %v995_v6 = vld [vmem:[%s1390_s1 + $0x1e8] ss:$16 sps:$4 sm:$0xff]  }
  0x18   :  { %531 = vmatprep.subr.bf16.mxu0 %v936_v25  ;;  %637 = vmatprep.subr.bf16.mxu1 %v938_v26  ;;  %v1001_v7 = vld [vmem:[%s1390_s1 + $0x204] ss:$16 sps:$4 sm:$0xff]   ;;  %v1004_v8 = vld [vmem:[%s1390_s1 + $0x20c] ss:$16 sps:$4 sm:$0xff]   ;;  %v999_v10 = vld [vmem:[%s1390_s1 + $0x200] ss:$16 sps:$4 sm:$0xff]  }
  0x19   :  { %109 = vperm.xlu0 %898, %v99_v62   ;;  %119 = vperm.xlu1 %899, %v101_v63   ;;  %v996_v9 = vld [vmem:[%s1391_s0] ss:$12 sps:$4 sm:$0xff]   ;;  %v1002_v11 = vld [vmem:[%s1390_s1 + $0x208] ss:$16 sps:$4 sm:$0xff]   ;;  %v1010_v13 = vld [vmem:[%s1390_s1 + $0x224] ss:$16 sps:$4 sm:$0xff]  }
  0x1a   :  { %v1005_v12 = vld [vmem:[%s1391_s0 + $0x1c] ss:$12 sps:$4 sm:$0xff]   ;;  %v1008_v15 = vld [vmem:[%s1390_s1 + $0x220] ss:$16 sps:$4 sm:$0xff]   ;;  %v1007_v17 = vld [vmem:[%s1391_s0 + $0x18] ss:$12 sps:$4 sm:$0xff]  }
  0x1b   :  { %532 = vmatpush1.bf16.msra.mxu0 %v940_v27  ;;  %638 = vmatpush1.bf16.msra.mxu1 %v941_v28  ;;  %v1013_v14 = vld [vmem:[%s1390_s1 + $0x22c] ss:$16 sps:$4 sm:$0xff]   ;;  %v1011_v16 = vld [vmem:[%s1390_s1 + $0x228] ss:$16 sps:$4 sm:$0xff]   ;;  %v731_v24 = vld [vmem:[%s1393_s3] sm:$0xff] }
  0x1c   :  { %533 = vmatprep.subr.bf16.mxu0 %v942_v29  ;;  %639 = vmatprep.subr.bf16.mxu1 %v944_v30  ;;  %v1014_v18 = vld [vmem:[%s1391_s0 + $0x8] ss:$12 sps:$4 sm:$0xff]   ;;  %v1015_v19 = vld [vmem:[%s1391_s0 + $0x20] ss:$12 sps:$4 sm:$0xff]  }
  0x1d   :  { %v733_v26 = vld [vmem:[%s1393_s3 + $0x10] sm:$0xff]  ;;  %v732_v29 = vld [vmem:[%s1393_s3 + $0x8] sm:$0xff] }
  0x1e   :  { %v741_v58 = vld [vmem:[%s1393_s3 + $0x50] sm:$0xff]  ;;  %v740_v62 = vld [vmem:[%s1393_s3 + $0x48] sm:$0xff] }
  0x1f   :  { %534 = vmatpush1.bf16.msra.mxu0 %v946_v31  ;;  %640 = vmatpush1.bf16.msra.mxu1 %v947_v32  ;;  %v734_v31 = vld [vmem:[%s1393_s3 + $0x18] sm:$0xff] }
  0x20   :  { %535 = vmatprep.subr.bf16.mxu0 %v948_v33  ;;  %641 = vmatprep.subr.bf16.mxu1 %v950_v34 }
  0x23   :  { %536 = vmatpush1.bf16.msra.mxu0 %v952_v35  ;;  %642 = vmatpush1.bf16.msra.mxu1 %v953_v36  ;;  %v735_v35 = vld [vmem:[%s1393_s3 + $0x20] sm:$0xff] }
  0x24   :  { %537 = vmatprep.subr.bf16.mxu0 %v954_v37  ;;  %643 = vmatprep.subr.bf16.mxu1 %v956_v38  ;;  %v737_v37 = vld [vmem:[%s1393_s3 + $0x30] sm:$0xff] }
  0x27   :  { %538 = vmatpush1.bf16.msra.mxu0 %v958_v39  ;;  %644 = vmatpush1.bf16.msra.mxu1 %v959_v40 }
  0x28   :  { %539 = vmatprep.subr.bf16.mxu0 %v960_v41  ;;  %645 = vmatprep.subr.bf16.mxu1 %v962_v42 }
  0x2b   :  { %540 = vmatpush1.bf16.msra.mxu0 %v964_v43  ;;  %646 = vmatpush1.bf16.msra.mxu1 %v965_v44  ;;  %v736_v43 = vld [vmem:[%s1393_s3 + $0x28] sm:$0xff] }
  0x2c   :  { %541 = vmatprep.subr.bf16.mxu0 %v966_v45  ;;  %647 = vmatprep.subr.bf16.mxu1 %v968_v46  ;;  %v738_v45 = vld [vmem:[%s1393_s3 + $0x38] sm:$0xff] }
  0x2f   :  { %542 = vmatpush1.bf16.msra.mxu0 %v970_v47  ;;  %648 = vmatpush1.bf16.msra.mxu1 %v971_v48 }
  0x30   :  { %543 = vmatprep.subr.bf16.mxu0 %v972_v50  ;;  %649 = vmatprep.subr.bf16.mxu1 %v974_v51 }
  0x33   :  { %544 = vmatpush1.bf16.msra.mxu0 %v976_v52  ;;  %650 = vmatpush1.bf16.msra.mxu1 %v977_v53 }
  0x34   :  { %545 = vmatprep.subr.bf16.mxu0 %v978_v54  ;;  %651 = vmatprep.subr.bf16.mxu1 %v980_v55 }
  0x37   :  { %546 = vmatpush1.bf16.msra.mxu0 %v982_v56  ;;  %652 = vmatpush1.bf16.msra.mxu1 %v983_v57  ;;  %v739_v56 = vld [vmem:[%s1393_s3 + $0x40] sm:$0xff] }
  0x38   :  { %547 = vmatprep.subr.bf16.mxu0 %v984_v59  ;;  %653 = vmatprep.subr.bf16.mxu1 %v986_v60 }
  0x3b   :  { %548 = vmatpush1.bf16.msra.mxu0 %v988_v0  ;;  %654 = vmatpush1.bf16.msra.mxu1 %v989_v2  ;;  %v742_v0 = vld [vmem:[%s1393_s3 + $0x58] sm:$0xff] }
  0x3c   :  { %549 = vmatprep.subr.bf16.mxu0 %v990_v3  ;;  %655 = vmatprep.subr.bf16.mxu1 %v992_v4 }
  0x3f   :  { %550 = vmatpush1.bf16.msra.mxu0 %v994_v5  ;;  %656 = vmatpush1.bf16.msra.mxu1 %v995_v6  ;;  %v743_v5 = vld [vmem:[%s1393_s3 + $0x60] sm:$0xff] }
  0x40   :  { %572 = vmatprep.subr.bf16.mxu0 %v1001_v7  ;;  %678 = vmatprep.subr.bf16.mxu1 %v1004_v8  ;;  %v745_v7 = vld [vmem:[%s1393_s3 + $0x70] sm:$0xff] }
  0x42   :  { %552 = vmatmul.mubr.bf16.vlgmr.msra.gmra.mrb[0].mxu0 %v996_v9  ;;  %658 = vmatmul.mubr.bf16.vlgmr.msra.gmra.mrb[0].mxu1 %v996_v9 }
  0x43   :  { %573 = vmatpush1.bf16.msra.mxu0 %v999_v10  ;;  %679 = vmatpush1.bf16.msra.mxu1 %v1002_v11 }
  0x44   :  { %561 = vmatprep.mubr.bf16.mxu0 %v1005_v12  ;;  %667 = vmatprep.mubr.bf16.mxu1 %v1005_v12 }
  0x45   :  { %574 = vmatprep.subr.bf16.mxu0 %v1010_v13  ;;  %680 = vmatprep.subr.bf16.mxu1 %v1013_v14  ;;  %v744_v13 = vld [vmem:[%s1393_s3 + $0x68] sm:$0xff] }
  0x47   :  { %575 = vmatpush1.bf16.msra.mxu0 %v1008_v15  ;;  %681 = vmatpush1.bf16.msra.mxu1 %v1011_v16  ;;  %v746_v15 = vld [vmem:[%s1393_s3 + $0x78] sm:$0xff] }
  0x4a   :  { %562 = vmatmul.mubr.bf16.gmra.mrb[4].mxu0 %v1007_v17  ;;  %668 = vmatmul.mubr.bf16.gmra.mrb[4].mxu1 %v1007_v17 }
  0x4b   :  { %604 = vmatprep.mubr.bf16.mxu0 %v1016_v1  ;;  %710 = vmatprep.mubr.bf16.mxu1 %v1016_v1 }
  0x52   :  { %861 = vmatmul.mubr.msk.bf16.vlgmr.msra.gmra.mrb[0].mxu0 %vm512_vm0, %v1014_v18  ;;  %863 = vmatmul.mubr.msk.bf16.vlgmr.msra.gmra.mrb[0].mxu1 %vm512_vm0, %v1014_v18 }
  0x53   :  { %614 = vmatprep.mubr.bf16.mxu0 %v1016_v1  ;;  %720 = vmatprep.mubr.bf16.mxu1 %v1016_v1 }
  0x5a   :  { %862 = vmatmul.mubr.msk.bf16.gmra.mrb[4].mxu0 %vm512_vm0, %v1015_v19  ;;  %864 = vmatmul.mubr.msk.bf16.gmra.mrb[4].mxu1 %vm512_vm0, %v1015_v19 }
  0x94   :  { %v105_v20 = vpop.permute.xlu0 %104  ;;  %v115_v22 = vpop.permute.xlu1 %114 }
  0x98   :  { %v110_v21 = vpop.permute.xlu0 %109  ;;  %v120_v54 = vpop.permute.xlu1 %119 }
 0x125   :  { %v606_v23 = vpop.f32.mrb[0].mxu0  ;;  %v712_v25 = vpop.f32.mrb[0].mxu1 }
 0x126   :  { %v865_v1 = vadd.f32 %v606_v23, %v105_v20  ;;  %v873_v27 = vadd.f32 %v712_v25, %v105_v20  ;;  %v608_v28 = vpop.f32.mrb[1].mxu0  ;;  %v714_v30 = vpop.f32.mrb[1].mxu1 }
 0x127   :  { %v866_v32 = vadd.f32 %v608_v28, %v105_v20  ;;  %v874_v33 = vadd.f32 %v714_v30, %v105_v20  ;;  %v610_v34 = vpop.f32.mrb[2].mxu0  ;;  %v716_v36 = vpop.f32.mrb[2].mxu1 }
 0x128   :  { %v747_v38 = vadd.f32 %v865_v1, %v731_v24  ;;  %v749_v39 = vadd.f32 %v873_v27, %v733_v26  ;;  %v867_v40 = vadd.f32 %v610_v34, %v110_v21  ;;  %v875_v41 = vadd.f32 %v716_v36, %v110_v21  ;;  %v612_v42 = vpop.f32.mrb[3].mxu0  ;;  %v718_v44 = vpop.f32.mrb[3].mxu1 }
 0x129   :  { %v748_v46 = vadd.f32 %v866_v32, %v732_v29  ;;  %v750_v47 = vadd.f32 %v874_v33, %v734_v31  ;;  %v868_v48 = vadd.f32 %v612_v42, %v110_v21  ;;  %v876_v49 = vadd.f32 %v718_v44, %v110_v21 }
 0x12a   :  { %763 = vst [vmem:[%s1394_s4] sm:$0xff] %v747_v38  ;;  %765 = vst [vmem:[%s1394_s4 + $0x10] sm:$0xff] %v749_v39  ;;  %v751_v50 = vadd.f32 %v867_v40, %v735_v35  ;;  %v753_v51 = vadd.f32 %v875_v41, %v737_v37 }
 0x12b   :  { %764 = vst [vmem:[%s1394_s4 + $0x8] sm:$0xff] %v748_v46  ;;  %766 = vst [vmem:[%s1394_s4 + $0x18] sm:$0xff] %v750_v47  ;;  %v752_v52 = vadd.f32 %v868_v48, %v736_v43  ;;  %v754_v53 = vadd.f32 %v876_v49, %v738_v45 }
 0x12c   :  { %767 = vst [vmem:[%s1394_s4 + $0x20] sm:$0xff] %v751_v50  ;;  %769 = vst [vmem:[%s1394_s4 + $0x30] sm:$0xff] %v753_v51 }
 0x12d   :  { %768 = vst [vmem:[%s1394_s4 + $0x28] sm:$0xff] %v752_v52  ;;  %770 = vst [vmem:[%s1394_s4 + $0x38] sm:$0xff] %v754_v53  ;;  %v616_v55 = vpop.f32.mrb[4].mxu0  ;;  %v722_v57 = vpop.f32.mrb[4].mxu1 }
 0x12e   :  { %v869_v59 = vadd.f32 %v616_v55, %v115_v22  ;;  %v877_v60 = vadd.f32 %v722_v57, %v115_v22  ;;  %v618_v61 = vpop.f32.mrb[5].mxu0  ;;  %v724_v63 = vpop.f32.mrb[5].mxu1 }
 0x12f   :  { %v870_v2 = vadd.f32 %v618_v61, %v115_v22  ;;  %v878_v3 = vadd.f32 %v724_v63, %v115_v22  ;;  %v620_v4 = vpop.f32.mrb[6].mxu0  ;;  %v726_v6 = vpop.f32.mrb[6].mxu1 }
 0x130   :  { %v755_v8 = vadd.f32 %v869_v59, %v739_v56  ;;  %v757_v9 = vadd.f32 %v877_v60, %v741_v58  ;;  %v871_v10 = vadd.f32 %v620_v4, %v120_v54  ;;  %v879_v11 = vadd.f32 %v726_v6, %v120_v54  ;;  %v622_v12 = vpop.f32.mrb[7].mxu0  ;;  %v728_v14 = vpop.f32.mrb[7].mxu1 }
 0x131   :  { %v756_v16 = vadd.f32 %v870_v2, %v740_v62  ;;  %v758_v17 = vadd.f32 %v878_v3, %v742_v0  ;;  %v872_v18 = vadd.f32 %v622_v12, %v120_v54  ;;  %v880_v19 = vadd.f32 %v728_v14, %v120_v54 }
 0x132   :  { %771 = vst [vmem:[%s1394_s4 + $0x40] sm:$0xff] %v755_v8  ;;  %773 = vst [vmem:[%s1394_s4 + $0x50] sm:$0xff] %v757_v9  ;;  %v759_v20 = vadd.f32 %v871_v10, %v743_v5  ;;  %v761_v21 = vadd.f32 %v879_v11, %v745_v7 }
 0x133   :  { %772 = vst [vmem:[%s1394_s4 + $0x48] sm:$0xff] %v756_v16  ;;  %774 = vst [vmem:[%s1394_s4 + $0x58] sm:$0xff] %v758_v17  ;;  %v760_v22 = vadd.f32 %v872_v18, %v744_v13  ;;  %v762_v23 = vadd.f32 %v880_v19, %v746_v15 }
 0x134   :  { %775 = vst [vmem:[%s1394_s4 + $0x60] sm:$0xff] %v759_v20  ;;  %777 = vst [vmem:[%s1394_s4 + $0x70] sm:$0xff] %v761_v21 }
 0x135   :  { %776 = vst [vmem:[%s1394_s4 + $0x68] sm:$0xff] %v760_v22  ;;  %778 = vst [vmem:[%s1394_s4 + $0x78] sm:$0xff] %v762_v23 }

// kernel: resnet_encoder_forward.24
= control target key start
LH: loop header
LB: loop body
LE: loop exit
PB: predicated region body
PF: predicated region fallthrough
CT: control target
= control target key end

     0   :  { %v607_v1 = vmov 0   ;;  %vm283_vm0 = vcmask 261120   ;;  %s770_s1 = inlined_call_operand.vmem [shape: bf16[288,128], index: 1, kind: input, shape index: {}]   ;;  %s771_s0 = inlined_call_operand.vmem [shape: bf16[64,288], index: 0, kind: input, shape index: {}]   ;;  %s772_s2 = inlined_call_operand.vmem [shape: f32[64,1], index: 2, kind: input, shape index: {}]   ;;  %s773_s3 = inlined_call_operand.vmem [shape: f32[64,128], index: 3, kind: output, shape index: {}]  }
   0x1   :  { %v573_v0 = vld [vmem:[%s770_s1 + $0x40] sm:$0xff]   ;;  %572 = vset.pattern.permute.xlu1 %v607_v1  ;;  %571 = vset.pattern.permute.xlu0 %v607_v1  ;;  %v575_v3 = vld [vmem:[%s770_s1 + $0x48] sm:$0xff]   ;;  %v577_v5 = vld [vmem:[%s770_s1 + $0x50] sm:$0xff]  }
   0x2   :  { %v574_v2 = vld [vmem:[%s770_s1] sm:$0xff]   ;;  %496 = vmatprep.subr.bf16.mxu0 %v573_v0  ;;  %554 = vmatprep.subr.bf16.mxu1 %v573_v0  ;;  %v576_v4 = vld [vmem:[%s770_s1 + $0x8] sm:$0xff]   ;;  %v578_v6 = vld [vmem:[%s770_s1 + $0x10] sm:$0xff]  }
   0x3   :  { %497 = vmatpush3.bf16.msra.mxu0 %v574_v2  ;;  %562 = vmatpush3.bf16.msra.mxu1 %v574_v2  ;;  %v579_v7 = vld [vmem:[%s770_s1 + $0x58] sm:$0xff]   ;;  %v581_v9 = vld [vmem:[%s770_s1 + $0x60] sm:$0xff]   ;;  %v583_v11 = vld [vmem:[%s770_s1 + $0x68] sm:$0xff]  }
   0x4   :  { %498 = vmatprep.subr.bf16.mxu0 %v575_v3  ;;  %555 = vmatprep.subr.bf16.mxu1 %v575_v3  ;;  %v580_v8 = vld [vmem:[%s770_s1 + $0x18] sm:$0xff]   ;;  %v582_v10 = vld [vmem:[%s770_s1 + $0x20] sm:$0xff]   ;;  %v584_v14 = vld [vmem:[%s770_s1 + $0x28] sm:$0xff]  }
   0x5   :  { %v591_v12 = vld [vmem:[%s771_s0 + $0x4] ss:$12 sps:$4 sm:$0xff]   ;;  %v594_v13 = vld [vmem:[%s771_s0 + $0x4c] ss:$12 sps:$4 sm:$0xff]   ;;  %v592_v23 = vld [vmem:[%s771_s0 + $0x48] ss:$12 sps:$4 sm:$0xff]  }
   0x6   :  { %v585_v15 = vld [vmem:[%s770_s1 + $0x70] sm:$0xff]   ;;  %328 = vmatprep.mubr.bf16.mxu0 %v591_v12  ;;  %352 = vmatprep.mubr.bf16.mxu1 %v594_v13  ;;  %v587_v17 = vld [vmem:[%s770_s1 + $0x78] sm:$0xff]   ;;  %v67_v20 = vld [vmem:[%s772_s2] sm:$0xff] }
   0x7   :  { %499 = vmatpush3.bf16.msra.mxu0 %v576_v4  ;;  %563 = vmatpush3.bf16.msra.mxu1 %v576_v4  ;;  %v586_v16 = vld [vmem:[%s770_s1 + $0x30] sm:$0xff]   ;;  %v588_v18 = vld [vmem:[%s770_s1 + $0x38] sm:$0xff]   ;;  %v595_v21 = vld [vmem:[%s770_s1 + $0x80] sm:$0xff]  }
   0x8   :  { %500 = vmatprep.subr.bf16.mxu0 %v577_v5  ;;  %556 = vmatprep.subr.bf16.mxu1 %v577_v5  ;;  %v69_v19 = vld [vmem:[%s772_s2 + $0x10] sm:$0xff]  ;;  %v589_v22 = vld [vmem:[%s771_s0] ss:$12 sps:$4 sm:$0xff]   ;;  %v70_v24 = vld [vmem:[%s772_s2 + $0x18] sm:$0xff] }
   0x9   :  { %87 = vperm.xlu1 %572, %v69_v19   ;;  %77 = vperm.xlu0 %571, %v67_v20   ;;  %v68_v25 = vld [vmem:[%s772_s2 + $0x8] sm:$0xff]  ;;  %v71_v30 = vld [vmem:[%s772_s2 + $0x20] sm:$0xff]  ;;  %v74_v33 = vld [vmem:[%s772_s2 + $0x38] sm:$0xff] }
   0xa   :  { %v597_v26 = vld [vmem:[%s771_s0 + $0x1c] ss:$12 sps:$4 sm:$0xff]   ;;  %v600_v31 = vld [vmem:[%s771_s0 + $0x18] ss:$12 sps:$4 sm:$0xff]   ;;  %v601_v32 = vld [vmem:[%s771_s0 + $0x20] ss:$12 sps:$4 sm:$0xff]  }
   0xb   :  { %501 = vmatpush3.bf16.msra.mxu0 %v578_v6  ;;  %564 = vmatpush3.bf16.msra.mxu1 %v578_v6  ;;  %v596_v27 = vld [vmem:[%s770_s1 + $0x88] sm:$0xff]   ;;  %v73_v34 = vld [vmem:[%s772_s2 + $0x30] sm:$0xff]  ;;  %v604_v36 = vld [vmem:[%s771_s0 + $0x38] ss:$12 sps:$4 sm:$0xff]  }
   0xc   :  { %502 = vmatprep.subr.bf16.mxu0 %v579_v7  ;;  %557 = vmatprep.subr.bf16.mxu1 %v579_v7  ;;  %v599_v28 = vld [vmem:[%s771_s0 + $0x8] ss:$12 sps:$4 sm:$0xff]   ;;  %v605_v37 = vld [vmem:[%s771_s0 + $0x30] ss:$12 sps:$4 sm:$0xff]  }
   0xd   :  { %92 = vperm.xlu1 %572, %v70_v24   ;;  %82 = vperm.xlu0 %571, %v68_v25   ;;  %v72_v29 = vld [vmem:[%s772_s2 + $0x28] sm:$0xff]  ;;  %v602_v35 = vld [vmem:[%s771_s0 + $0x34] ss:$12 sps:$4 sm:$0xff]   ;;  %v606_v38 = vld [vmem:[%s771_s0 + $0x50] ss:$12 sps:$4 sm:$0xff]  }
   0xf   :  { %503 = vmatpush3.bf16.msra.mxu0 %v580_v8  ;;  %565 = vmatpush3.bf16.msra.mxu1 %v580_v8 }
  0x10   :  { %504 = vmatprep.subr.bf16.mxu0 %v581_v9  ;;  %558 = vmatprep.subr.bf16.mxu1 %v581_v9 }
  0x11   :  { %102 = vperm.xlu1 %572, %v72_v29   ;;  %97 = vperm.xlu0 %571, %v71_v30  }
  0x13   :  { %505 = vmatpush3.bf16.msra.mxu0 %v582_v10  ;;  %566 = vmatpush3.bf16.msra.mxu1 %v582_v10 }
  0x14   :  { %506 = vmatprep.subr.bf16.mxu0 %v583_v11  ;;  %559 = vmatprep.subr.bf16.mxu1 %v583_v11 }
  0x15   :  { %112 = vperm.xlu1 %572, %v74_v33   ;;  %107 = vperm.xlu0 %571, %v73_v34  }
  0x17   :  { %507 = vmatpush3.bf16.msra.mxu0 %v584_v14  ;;  %567 = vmatpush3.bf16.msra.mxu1 %v584_v14 }
  0x18   :  { %508 = vmatprep.subr.bf16.mxu0 %v585_v15  ;;  %560 = vmatprep.subr.bf16.mxu1 %v585_v15 }
  0x1b   :  { %509 = vmatpush3.bf16.msra.mxu0 %v586_v16  ;;  %568 = vmatpush3.bf16.msra.mxu1 %v586_v16 }
  0x1c   :  { %510 = vmatprep.subr.bf16.mxu0 %v587_v17  ;;  %561 = vmatprep.subr.bf16.mxu1 %v587_v17 }
  0x1f   :  { %511 = vmatpush3.bf16.msra.mxu0 %v588_v18  ;;  %569 = vmatpush3.bf16.msra.mxu1 %v588_v18 }
  0x20   :  { %542 = vmatprep.subr.bf16.mxu1 %v595_v21 }
  0x22   :  { %329 = vmatmul.mubr.bf16.vlgmr.msra.gmra.mrb[0].mxu0 %v589_v22  ;;  %353 = vmatmul.mubr.bf16.vlgmr.msra.gmra.mrb[0].mxu1 %v592_v23 }
  0x23   :  { %543 = vmatpush3.bf16.msra.mxu1 %v595_v21  ;;  %336 = vmatprep.mubr.bf16.mxu0 %v597_v26 }
  0x24   :  { %544 = vmatprep.subr.bf16.mxu1 %v596_v27  ;;  %546 = vmatprep.mubr.msk.bf16.mxu1 %vm283_vm0, %v599_v28 }
  0x27   :  { %545 = vmatpush3.bf16.msra.mxu1 %v596_v27 }
  0x2a   :  { %337 = vmatmul.mubr.bf16.gmra.mrb[4].mxu0 %v600_v31  ;;  %547 = vmatmul.mubr.msk.bf16.vlgmr.msra.gmra.mrb[4].mxu1 %vm283_vm0, %v601_v32 }
  0x2b   :  { %344 = vmatprep.mubr.bf16.mxu0 %v602_v35  ;;  %550 = vmatprep.mubr.msk.bf16.mxu1 %vm283_vm0, %v604_v36 }
  0x32   :  { %345 = vmatmul.mubr.bf16.gmra.mrb[8].mxu0 %v605_v37  ;;  %551 = vmatmul.mubr.msk.bf16.gmra.mrb[8].mxu1 %vm283_vm0, %v606_v38 }
  0x88   :  { %v88_v39 = vpop.permute.xlu1 %87  ;;  %v78_v40 = vpop.permute.xlu0 %77 }
  0x8c   :  { %v93_v41 = vpop.permute.xlu1 %92  ;;  %v83_v42 = vpop.permute.xlu0 %82 }
  0x90   :  { %v98_v55 = vpop.permute.xlu0 %97  ;;  %v103_v56 = vpop.permute.xlu1 %102 }
  0x94   :  { %v108_v5 = vpop.permute.xlu0 %107  ;;  %v113_v10 = vpop.permute.xlu1 %112 }
  0xf5   :  { %v512_v43 = vpop.f32.mrb[0].mxu0  ;;  %v530_v44 = vpop.f32.mrb[0].mxu1 }
  0xf6   :  { %v513_v45 = vpop.f32.mrb[1].mxu0  ;;  %v531_v46 = vpop.f32.mrb[1].mxu1 }
  0xf7   :  { %v514_v47 = vadd.f32 %v513_v45, %v512_v43  ;;  %v515_v48 = vpop.f32.mrb[2].mxu0  ;;  %v532_v49 = vadd.f32 %v531_v46, %v530_v44  ;;  %v533_v50 = vpop.f32.mrb[2].mxu1 }
  0xf8   :  { %v516_v51 = vpop.f32.mrb[3].mxu0  ;;  %v534_v52 = vpop.f32.mrb[3].mxu1 }
  0xf9   :  { %v517_v53 = vadd.f32 %v516_v51, %v515_v48  ;;  %v535_v54 = vadd.f32 %v534_v52, %v533_v50  ;;  %v331_v59 = vadd.f32 %v514_v47, %v78_v40  ;;  %v355_v14 = vadd.f32 %v532_v49, %v108_v5 }
  0xfb   :  { %v334_v3 = vadd.f32 %v517_v53, %v83_v42  ;;  %v358_v20 = vadd.f32 %v535_v54, %v113_v10 }
  0xfd   :  { %v518_v57 = vpop.f32.mrb[4].mxu0  ;;  %v548_v58 = vpop.f32.mrb[4].mxu1 }
  0xfe   :  { %v519_v60 = vpop.f32.mrb[5].mxu0  ;;  %v395_v61 = vpop.f32.mrb[5].mxu1 }
  0xff   :  { %v520_v62 = vadd.f32 %v519_v60, %v518_v57  ;;  %v396_v63 = vadd.f32 %v395_v61, %v331_v59  ;;  %v521_v0 = vpop.f32.mrb[6].mxu0  ;;  %v549_v1 = vpop.f32.mrb[6].mxu1 }
 0x100   :  { %v522_v2 = vpop.f32.mrb[7].mxu0  ;;  %v398_v4 = vpop.f32.mrb[7].mxu1 }
 0x101   :  { %v339_v6 = vadd.f32 %v520_v62, %v88_v39  ;;  %vm426_vm1 = vcmp.ge.f32.partialorder %v396_v63, 0.0  ;;  %v434_v7 = vmul.f32 0.1, %v396_v63  ;;  %v523_v8 = vadd.f32 %v522_v2, %v521_v0 }
 0x102   :  { %v399_v9 = vadd.f32 %v398_v4, %v334_v3 }
 0x103   :  { %v404_v11 = vadd.f32 %v548_v58, %v339_v6  ;;  %v442_v12 = vsel %vm426_vm1, %v396_v63, %v434_v7  ;;  %v342_v13 = vadd.f32 %v523_v8, %v93_v41 }
 0x104   :  { %450 = vst [vmem:[%s773_s3] sm:$0xff] %v442_v12  ;;  %vm427_vm2 = vcmp.ge.f32.partialorder %v399_v9, 0.0  ;;  %v435_v15 = vmul.f32 0.1, %v399_v9 }
 0x105   :  { %vm428_vm3 = vcmp.ge.f32.partialorder %v404_v11, 0.0  ;;  %v436_v16 = vmul.f32 0.1, %v404_v11  ;;  %v407_v17 = vadd.f32 %v549_v1, %v342_v13  ;;  %v524_v18 = vpop.f32.mrb[8].mxu0  ;;  %v552_v19 = vpop.f32.mrb[8].mxu1 }
 0x106   :  { %v443_v21 = vsel %vm427_vm2, %v399_v9, %v435_v15  ;;  %v420_v22 = vadd.f32 %v552_v19, %v355_v14  ;;  %v525_v23 = vpop.f32.mrb[9].mxu0  ;;  %v411_v24 = vpop.f32.mrb[9].mxu1 }
 0x107   :  { %v444_v25 = vsel %vm428_vm3, %v404_v11, %v436_v16  ;;  %vm429_vm4 = vcmp.ge.f32.partialorder %v407_v17, 0.0  ;;  %v437_v26 = vmul.f32 0.1, %v407_v17  ;;  %451 = vst [vmem:[%s773_s3 + $0x8] sm:$0xff] %v443_v21  ;;  %v526_v27 = vadd.f32 %v525_v23, %v524_v18  ;;  %v527_v28 = vpop.f32.mrb[10].mxu0  ;;  %v553_v29 = vpop.f32.mrb[10].mxu1 }
 0x108   :  { %452 = vst [vmem:[%s773_s3 + $0x10] sm:$0xff] %v444_v25  ;;  %vm432_vm5 = vcmp.ge.f32.partialorder %v420_v22, 0.0  ;;  %v440_v30 = vmul.f32 0.1, %v420_v22  ;;  %v423_v31 = vadd.f32 %v553_v29, %v358_v20  ;;  %v528_v32 = vpop.f32.mrb[11].mxu0  ;;  %v414_v33 = vpop.f32.mrb[11].mxu1 }
 0x109   :  { %v445_v34 = vsel %vm429_vm4, %v407_v17, %v437_v26  ;;  %v347_v35 = vadd.f32 %v526_v27, %v98_v55  ;;  %v529_v36 = vadd.f32 %v528_v32, %v527_v28 }
 0x10a   :  { %453 = vst [vmem:[%s773_s3 + $0x18] sm:$0xff] %v445_v34  ;;  %v448_v37 = vsel %vm432_vm5, %v420_v22, %v440_v30  ;;  %vm433_vm6 = vcmp.ge.f32.partialorder %v423_v31, 0.0  ;;  %v441_v38 = vmul.f32 0.1, %v423_v31 }
 0x10b   :  { %456 = vst [vmem:[%s773_s3 + $0x30] sm:$0xff] %v448_v37  ;;  %v412_v39 = vadd.f32 %v411_v24, %v347_v35  ;;  %v350_v40 = vadd.f32 %v529_v36, %v103_v56 }
 0x10c   :  { %v449_v41 = vsel %vm433_vm6, %v423_v31, %v441_v38 }
 0x10d   :  { %vm430_vm7 = vcmp.ge.f32.partialorder %v412_v39, 0.0  ;;  %v438_v42 = vmul.f32 0.1, %v412_v39  ;;  %457 = vst [vmem:[%s773_s3 + $0x38] sm:$0xff] %v449_v41  ;;  %v415_v43 = vadd.f32 %v414_v33, %v350_v40 }
 0x10f   :  { %v446_v44 = vsel %vm430_vm7, %v412_v39, %v438_v42  ;;  %vm431_vm8 = vcmp.ge.f32.partialorder %v415_v43, 0.0  ;;  %v439_v45 = vmul.f32 0.1, %v415_v43 }
 0x110   :  { %454 = vst [vmem:[%s773_s3 + $0x20] sm:$0xff] %v446_v44 }
 0x111   :  { %v447_v46 = vsel %vm431_vm8, %v415_v43, %v439_v45 }
 0x112   :  { %455 = vst [vmem:[%s773_s3 + $0x28] sm:$0xff] %v447_v46 }

// kernel: resnet_encoder_forward.25
= control target key start
LH: loop header
LB: loop body
LE: loop exit
PB: predicated region body
PF: predicated region fallthrough
CT: control target
= control target key end

     0   :  { %v1120_v1 = vmov 0   ;;  %vm161_vm0 = vcmask 261120   ;;  %vm555_vm1 = vcmask 523264   ;;  %s1399_s4 = inlined_call_operand.vmem [shape: bf16[32,128], index: 4, kind: input, shape index: {}]   ;;  %s1400_s1 = inlined_call_operand.vmem [shape: bf16[576,128], index: 1, kind: input, shape index: {}]   ;;  %s1401_s3 = inlined_call_operand.vmem [shape: bf16[64,32], index: 3, kind: input, shape index: {}]   ;;  %s1402_s0 = inlined_call_operand.vmem [shape: bf16[64,576], index: 0, kind: input, shape index: {}]   ;;  %s1403_s2 = inlined_call_operand.vmem [shape: f32[64,1], index: 2, kind: input, shape index: {}]   ;;  %s1404_s5 = inlined_call_operand.vmem [shape: f32[64,128], index: 5, kind: output, shape index: {}]  }
   0x1   :  { %v1050_v0 = vld [vmem:[%s1399_s4] sm:$0xff]   ;;  %1049 = vset.pattern.permute.xlu1 %v1120_v1  ;;  %1048 = vset.pattern.permute.xlu0 %v1120_v1  ;;  %v1053_v4 = vld [vmem:[%s1399_s4 + $0x8] sm:$0xff]   ;;  %v1058_v9 = vld [vmem:[%s1400_s1 + $0xd0] sm:$0xff]  }
   0x2   :  { %v1051_v2 = vld [vmem:[%s1400_s1 + $0xc0] sm:$0xff]   ;;  %995 = vmatprep.subr.bf16.mxu1 %v1050_v0  ;;  %v1054_v5 = vld [vmem:[%s1400_s1 + $0xc8] sm:$0xff]   ;;  %v1061_v12 = vld [vmem:[%s1400_s1 + $0x90] sm:$0xff]  }
   0x3   :  { %v1052_v3 = vld [vmem:[%s1400_s1 + $0x80] sm:$0xff]   ;;  %947 = vmatprep.subr.bf16.mxu0 %v1051_v2  ;;  %996 = vmatpush3.bf16.msra.mxu1 %v1050_v0  ;;  %v1055_v6 = vld [vmem:[%s1400_s1 + $0x88] sm:$0xff]   ;;  %v1063_v14 = vld [vmem:[%s1400_s1 + $0xd8] sm:$0xff]  }
   0x4   :  { %948 = vmatpush3.bf16.msra.mxu0 %v1052_v3  ;;  %997 = vmatprep.subr.bf16.mxu1 %v1053_v4  ;;  %v1056_v7 = vld [vmem:[%s1401_s3] sm:$0xff]   ;;  %v1059_v10 = vld [vmem:[%s1401_s3 + $0x8] sm:$0xff]   ;;  %v1065_v16 = vld [vmem:[%s1400_s1 + $0x98] sm:$0xff]  }
   0x5   :  { %949 = vmatprep.subr.bf16.mxu0 %v1054_v5  ;;  %v1057_v8 = vld [vmem:[%s1400_s1 + $0x40] sm:$0xff]   ;;  %999 = vmatprep.mubr.msk.bf16.mxu1 %vm161_vm0, %v1056_v7  ;;  %v1062_v13 = vld [vmem:[%s1400_s1 + $0x48] sm:$0xff]   ;;  %v1066_v17 = vld [vmem:[%s1400_s1 + $0x50] sm:$0xff]  }
   0x6   :  { %v1060_v11 = vld [vmem:[%s1400_s1] sm:$0xff]   ;;  %v1064_v15 = vld [vmem:[%s1400_s1 + $0x8] sm:$0xff]   ;;  %v1068_v19 = vld [vmem:[%s1400_s1 + $0x10] sm:$0xff]  }
   0x7   :  { %998 = vmatpush3.bf16.msra.mxu1 %v1053_v4  ;;  %v1067_v18 = vld [vmem:[%s1400_s1 + $0xe0] sm:$0xff]   ;;  %v1070_v21 = vld [vmem:[%s1400_s1 + $0x58] sm:$0xff]   ;;  %v1071_v22 = vld [vmem:[%s1400_s1 + $0xe8] sm:$0xff]  }
   0x8   :  { %950 = vmatpush3.bf16.msra.mxu0 %v1055_v6  ;;  %907 = vmatprep.subr.bf16.mxu1 %v1057_v8  ;;  %v1069_v20 = vld [vmem:[%s1400_s1 + $0xa0] sm:$0xff]   ;;  %v1072_v23 = vld [vmem:[%s1400_s1 + $0x18] sm:$0xff]   ;;  %v1073_v24 = vld [vmem:[%s1400_s1 + $0xa8] sm:$0xff]  }
   0x9   :  { %951 = vmatprep.subr.bf16.mxu0 %v1058_v9  ;;  %v1074_v25 = vld [vmem:[%s1400_s1 + $0x60] sm:$0xff]   ;;  %v1075_v26 = vld [vmem:[%s1400_s1 + $0xf0] sm:$0xff]   ;;  %v1078_v29 = vld [vmem:[%s1400_s1 + $0x68] sm:$0xff]  }
   0xa   :  { %1000 = vmatmul.mubr.msk.bf16.vlgmr.msra.gmra.mrb[0].mxu1 %vm161_vm0, %v1059_v10  ;;  %v1076_v27 = vld [vmem:[%s1400_s1 + $0x20] sm:$0xff]   ;;  %v1077_v28 = vld [vmem:[%s1400_s1 + $0xb0] sm:$0xff]   ;;  %v1079_v30 = vld [vmem:[%s1400_s1 + $0xf8] sm:$0xff]  }
   0xb   :  { %908 = vmatpush3.bf16.msra.mxu1 %v1060_v11  ;;  %v1080_v31 = vld [vmem:[%s1400_s1 + $0x28] sm:$0xff]   ;;  %v1081_v32 = vld [vmem:[%s1400_s1 + $0xb8] sm:$0xff]   ;;  %v1082_v33 = vld [vmem:[%s1401_s3 + $0x10] sm:$0xff]  }
   0xc   :  { %952 = vmatpush3.bf16.msra.mxu0 %v1061_v12  ;;  %909 = vmatprep.subr.bf16.mxu1 %v1062_v13  ;;  %v1083_v34 = vld [vmem:[%s1402_s0 + $0x8] ss:$20 sps:$4 sm:$0xff]   ;;  %v1085_v35 = vld [vmem:[%s1402_s0 + $0xc] ss:$20 sps:$4 sm:$0xff]   ;;  %v1087_v37 = vld [vmem:[%s1400_s1 + $0x70] sm:$0xff]  }
   0xd   :  { %953 = vmatprep.subr.bf16.mxu0 %v1063_v14  ;;  %1003 = vmatprep.mubr.msk.bf16.mxu1 %vm161_vm0, %v1082_v33  ;;  %v1086_v36 = vld [vmem:[%s1401_s3 + $0x18] sm:$0xff]   ;;  %v1088_v38 = vld [vmem:[%s1400_s1 + $0x100] sm:$0xff]   ;;  %v1089_v39 = vld [vmem:[%s1400_s1 + $0x30] sm:$0xff]  }
   0xe   :  { %665 = vmatprep.mubr.bf16.mxu0 %v1085_v35  ;;  %v1090_v40 = vld [vmem:[%s1400_s1 + $0x78] sm:$0xff]   ;;  %v1092_v42 = vld [vmem:[%s1402_s0] ss:$20 sps:$4 sm:$0xff]   ;;  %v1097_v45 = vld [vmem:[%s1402_s0 + $0x30] ss:$20 sps:$4 sm:$0xff]  }
   0xf   :  { %910 = vmatpush3.bf16.msra.mxu1 %v1064_v15  ;;  %v1091_v41 = vld [vmem:[%s1400_s1 + $0x38] sm:$0xff]   ;;  %v1095_v44 = vld [vmem:[%s1402_s0 + $0x34] ss:$20 sps:$4 sm:$0xff]   ;;  %v1099_v47 = vld [vmem:[%s1402_s0 + $0x2c] ss:$20 sps:$4 sm:$0xff]  }
  0x10   :  { %954 = vmatpush3.bf16.msra.mxu0 %v1065_v16  ;;  %911 = vmatprep.subr.bf16.mxu1 %v1066_v17  ;;  %v1094_v43 = vld [vmem:[%s1402_s0 + $0x4] ss:$20 sps:$4 sm:$0xff]   ;;  %v1098_v46 = vld [vmem:[%s1400_s1 + $0x108] sm:$0xff]   ;;  %v1101_v48 = vld [vmem:[%s1402_s0 + $0x5c] ss:$20 sps:$4 sm:$0xff]  }
  0x11   :  { %955 = vmatprep.subr.bf16.mxu0 %v1067_v18  ;;  %v1105_v49 = vld [vmem:[%s1400_s1 + $0x110] sm:$0xff]   ;;  %v1103_v50 = vld [vmem:[%s1402_s0 + $0x28] ss:$20 sps:$4 sm:$0xff]   ;;  %v1104_v51 = vld [vmem:[%s1402_s0 + $0x58] ss:$20 sps:$4 sm:$0xff]  }
  0x12   :  { %1004 = vmatmul.mubr.msk.bf16.gmra.mrb[4].mxu1 %vm161_vm0, %v1086_v36  ;;  %v1108_v52 = vld [vmem:[%s1402_s0 + $0x84] ss:$20 sps:$4 sm:$0xff]   ;;  %v1106_v54 = vld [vmem:[%s1402_s0 + $0x54] ss:$20 sps:$4 sm:$0xff]   ;;  %v1113_v62 = vld [vmem:[%s1402_s0 + $0x7c] ss:$20 sps:$4 sm:$0xff]  }
  0x13   :  { %912 = vmatpush3.bf16.msra.mxu1 %v1068_v19  ;;  %600 = vmatprep.mubr.bf16.mxu1 %v1094_v43  ;;  %v1112_v53 = vld [vmem:[%s1400_s1 + $0x118] sm:$0xff]   ;;  %v765_v55 = vld [vmem:[%s1403_s2 + $0x10] sm:$0xff]  ;;  %v763_v57 = vld [vmem:[%s1403_s2] sm:$0xff] }
  0x14   :  { %956 = vmatpush3.bf16.msra.mxu0 %v1069_v20  ;;  %913 = vmatprep.subr.bf16.mxu1 %v1070_v21  ;;  %v1111_v56 = vld [vmem:[%s1402_s0 + $0x80] ss:$20 sps:$4 sm:$0xff]   ;;  %v1115_v58 = vld [vmem:[%s1402_s0 + $0x10] ss:$20 sps:$4 sm:$0xff]   ;;  %v766_v59 = vld [vmem:[%s1403_s2 + $0x18] sm:$0xff] }
  0x15   :  { %957 = vmatprep.subr.bf16.mxu0 %v1071_v22  ;;  %783 = vperm.xlu1 %1049, %v765_v55   ;;  %v1110_v60 = vld [vmem:[%s1402_s0 + $0x50] ss:$20 sps:$4 sm:$0xff]   ;;  %v764_v61 = vld [vmem:[%s1403_s2 + $0x8] sm:$0xff]  ;;  %v1118_v2 = vld [vmem:[%s1402_s0 + $0x60] ss:$20 sps:$4 sm:$0xff]  }
  0x16   :  { %773 = vperm.xlu0 %1048, %v763_v57   ;;  %v768_v63 = vld [vmem:[%s1403_s2 + $0x28] sm:$0xff]  ;;  %v767_v0 = vld [vmem:[%s1403_s2 + $0x20] sm:$0xff]  ;;  %v770_v3 = vld [vmem:[%s1403_s2 + $0x38] sm:$0xff] }
  0x17   :  { %914 = vmatpush3.bf16.msra.mxu1 %v1072_v23  ;;  %v1117_v1 = vld [vmem:[%s1402_s0 + $0x38] ss:$20 sps:$4 sm:$0xff]   ;;  %v769_v5 = vld [vmem:[%s1403_s2 + $0x30] sm:$0xff]  ;;  %v1119_v6 = vld [vmem:[%s1402_s0 + $0x88] ss:$20 sps:$4 sm:$0xff]  }
  0x18   :  { %958 = vmatpush3.bf16.msra.mxu0 %v1073_v24  ;;  %915 = vmatprep.subr.bf16.mxu1 %v1074_v25  ;;  %v1116_v4 = vld [vmem:[%s1402_s0 + $0x78] ss:$20 sps:$4 sm:$0xff]  }
  0x19   :  { %959 = vmatprep.subr.bf16.mxu0 %v1075_v26  ;;  %788 = vperm.xlu1 %1049, %v766_v59  }
  0x1a   :  { %778 = vperm.xlu0 %1048, %v764_v61  }
  0x1b   :  { %916 = vmatpush3.bf16.msra.mxu1 %v1076_v27 }
  0x1c   :  { %960 = vmatpush3.bf16.msra.mxu0 %v1077_v28  ;;  %917 = vmatprep.subr.bf16.mxu1 %v1078_v29 }
  0x1d   :  { %961 = vmatprep.subr.bf16.mxu0 %v1079_v30  ;;  %798 = vperm.xlu1 %1049, %v768_v63  }
  0x1e   :  { %793 = vperm.xlu0 %1048, %v767_v0  }
  0x1f   :  { %918 = vmatpush3.bf16.msra.mxu1 %v1080_v31 }
  0x20   :  { %962 = vmatpush3.bf16.msra.mxu0 %v1081_v32  ;;  %919 = vmatprep.subr.bf16.mxu1 %v1087_v37 }
  0x21   :  { %1007 = vmatprep.subr.bf16.mxu0 %v1088_v38  ;;  %808 = vperm.xlu1 %1049, %v770_v3  }
  0x22   :  { %803 = vperm.xlu0 %1048, %v769_v5  }
  0x23   :  { %666 = vmatmul.mubr.bf16.vlgmr.msra.gmra.mrb[0].mxu0 %v1083_v34  ;;  %920 = vmatpush3.bf16.msra.mxu1 %v1089_v39 }
  0x24   :  { %1008 = vmatpush3.bf16.msra.mxu0 %v1088_v38  ;;  %921 = vmatprep.subr.bf16.mxu1 %v1090_v40 }
  0x25   :  { %673 = vmatprep.mubr.bf16.mxu0 %v1095_v44  ;;  %1009 = vmatprep.subr.bf16.mxu0 %v1098_v46 }
  0x27   :  { %922 = vmatpush3.bf16.msra.mxu1 %v1091_v41 }
  0x28   :  { %1010 = vmatpush3.bf16.msra.mxu0 %v1098_v46 }
  0x29   :  { %1011 = vmatprep.subr.bf16.mxu0 %v1105_v49 }
  0x2a   :  { %601 = vmatmul.mubr.bf16.vlgmr.msra.gmra.mrb[8].mxu1 %v1092_v42 }
  0x2b   :  { %674 = vmatmul.mubr.bf16.gmra.mrb[4].mxu0 %v1097_v45  ;;  %608 = vmatprep.mubr.bf16.mxu1 %v1099_v47 }
  0x2c   :  { %681 = vmatprep.mubr.bf16.mxu0 %v1101_v48  ;;  %1012 = vmatpush3.bf16.msra.mxu0 %v1105_v49 }
  0x2d   :  { %1013 = vmatprep.subr.bf16.mxu0 %v1112_v53 }
  0x30   :  { %1014 = vmatpush3.bf16.msra.mxu0 %v1112_v53 }
  0x32   :  { %609 = vmatmul.mubr.bf16.gmra.mrb[12].mxu1 %v1103_v50 }
  0x33   :  { %682 = vmatmul.mubr.bf16.gmra.mrb[8].mxu0 %v1104_v51  ;;  %616 = vmatprep.mubr.bf16.mxu1 %v1106_v54 }
  0x34   :  { %689 = vmatprep.mubr.bf16.mxu0 %v1108_v52 }
  0x3a   :  { %617 = vmatmul.mubr.bf16.gmra.mrb[16].mxu1 %v1110_v60 }
  0x3b   :  { %690 = vmatmul.mubr.bf16.gmra.mrb[12].mxu0 %v1111_v56  ;;  %624 = vmatprep.mubr.bf16.mxu1 %v1113_v62 }
  0x3c   :  { %1015 = vmatprep.mubr.msk.bf16.mxu0 %vm555_vm1, %v1115_v58 }
  0x42   :  { %625 = vmatmul.mubr.bf16.gmra.mrb[20].mxu1 %v1116_v4 }
  0x43   :  { %1016 = vmatmul.mubr.msk.bf16.vlgmr.msra.gmra.mrb[16].mxu0 %vm555_vm1, %v1117_v1 }
  0x44   :  { %1019 = vmatprep.mubr.msk.bf16.mxu0 %vm555_vm1, %v1118_v2 }
  0x4b   :  { %1020 = vmatmul.mubr.msk.bf16.gmra.mrb[20].mxu0 %vm555_vm1, %v1119_v6 }
  0x94   :  { %v784_v51 = vpop.permute.xlu1 %783 }
  0x95   :  { %v774_v54 = vpop.permute.xlu0 %773 }
  0x99   :  { %v779_v4 = vpop.permute.xlu0 %778 }
  0xdd   :  { %v1001_v7 = vpop.f32.mrb[0].mxu1 }
  0xde   :  { %v208_v8 = vpop.f32.mrb[1].mxu1 }
  0xdf   :  { %v1002_v9 = vpop.f32.mrb[2].mxu1 }
  0xe0   :  { %v211_v10 = vpop.f32.mrb[3].mxu1 }
  0xe5   :  { %v1369_v11 = vpop.f32.mrb[4].mxu1 }
  0xe6   :  { %v224_v13 = vpop.f32.mrb[5].mxu1 }
  0xe7   :  { %v1371_v16 = vpop.f32.mrb[6].mxu1 }
  0xe8   :  { %v227_v18 = vpop.f32.mrb[7].mxu1 }
  0xf6   :  { %v963_v12 = vpop.f32.mrb[0].mxu0 }
  0xf7   :  { %v964_v14 = vpop.f32.mrb[1].mxu0 }
  0xf8   :  { %v965_v15 = vadd.f32 %v964_v14, %v963_v12  ;;  %v966_v17 = vpop.f32.mrb[2].mxu0 }
  0xf9   :  { %v967_v19 = vpop.f32.mrb[3].mxu0 }
  0xfa   :  { %v968_v20 = vadd.f32 %v967_v19, %v966_v17 }
  0xfd   :  { %v923_v23 = vpop.f32.mrb[8].mxu1 }
  0xfe   :  { %v969_v21 = vpop.f32.mrb[4].mxu0  ;;  %v924_v26 = vpop.f32.mrb[9].mxu1 }
  0xff   :  { %v970_v22 = vpop.f32.mrb[5].mxu0  ;;  %v925_v28 = vadd.f32 %v924_v26, %v923_v23  ;;  %v926_v29 = vpop.f32.mrb[10].mxu1 }
 0x100   :  { %v971_v24 = vadd.f32 %v970_v22, %v969_v21  ;;  %v972_v25 = vpop.f32.mrb[6].mxu0  ;;  %v927_v31 = vpop.f32.mrb[11].mxu1 }
 0x101   :  { %v973_v27 = vpop.f32.mrb[7].mxu0  ;;  %v603_v32 = vadd.f32 %v925_v28, %v208_v8  ;;  %v928_v33 = vadd.f32 %v927_v31, %v926_v29  ;;  %v789_v8 = vpop.permute.xlu1 %788 }
 0x102   :  { %v974_v30 = vadd.f32 %v973_v27, %v972_v25  ;;  %v794_v26 = vpop.permute.xlu0 %793 }
 0x103   :  { %v606_v34 = vadd.f32 %v928_v33, %v211_v10  ;;  %v668_v36 = vadd.f32 %v965_v15, %v603_v32 }
 0x105   :  { %v929_v38 = vpop.f32.mrb[12].mxu1  ;;  %v671_v41 = vadd.f32 %v968_v20, %v606_v34  ;;  %v799_v31 = vpop.permute.xlu1 %798 }
 0x106   :  { %v975_v35 = vpop.f32.mrb[8].mxu0  ;;  %v930_v42 = vpop.f32.mrb[13].mxu1 }
 0x107   :  { %v976_v37 = vpop.f32.mrb[9].mxu0  ;;  %v931_v44 = vadd.f32 %v930_v42, %v929_v38  ;;  %v932_v45 = vpop.f32.mrb[14].mxu1 }
 0x108   :  { %v977_v39 = vadd.f32 %v976_v37, %v975_v35  ;;  %v978_v40 = vpop.f32.mrb[10].mxu0  ;;  %v933_v47 = vpop.f32.mrb[15].mxu1 }
 0x109   :  { %v979_v43 = vpop.f32.mrb[11].mxu0  ;;  %v611_v48 = vadd.f32 %v1001_v7, %v931_v44  ;;  %v934_v49 = vadd.f32 %v933_v47, %v932_v45  ;;  %v809_v45 = vpop.permute.xlu1 %808 }
 0x10a   :  { %v980_v46 = vadd.f32 %v979_v43, %v978_v40 }
 0x10b   :  { %v614_v50 = vadd.f32 %v1002_v9, %v934_v49  ;;  %v676_v53 = vadd.f32 %v971_v24, %v611_v48 }
 0x10d   :  { %v935_v56 = vpop.f32.mrb[16].mxu1  ;;  %v679_v59 = vadd.f32 %v974_v30, %v614_v50 }
 0x10e   :  { %v981_v52 = vpop.f32.mrb[12].mxu0  ;;  %v936_v60 = vpop.f32.mrb[17].mxu1 }
 0x10f   :  { %v982_v55 = vpop.f32.mrb[13].mxu0  ;;  %v937_v62 = vadd.f32 %v936_v60, %v935_v56  ;;  %v938_v63 = vpop.f32.mrb[18].mxu1 }
 0x110   :  { %v983_v57 = vadd.f32 %v982_v55, %v981_v52  ;;  %v984_v58 = vpop.f32.mrb[14].mxu0  ;;  %v939_v1 = vpop.f32.mrb[19].mxu1 }
 0x111   :  { %v985_v61 = vpop.f32.mrb[15].mxu0  ;;  %v619_v2 = vadd.f32 %v937_v62, %v224_v13  ;;  %v940_v3 = vadd.f32 %v939_v1, %v938_v63 }
 0x112   :  { %v986_v0 = vadd.f32 %v985_v61, %v984_v58 }
 0x113   :  { %v622_v5 = vadd.f32 %v940_v3, %v227_v18  ;;  %v684_v7 = vadd.f32 %v977_v39, %v619_v2  ;;  %v804_v39 = vpop.permute.xlu0 %803 }
 0x115   :  { %v941_v12 = vpop.f32.mrb[20].mxu1  ;;  %v687_v17 = vadd.f32 %v980_v46, %v622_v5 }
 0x116   :  { %v1017_v6 = vpop.f32.mrb[16].mxu0  ;;  %v942_v20 = vpop.f32.mrb[21].mxu1 }
 0x117   :  { %v741_v9 = vadd.f32 %v1017_v6, %v676_v53  ;;  %v732_v10 = vpop.f32.mrb[17].mxu0  ;;  %v943_v23 = vadd.f32 %v942_v20, %v941_v12  ;;  %v944_v25 = vpop.f32.mrb[22].mxu1 }
 0x118   :  { %v733_v14 = vadd.f32 %v732_v10, %v668_v36  ;;  %v1018_v15 = vpop.f32.mrb[18].mxu0  ;;  %v945_v27 = vpop.f32.mrb[23].mxu1 }
 0x119   :  { %v813_v19 = vadd.f32 %v784_v51, %v741_v9  ;;  %v744_v21 = vadd.f32 %v1018_v15, %v679_v59  ;;  %v735_v22 = vpop.f32.mrb[19].mxu0  ;;  %v627_v28 = vadd.f32 %v1369_v11, %v943_v23  ;;  %v946_v29 = vadd.f32 %v945_v27, %v944_v25 }
 0x11a   :  { %v811_v24 = vadd.f32 %v774_v54, %v733_v14  ;;  %v736_v13 = vadd.f32 %v735_v22, %v671_v41 }
 0x11b   :  { %821 = vst [vmem:[%s1404_s5 + $0x10] sm:$0xff] %v813_v19  ;;  %v814_v18 = vadd.f32 %v789_v8, %v744_v21  ;;  %v630_v32 = vadd.f32 %v1371_v16, %v946_v29  ;;  %v692_v33 = vadd.f32 %v983_v57, %v627_v28 }
 0x11c   :  { %819 = vst [vmem:[%s1404_s5] sm:$0xff] %v811_v24  ;;  %v812_v30 = vadd.f32 %v779_v4, %v736_v13 }
 0x11d   :  { %822 = vst [vmem:[%s1404_s5 + $0x18] sm:$0xff] %v814_v18  ;;  %v695_v37 = vadd.f32 %v986_v0, %v630_v32 }
 0x11e   :  { %820 = vst [vmem:[%s1404_s5 + $0x8] sm:$0xff] %v812_v30  ;;  %v1021_v34 = vpop.f32.mrb[20].mxu0 }
 0x11f   :  { %v748_v11 = vpop.f32.mrb[21].mxu0  ;;  %v757_v35 = vadd.f32 %v1021_v34, %v692_v33 }
 0x120   :  { %v749_v36 = vadd.f32 %v748_v11, %v684_v7  ;;  %v1022_v38 = vpop.f32.mrb[22].mxu0 }
 0x121   :  { %v751_v40 = vpop.f32.mrb[23].mxu0  ;;  %v817_v41 = vadd.f32 %v804_v39, %v757_v35  ;;  %v760_v43 = vadd.f32 %v1022_v38, %v695_v37 }
 0x122   :  { %v815_v42 = vadd.f32 %v794_v26, %v749_v36  ;;  %v752_v44 = vadd.f32 %v751_v40, %v687_v17 }
 0x123   :  { %825 = vst [vmem:[%s1404_s5 + $0x30] sm:$0xff] %v817_v41  ;;  %v818_v16 = vadd.f32 %v809_v45, %v760_v43 }
 0x124   :  { %823 = vst [vmem:[%s1404_s5 + $0x20] sm:$0xff] %v815_v42  ;;  %v816_v46 = vadd.f32 %v799_v31, %v752_v44 }
 0x125   :  { %826 = vst [vmem:[%s1404_s5 + $0x38] sm:$0xff] %v818_v16 }
 0x126   :  { %824 = vst [vmem:[%s1404_s5 + $0x28] sm:$0xff] %v816_v46 }

// kernel: resnet_encoder_forward.26
= control target key start
LH: loop header
LB: loop body
LE: loop exit
PB: predicated region body
PF: predicated region fallthrough
CT: control target
= control target key end

     0   :  { %v958_v1 = vmov 0   ;;  %vm475_vm0 = vcmask 523264   ;;  %s1202_s1 = inlined_call_operand.vmem [shape: bf16[576,128], index: 1, kind: input, shape index: {}]   ;;  %s1203_s0 = inlined_call_operand.vmem [shape: bf16[64,576], index: 0, kind: input, shape index: {}]   ;;  %s1204_s2 = inlined_call_operand.vmem [shape: f32[64,1], index: 2, kind: input, shape index: {}]   ;;  %s1205_s3 = inlined_call_operand.vmem [shape: f32[64,128], index: 3, kind: output, shape index: {}]  }
   0x1   :  { %v894_v0 = vld [vmem:[%s1202_s1 + $0x40] sm:$0xff]   ;;  %892 = vset.pattern.permute.xlu0 %v958_v1  ;;  %893 = vset.pattern.permute.xlu1 %v958_v1  ;;  %v898_v5 = vld [vmem:[%s1202_s1 + $0x48] sm:$0xff]   ;;  %v902_v9 = vld [vmem:[%s1202_s1 + $0x50] sm:$0xff]  }
   0x2   :  { %v895_v2 = vld [vmem:[%s1202_s1 + $0xc0] sm:$0xff]   ;;  %779 = vmatprep.subr.bf16.mxu0 %v894_v0  ;;  %v899_v6 = vld [vmem:[%s1202_s1 + $0xc8] sm:$0xff]   ;;  %v903_v10 = vld [vmem:[%s1202_s1 + $0xd0] sm:$0xff]  }
   0x3   :  { %v896_v3 = vld [vmem:[%s1202_s1] sm:$0xff]   ;;  %819 = vmatprep.subr.bf16.mxu1 %v895_v2  ;;  %v900_v7 = vld [vmem:[%s1202_s1 + $0x8] sm:$0xff]   ;;  %v904_v11 = vld [vmem:[%s1202_s1 + $0x10] sm:$0xff]  }
   0x4   :  { %v897_v4 = vld [vmem:[%s1202_s1 + $0x80] sm:$0xff]   ;;  %780 = vmatpush3.bf16.msra.mxu0 %v896_v3  ;;  %v901_v8 = vld [vmem:[%s1202_s1 + $0x88] sm:$0xff]   ;;  %v905_v12 = vld [vmem:[%s1202_s1 + $0x90] sm:$0xff]  }
   0x5   :  { %820 = vmatpush3.bf16.msra.mxu1 %v897_v4  ;;  %781 = vmatprep.subr.bf16.mxu0 %v898_v5  ;;  %v906_v13 = vld [vmem:[%s1202_s1 + $0x58] sm:$0xff]   ;;  %v910_v17 = vld [vmem:[%s1202_s1 + $0x60] sm:$0xff]   ;;  %v914_v21 = vld [vmem:[%s1202_s1 + $0x68] sm:$0xff]  }
   0x6   :  { %821 = vmatprep.subr.bf16.mxu1 %v899_v6  ;;  %v907_v14 = vld [vmem:[%s1202_s1 + $0xd8] sm:$0xff]   ;;  %v911_v18 = vld [vmem:[%s1202_s1 + $0xe0] sm:$0xff]   ;;  %v915_v22 = vld [vmem:[%s1202_s1 + $0xe8] sm:$0xff]  }
   0x7   :  { %v908_v15 = vld [vmem:[%s1202_s1 + $0x18] sm:$0xff]   ;;  %v912_v19 = vld [vmem:[%s1202_s1 + $0x20] sm:$0xff]   ;;  %v916_v23 = vld [vmem:[%s1202_s1 + $0x28] sm:$0xff]  }
   0x8   :  { %782 = vmatpush3.bf16.msra.mxu0 %v900_v7  ;;  %v909_v16 = vld [vmem:[%s1202_s1 + $0x98] sm:$0xff]   ;;  %v913_v20 = vld [vmem:[%s1202_s1 + $0xa0] sm:$0xff]   ;;  %v917_v24 = vld [vmem:[%s1202_s1 + $0xa8] sm:$0xff]  }
   0x9   :  { %822 = vmatpush3.bf16.msra.mxu1 %v901_v8  ;;  %783 = vmatprep.subr.bf16.mxu0 %v902_v9  ;;  %v918_v25 = vld [vmem:[%s1202_s1 + $0x70] sm:$0xff]   ;;  %v922_v29 = vld [vmem:[%s1202_s1 + $0x78] sm:$0xff]   ;;  %v931_v36 = vld [vmem:[%s1203_s0 + $0xc] ss:$20 sps:$4 sm:$0xff]  }
   0xa   :  { %823 = vmatprep.subr.bf16.mxu1 %v903_v10  ;;  %v919_v26 = vld [vmem:[%s1202_s1 + $0xf0] sm:$0xff]   ;;  %v923_v30 = vld [vmem:[%s1202_s1 + $0xf8] sm:$0xff]   ;;  %v932_v37 = vld [vmem:[%s1202_s1 + $0x100] sm:$0xff]   ;;  %585 = vmatprep.mubr.bf16.mxu1 %v931_v36 }
   0xb   :  { %v920_v27 = vld [vmem:[%s1202_s1 + $0x30] sm:$0xff]   ;;  %v924_v31 = vld [vmem:[%s1202_s1 + $0x38] sm:$0xff]   ;;  %v933_v38 = vld [vmem:[%s1203_s0 + $0x2c] ss:$20 sps:$4 sm:$0xff]  }
   0xc   :  { %784 = vmatpush3.bf16.msra.mxu0 %v904_v11  ;;  %v921_v28 = vld [vmem:[%s1202_s1 + $0xb0] sm:$0xff]   ;;  %v925_v32 = vld [vmem:[%s1202_s1 + $0xb8] sm:$0xff]   ;;  %v939_v40 = vld [vmem:[%s1202_s1 + $0x108] sm:$0xff]  }
   0xd   :  { %824 = vmatpush3.bf16.msra.mxu1 %v905_v12  ;;  %785 = vmatprep.subr.bf16.mxu0 %v906_v13  ;;  %v926_v33 = vld [vmem:[%s1203_s0] ss:$20 sps:$4 sm:$0xff]   ;;  %v928_v34 = vld [vmem:[%s1203_s0 + $0x4] ss:$20 sps:$4 sm:$0xff]   ;;  %v929_v35 = vld [vmem:[%s1203_s0 + $0x8] ss:$20 sps:$4 sm:$0xff]  }
   0xe   :  { %825 = vmatprep.subr.bf16.mxu1 %v907_v14  ;;  %520 = vmatprep.mubr.bf16.mxu0 %v928_v34  ;;  %v935_v39 = vld [vmem:[%s1203_s0 + $0x34] ss:$20 sps:$4 sm:$0xff]   ;;  %v938_v42 = vld [vmem:[%s1203_s0 + $0x30] ss:$20 sps:$4 sm:$0xff]   ;;  %v953_v46 = vld [vmem:[%s1202_s1 + $0x118] sm:$0xff]  }
   0xf   :  { %v937_v41 = vld [vmem:[%s1203_s0 + $0x28] ss:$20 sps:$4 sm:$0xff]   ;;  %v946_v45 = vld [vmem:[%s1202_s1 + $0x110] sm:$0xff]   ;;  %v945_v48 = vld [vmem:[%s1203_s0 + $0x58] ss:$20 sps:$4 sm:$0xff]  }
  0x10   :  { %786 = vmatpush3.bf16.msra.mxu0 %v908_v15  ;;  %v940_v43 = vld [vmem:[%s1203_s0 + $0x54] ss:$20 sps:$4 sm:$0xff]   ;;  %v942_v44 = vld [vmem:[%s1203_s0 + $0x5c] ss:$20 sps:$4 sm:$0xff]   ;;  %v949_v50 = vld [vmem:[%s1203_s0 + $0x84] ss:$20 sps:$4 sm:$0xff]  }
  0x11   :  { %826 = vmatpush3.bf16.msra.mxu1 %v909_v16  ;;  %787 = vmatprep.subr.bf16.mxu0 %v910_v17  ;;  %v944_v47 = vld [vmem:[%s1203_s0 + $0x50] ss:$20 sps:$4 sm:$0xff]   ;;  %v112_v53 = vld [vmem:[%s1204_s2 + $0x8] sm:$0xff]  ;;  %v114_v54 = vld [vmem:[%s1204_s2 + $0x18] sm:$0xff] }
  0x12   :  { %827 = vmatprep.subr.bf16.mxu1 %v911_v18  ;;  %v947_v49 = vld [vmem:[%s1203_s0 + $0x7c] ss:$20 sps:$4 sm:$0xff]   ;;  %v111_v51 = vld [vmem:[%s1204_s2] sm:$0xff]  ;;  %v951_v55 = vld [vmem:[%s1203_s0 + $0x78] ss:$20 sps:$4 sm:$0xff]  }
  0x13   :  { %v113_v52 = vld [vmem:[%s1204_s2 + $0x10] sm:$0xff]  ;;  %121 = vperm.xlu0 %892, %v111_v51   ;;  %v115_v58 = vld [vmem:[%s1204_s2 + $0x20] sm:$0xff]  ;;  %v116_v60 = vld [vmem:[%s1204_s2 + $0x28] sm:$0xff] }
  0x14   :  { %788 = vmatpush3.bf16.msra.mxu0 %v912_v19  ;;  %131 = vperm.xlu1 %893, %v113_v52   ;;  %v952_v56 = vld [vmem:[%s1203_s0 + $0x80] ss:$20 sps:$4 sm:$0xff]   ;;  %v954_v57 = vld [vmem:[%s1203_s0 + $0x10] ss:$20 sps:$4 sm:$0xff]   ;;  %v118_v62 = vld [vmem:[%s1204_s2 + $0x38] sm:$0xff] }
  0x15   :  { %828 = vmatpush3.bf16.msra.mxu1 %v913_v20  ;;  %789 = vmatprep.subr.bf16.mxu0 %v914_v21  ;;  %v955_v59 = vld [vmem:[%s1203_s0 + $0x60] ss:$20 sps:$4 sm:$0xff]   ;;  %v956_v63 = vld [vmem:[%s1203_s0 + $0x38] ss:$20 sps:$4 sm:$0xff]   ;;  %v957_v0 = vld [vmem:[%s1203_s0 + $0x88] ss:$20 sps:$4 sm:$0xff]  }
  0x16   :  { %829 = vmatprep.subr.bf16.mxu1 %v915_v22  ;;  %v117_v61 = vld [vmem:[%s1204_s2 + $0x30] sm:$0xff] }
  0x17   :  { %126 = vperm.xlu0 %892, %v112_v53  }
  0x18   :  { %790 = vmatpush3.bf16.msra.mxu0 %v916_v23  ;;  %136 = vperm.xlu1 %893, %v114_v54  }
  0x19   :  { %830 = vmatpush3.bf16.msra.mxu1 %v917_v24  ;;  %791 = vmatprep.subr.bf16.mxu0 %v918_v25 }
  0x1a   :  { %831 = vmatprep.subr.bf16.mxu1 %v919_v26 }
  0x1b   :  { %141 = vperm.xlu0 %892, %v115_v58  }
  0x1c   :  { %792 = vmatpush3.bf16.msra.mxu0 %v920_v27  ;;  %146 = vperm.xlu1 %893, %v116_v60  }
  0x1d   :  { %832 = vmatpush3.bf16.msra.mxu1 %v921_v28  ;;  %793 = vmatprep.subr.bf16.mxu0 %v922_v29 }
  0x1e   :  { %833 = vmatprep.subr.bf16.mxu1 %v923_v30 }
  0x1f   :  { %151 = vperm.xlu0 %892, %v117_v61  }
  0x20   :  { %794 = vmatpush3.bf16.msra.mxu0 %v924_v31  ;;  %156 = vperm.xlu1 %893, %v118_v62  }
  0x21   :  { %834 = vmatpush3.bf16.msra.mxu1 %v925_v32  ;;  %867 = vmatprep.subr.bf16.mxu0 %v932_v37 }
  0x22   :  { %883 = vmatprep.subr.bf16.mxu1 %v932_v37 }
  0x23   :  { %521 = vmatmul.mubr.bf16.vlgmr.msra.gmra.mrb[0].mxu0 %v926_v33 }
  0x24   :  { %586 = vmatmul.mubr.bf16.vlgmr.msra.gmra.mrb[0].mxu1 %v929_v35  ;;  %868 = vmatpush3.bf16.msra.mxu0 %v932_v37 }
  0x25   :  { %887 = vmatpush3.bf16.msra.mxu1 %v932_v37  ;;  %528 = vmatprep.mubr.bf16.mxu0 %v933_v38 }
  0x26   :  { %593 = vmatprep.mubr.bf16.mxu1 %v935_v39  ;;  %869 = vmatprep.subr.bf16.mxu0 %v939_v40 }
  0x27   :  { %884 = vmatprep.subr.bf16.mxu1 %v939_v40 }
  0x28   :  { %870 = vmatpush3.bf16.msra.mxu0 %v939_v40 }
  0x29   :  { %888 = vmatpush3.bf16.msra.mxu1 %v939_v40  ;;  %871 = vmatprep.subr.bf16.mxu0 %v946_v45 }
  0x2a   :  { %885 = vmatprep.subr.bf16.mxu1 %v946_v45 }
  0x2b   :  { %529 = vmatmul.mubr.bf16.gmra.mrb[4].mxu0 %v937_v41 }
  0x2c   :  { %594 = vmatmul.mubr.bf16.gmra.mrb[4].mxu1 %v938_v42  ;;  %536 = vmatprep.mubr.bf16.mxu0 %v940_v43 }
  0x2d   :  { %601 = vmatprep.mubr.bf16.mxu1 %v942_v44  ;;  %872 = vmatpush3.bf16.msra.mxu0 %v946_v45 }
  0x2e   :  { %889 = vmatpush3.bf16.msra.mxu1 %v946_v45  ;;  %873 = vmatprep.subr.bf16.mxu0 %v953_v46 }
  0x2f   :  { %886 = vmatprep.subr.bf16.mxu1 %v953_v46 }
  0x31   :  { %874 = vmatpush3.bf16.msra.mxu0 %v953_v46 }
  0x32   :  { %890 = vmatpush3.bf16.msra.mxu1 %v953_v46 }
  0x33   :  { %537 = vmatmul.mubr.bf16.gmra.mrb[8].mxu0 %v944_v47 }
  0x34   :  { %602 = vmatmul.mubr.bf16.gmra.mrb[8].mxu1 %v945_v48  ;;  %544 = vmatprep.mubr.bf16.mxu0 %v947_v49 }
  0x35   :  { %609 = vmatprep.mubr.bf16.mxu1 %v949_v50 }
  0x3b   :  { %545 = vmatmul.mubr.bf16.gmra.mrb[12].mxu0 %v951_v55 }
  0x3c   :  { %610 = vmatmul.mubr.bf16.gmra.mrb[12].mxu1 %v952_v56  ;;  %875 = vmatprep.mubr.msk.bf16.mxu0 %vm475_vm0, %v954_v57 }
  0x3d   :  { %879 = vmatprep.mubr.msk.bf16.mxu1 %vm475_vm0, %v955_v59 }
  0x43   :  { %876 = vmatmul.mubr.msk.bf16.vlgmr.msra.gmra.mrb[16].mxu0 %vm475_vm0, %v956_v63 }
  0x44   :  { %880 = vmatmul.mubr.msk.bf16.vlgmr.msra.gmra.mrb[16].mxu1 %vm475_vm0, %v957_v0 }
  0x92   :  { %v122_v1 = vpop.permute.xlu0 %121 }
  0x93   :  { %v132_v18 = vpop.permute.xlu1 %131 }
  0x96   :  { %v127_v3 = vpop.permute.xlu0 %126 }
  0x97   :  { %v137_v33 = vpop.permute.xlu1 %136 }
  0x9a   :  { %v142_v36 = vpop.permute.xlu0 %141 }
  0x9b   :  { %v147_v50 = vpop.permute.xlu1 %146 }
  0x9e   :  { %v152_v54 = vpop.permute.xlu0 %151 }
  0xf6   :  { %v795_v2 = vpop.f32.mrb[0].mxu0 }
  0xf7   :  { %v835_v4 = vpop.f32.mrb[0].mxu1  ;;  %v796_v5 = vpop.f32.mrb[1].mxu0 }
  0xf8   :  { %v797_v6 = vadd.f32 %v796_v5, %v795_v2  ;;  %v836_v7 = vpop.f32.mrb[1].mxu1  ;;  %v798_v8 = vpop.f32.mrb[2].mxu0 }
  0xf9   :  { %v837_v9 = vadd.f32 %v836_v7, %v835_v4  ;;  %v838_v10 = vpop.f32.mrb[2].mxu1  ;;  %v799_v11 = vpop.f32.mrb[3].mxu0 }
  0xfa   :  { %v523_v12 = vadd.f32 %v797_v6, %v122_v1  ;;  %v800_v13 = vadd.f32 %v799_v11, %v798_v8  ;;  %v839_v14 = vpop.f32.mrb[3].mxu1  ;;  %v157_v4 = vpop.permute.xlu1 %156 }
  0xfb   :  { %v840_v15 = vadd.f32 %v839_v14, %v838_v10 }
  0xfc   :  { %v526_v16 = vadd.f32 %v800_v13, %v127_v3  ;;  %v588_v17 = vadd.f32 %v837_v9, %v523_v12 }
  0xfe   :  { %v801_v19 = vpop.f32.mrb[4].mxu0  ;;  %v1175_v20 = vadd.f32 %v840_v15, %v526_v16 }
  0xff   :  { %v841_v21 = vpop.f32.mrb[4].mxu1  ;;  %v802_v22 = vpop.f32.mrb[5].mxu0 }
 0x100   :  { %v803_v23 = vadd.f32 %v802_v22, %v801_v19  ;;  %v842_v24 = vpop.f32.mrb[5].mxu1  ;;  %v804_v25 = vpop.f32.mrb[6].mxu0 }
 0x101   :  { %v843_v26 = vadd.f32 %v842_v24, %v841_v21  ;;  %v844_v27 = vpop.f32.mrb[6].mxu1  ;;  %v805_v28 = vpop.f32.mrb[7].mxu0 }
 0x102   :  { %v531_v29 = vadd.f32 %v803_v23, %v132_v18  ;;  %v806_v30 = vadd.f32 %v805_v28, %v804_v25  ;;  %v845_v31 = vpop.f32.mrb[7].mxu1 }
 0x103   :  { %v846_v32 = vadd.f32 %v845_v31, %v844_v27 }
 0x104   :  { %v534_v34 = vadd.f32 %v806_v30, %v137_v33  ;;  %v596_v35 = vadd.f32 %v843_v26, %v531_v29 }
 0x106   :  { %v807_v37 = vpop.f32.mrb[8].mxu0  ;;  %v599_v38 = vadd.f32 %v846_v32, %v534_v34 }
 0x107   :  { %v847_v39 = vpop.f32.mrb[8].mxu1  ;;  %v808_v40 = vpop.f32.mrb[9].mxu0 }
 0x108   :  { %v809_v41 = vadd.f32 %v808_v40, %v807_v37  ;;  %v848_v42 = vpop.f32.mrb[9].mxu1  ;;  %v810_v43 = vpop.f32.mrb[10].mxu0 }
 0x109   :  { %v849_v44 = vadd.f32 %v848_v42, %v847_v39  ;;  %v850_v45 = vpop.f32.mrb[10].mxu1  ;;  %v811_v46 = vpop.f32.mrb[11].mxu0 }
 0x10a   :  { %v539_v47 = vadd.f32 %v809_v41, %v142_v36  ;;  %v812_v48 = vadd.f32 %v811_v46, %v810_v43  ;;  %v851_v49 = vpop.f32.mrb[11].mxu1 }
 0x10b   :  { %v852_v51 = vadd.f32 %v851_v49, %v850_v45 }
 0x10c   :  { %v542_v52 = vadd.f32 %v812_v48, %v147_v50  ;;  %v604_v53 = vadd.f32 %v849_v44, %v539_v47 }
 0x10e   :  { %v813_v55 = vpop.f32.mrb[12].mxu0  ;;  %v607_v56 = vadd.f32 %v852_v51, %v542_v52 }
 0x10f   :  { %v853_v57 = vpop.f32.mrb[12].mxu1  ;;  %v814_v58 = vpop.f32.mrb[13].mxu0 }
 0x110   :  { %v815_v59 = vadd.f32 %v814_v58, %v813_v55  ;;  %v854_v60 = vpop.f32.mrb[13].mxu1  ;;  %v816_v61 = vpop.f32.mrb[14].mxu0 }
 0x111   :  { %v855_v62 = vadd.f32 %v854_v60, %v853_v57  ;;  %v856_v63 = vpop.f32.mrb[14].mxu1  ;;  %v817_v0 = vpop.f32.mrb[15].mxu0 }
 0x112   :  { %v547_v1 = vadd.f32 %v815_v59, %v152_v54  ;;  %v818_v2 = vadd.f32 %v817_v0, %v816_v61  ;;  %v857_v3 = vpop.f32.mrb[15].mxu1 }
 0x113   :  { %v858_v5 = vadd.f32 %v857_v3, %v856_v63 }
 0x114   :  { %v550_v6 = vadd.f32 %v818_v2, %v157_v4  ;;  %v612_v7 = vadd.f32 %v855_v62, %v547_v1 }
 0x116   :  { %v877_v8 = vpop.f32.mrb[16].mxu0  ;;  %v615_v9 = vadd.f32 %v858_v5, %v550_v6 }
 0x117   :  { %v661_v10 = vadd.f32 %v877_v8, %v596_v35  ;;  %v881_v11 = vpop.f32.mrb[16].mxu1  ;;  %v652_v12 = vpop.f32.mrb[17].mxu0 }
 0x118   :  { %v677_v13 = vadd.f32 %v881_v11, %v612_v7  ;;  %v653_v14 = vadd.f32 %v652_v12, %v588_v17  ;;  %v668_v15 = vpop.f32.mrb[17].mxu1  ;;  %v878_v16 = vpop.f32.mrb[18].mxu0 }
 0x119   :  { %vm685_vm1 = vcmp.ge.f32.partialorder %v661_v10, 0.0  ;;  %v693_v18 = vmul.f32 0.1, %v661_v10  ;;  %v669_v19 = vadd.f32 %v668_v15, %v604_v53  ;;  %v664_v21 = vadd.f32 %v878_v16, %v599_v38  ;;  %v882_v22 = vpop.f32.mrb[18].mxu1  ;;  %v655_v23 = vpop.f32.mrb[19].mxu0 }
 0x11a   :  { %vm689_vm2 = vcmp.ge.f32.partialorder %v677_v13, 0.0  ;;  %v697_v24 = vmul.f32 0.1, %v677_v13  ;;  %vm683_vm3 = vcmp.ge.f32.partialorder %v653_v14, 0.0  ;;  %v691_v25 = vmul.f32 0.1, %v653_v14 }
 0x11b   :  { %v701_v26 = vsel %vm685_vm1, %v661_v10, %v693_v18  ;;  %vm687_vm4 = vcmp.ge.f32.partialorder %v669_v19, 0.0  ;;  %v695_v27 = vmul.f32 0.1, %v669_v19  ;;  %vm686_vm5 = vcmp.ge.f32.partialorder %v664_v21, 0.0  ;;  %v671_v28 = vpop.f32.mrb[19].mxu1 }
 0x11c   :  { %709 = vst [vmem:[%s1205_s3 + $0x10] sm:$0xff] %v701_v26  ;;  %v705_v17 = vsel %vm689_vm2, %v677_v13, %v697_v24  ;;  %v699_v29 = vsel %vm683_vm3, %v653_v14, %v691_v25  ;;  %v694_v30 = vmul.f32 0.1, %v664_v21  ;;  %v680_v31 = vadd.f32 %v882_v22, %v615_v9 }
 0x11d   :  { %713 = vst [vmem:[%s1205_s3 + $0x30] sm:$0xff] %v705_v17  ;;  %707 = vst [vmem:[%s1205_s3] sm:$0xff] %v699_v29  ;;  %v703_v32 = vsel %vm687_vm4, %v669_v19, %v695_v27  ;;  %v656_v33 = vadd.f32 %v655_v23, %v1175_v20  ;;  %v672_v34 = vadd.f32 %v671_v28, %v607_v56 }
 0x11e   :  { %711 = vst [vmem:[%s1205_s3 + $0x20] sm:$0xff] %v703_v32  ;;  %v702_v35 = vsel %vm686_vm5, %v664_v21, %v694_v30  ;;  %vm690_vm6 = vcmp.ge.f32.partialorder %v680_v31, 0.0  ;;  %v698_v36 = vmul.f32 0.1, %v680_v31 }
 0x11f   :  { %710 = vst [vmem:[%s1205_s3 + $0x18] sm:$0xff] %v702_v35  ;;  %vm684_vm7 = vcmp.ge.f32.partialorder %v656_v33, 0.0  ;;  %v692_v37 = vmul.f32 0.1, %v656_v33  ;;  %vm688_vm8 = vcmp.ge.f32.partialorder %v672_v34, 0.0 }
 0x120   :  { %v696_v38 = vmul.f32 0.1, %v672_v34  ;;  %v706_v39 = vsel %vm690_vm6, %v680_v31, %v698_v36 }
 0x121   :  { %714 = vst [vmem:[%s1205_s3 + $0x38] sm:$0xff] %v706_v39  ;;  %v700_v20 = vsel %vm684_vm7, %v656_v33, %v692_v37 }
 0x122   :  { %v704_v40 = vsel %vm688_vm8, %v672_v34, %v696_v38  ;;  %708 = vst [vmem:[%s1205_s3 + $0x8] sm:$0xff] %v700_v20 }
 0x123   :  { %712 = vst [vmem:[%s1205_s3 + $0x28] sm:$0xff] %v704_v40 }

// kernel: resnet_encoder_forward.27
= control target key start
LH: loop header
LB: loop body
LE: loop exit
PB: predicated region body
PF: predicated region fallthrough
CT: control target
= control target key end

     0   :  { %v953_v1 = vmov 0   ;;  %vm478_vm0 = vcmask 523264   ;;  %s1229_s1 = inlined_call_operand.vmem [shape: bf16[576,128], index: 1, kind: input, shape index: {}]   ;;  %s1230_s0 = inlined_call_operand.vmem [shape: bf16[64,576], index: 0, kind: input, shape index: {}]   ;;  %s1231_s2 = inlined_call_operand.vmem [shape: f32[64,1], index: 2, kind: input, shape index: {}]   ;;  %s1232_s3 = inlined_call_operand.vmem [shape: f32[64,128], index: 3, kind: input, shape index: {}]   ;;  %s1233_s4 = inlined_call_operand.vmem [shape: f32[64,128], index: 4, kind: output, shape index: {}]  }
   0x1   :  { %v889_v0 = vld [vmem:[%s1229_s1 + $0x40] sm:$0xff]   ;;  %887 = vset.pattern.permute.xlu0 %v953_v1  ;;  %888 = vset.pattern.permute.xlu1 %v953_v1  ;;  %v893_v5 = vld [vmem:[%s1229_s1 + $0x48] sm:$0xff]   ;;  %v897_v9 = vld [vmem:[%s1229_s1 + $0x50] sm:$0xff]  }
   0x2   :  { %v890_v2 = vld [vmem:[%s1229_s1 + $0xc0] sm:$0xff]   ;;  %774 = vmatprep.subr.bf16.mxu0 %v889_v0  ;;  %v894_v6 = vld [vmem:[%s1229_s1 + $0xc8] sm:$0xff]   ;;  %v898_v10 = vld [vmem:[%s1229_s1 + $0xd0] sm:$0xff]  }
   0x3   :  { %v891_v3 = vld [vmem:[%s1229_s1] sm:$0xff]   ;;  %814 = vmatprep.subr.bf16.mxu1 %v890_v2  ;;  %v895_v7 = vld [vmem:[%s1229_s1 + $0x8] sm:$0xff]   ;;  %v899_v11 = vld [vmem:[%s1229_s1 + $0x10] sm:$0xff]  }
   0x4   :  { %v892_v4 = vld [vmem:[%s1229_s1 + $0x80] sm:$0xff]   ;;  %775 = vmatpush3.bf16.msra.mxu0 %v891_v3  ;;  %v896_v8 = vld [vmem:[%s1229_s1 + $0x88] sm:$0xff]   ;;  %v900_v12 = vld [vmem:[%s1229_s1 + $0x90] sm:$0xff]  }
   0x5   :  { %815 = vmatpush3.bf16.msra.mxu1 %v892_v4  ;;  %776 = vmatprep.subr.bf16.mxu0 %v893_v5  ;;  %v901_v13 = vld [vmem:[%s1229_s1 + $0x58] sm:$0xff]   ;;  %v905_v17 = vld [vmem:[%s1229_s1 + $0x60] sm:$0xff]   ;;  %v909_v21 = vld [vmem:[%s1229_s1 + $0x68] sm:$0xff]  }
   0x6   :  { %816 = vmatprep.subr.bf16.mxu1 %v894_v6  ;;  %v902_v14 = vld [vmem:[%s1229_s1 + $0xd8] sm:$0xff]   ;;  %v906_v18 = vld [vmem:[%s1229_s1 + $0xe0] sm:$0xff]   ;;  %v910_v22 = vld [vmem:[%s1229_s1 + $0xe8] sm:$0xff]  }
   0x7   :  { %v903_v15 = vld [vmem:[%s1229_s1 + $0x18] sm:$0xff]   ;;  %v907_v19 = vld [vmem:[%s1229_s1 + $0x20] sm:$0xff]   ;;  %v911_v23 = vld [vmem:[%s1229_s1 + $0x28] sm:$0xff]  }
   0x8   :  { %777 = vmatpush3.bf16.msra.mxu0 %v895_v7  ;;  %v904_v16 = vld [vmem:[%s1229_s1 + $0x98] sm:$0xff]   ;;  %v908_v20 = vld [vmem:[%s1229_s1 + $0xa0] sm:$0xff]   ;;  %v912_v24 = vld [vmem:[%s1229_s1 + $0xa8] sm:$0xff]  }
   0x9   :  { %817 = vmatpush3.bf16.msra.mxu1 %v896_v8  ;;  %778 = vmatprep.subr.bf16.mxu0 %v897_v9  ;;  %v913_v25 = vld [vmem:[%s1229_s1 + $0x70] sm:$0xff]   ;;  %v917_v29 = vld [vmem:[%s1229_s1 + $0x78] sm:$0xff]   ;;  %v926_v36 = vld [vmem:[%s1230_s0 + $0xc] ss:$20 sps:$4 sm:$0xff]  }
   0xa   :  { %818 = vmatprep.subr.bf16.mxu1 %v898_v10  ;;  %v914_v26 = vld [vmem:[%s1229_s1 + $0xf0] sm:$0xff]   ;;  %v918_v30 = vld [vmem:[%s1229_s1 + $0xf8] sm:$0xff]   ;;  %v927_v37 = vld [vmem:[%s1229_s1 + $0x100] sm:$0xff]   ;;  %588 = vmatprep.mubr.bf16.mxu1 %v926_v36 }
   0xb   :  { %v915_v27 = vld [vmem:[%s1229_s1 + $0x30] sm:$0xff]   ;;  %v919_v31 = vld [vmem:[%s1229_s1 + $0x38] sm:$0xff]   ;;  %v928_v38 = vld [vmem:[%s1230_s0 + $0x2c] ss:$20 sps:$4 sm:$0xff]  }
   0xc   :  { %779 = vmatpush3.bf16.msra.mxu0 %v899_v11  ;;  %v916_v28 = vld [vmem:[%s1229_s1 + $0xb0] sm:$0xff]   ;;  %v920_v32 = vld [vmem:[%s1229_s1 + $0xb8] sm:$0xff]   ;;  %v934_v40 = vld [vmem:[%s1229_s1 + $0x108] sm:$0xff]  }
   0xd   :  { %819 = vmatpush3.bf16.msra.mxu1 %v900_v12  ;;  %780 = vmatprep.subr.bf16.mxu0 %v901_v13  ;;  %v921_v33 = vld [vmem:[%s1230_s0] ss:$20 sps:$4 sm:$0xff]   ;;  %v923_v34 = vld [vmem:[%s1230_s0 + $0x4] ss:$20 sps:$4 sm:$0xff]   ;;  %v924_v35 = vld [vmem:[%s1230_s0 + $0x8] ss:$20 sps:$4 sm:$0xff]  }
   0xe   :  { %820 = vmatprep.subr.bf16.mxu1 %v902_v14  ;;  %523 = vmatprep.mubr.bf16.mxu0 %v923_v34  ;;  %v930_v39 = vld [vmem:[%s1230_s0 + $0x34] ss:$20 sps:$4 sm:$0xff]   ;;  %v933_v42 = vld [vmem:[%s1230_s0 + $0x30] ss:$20 sps:$4 sm:$0xff]   ;;  %v948_v46 = vld [vmem:[%s1229_s1 + $0x118] sm:$0xff]  }
   0xf   :  { %v932_v41 = vld [vmem:[%s1230_s0 + $0x28] ss:$20 sps:$4 sm:$0xff]   ;;  %v941_v45 = vld [vmem:[%s1229_s1 + $0x110] sm:$0xff]   ;;  %v940_v48 = vld [vmem:[%s1230_s0 + $0x58] ss:$20 sps:$4 sm:$0xff]  }
  0x10   :  { %781 = vmatpush3.bf16.msra.mxu0 %v903_v15  ;;  %v935_v43 = vld [vmem:[%s1230_s0 + $0x54] ss:$20 sps:$4 sm:$0xff]   ;;  %v937_v44 = vld [vmem:[%s1230_s0 + $0x5c] ss:$20 sps:$4 sm:$0xff]   ;;  %v944_v50 = vld [vmem:[%s1230_s0 + $0x84] ss:$20 sps:$4 sm:$0xff]  }
  0x11   :  { %821 = vmatpush3.bf16.msra.mxu1 %v904_v16  ;;  %782 = vmatprep.subr.bf16.mxu0 %v905_v17  ;;  %v939_v47 = vld [vmem:[%s1230_s0 + $0x50] ss:$20 sps:$4 sm:$0xff]   ;;  %v115_v53 = vld [vmem:[%s1231_s2 + $0x8] sm:$0xff]  ;;  %v117_v54 = vld [vmem:[%s1231_s2 + $0x18] sm:$0xff] }
  0x12   :  { %822 = vmatprep.subr.bf16.mxu1 %v906_v18  ;;  %v942_v49 = vld [vmem:[%s1230_s0 + $0x7c] ss:$20 sps:$4 sm:$0xff]   ;;  %v114_v51 = vld [vmem:[%s1231_s2] sm:$0xff]  ;;  %v946_v55 = vld [vmem:[%s1230_s0 + $0x78] ss:$20 sps:$4 sm:$0xff]  }
  0x13   :  { %v116_v52 = vld [vmem:[%s1231_s2 + $0x10] sm:$0xff]  ;;  %124 = vperm.xlu0 %887, %v114_v51   ;;  %v118_v58 = vld [vmem:[%s1231_s2 + $0x20] sm:$0xff]  ;;  %v119_v60 = vld [vmem:[%s1231_s2 + $0x28] sm:$0xff] }
  0x14   :  { %783 = vmatpush3.bf16.msra.mxu0 %v907_v19  ;;  %134 = vperm.xlu1 %888, %v116_v52   ;;  %v947_v56 = vld [vmem:[%s1230_s0 + $0x80] ss:$20 sps:$4 sm:$0xff]   ;;  %v949_v57 = vld [vmem:[%s1230_s0 + $0x10] ss:$20 sps:$4 sm:$0xff]   ;;  %v121_v62 = vld [vmem:[%s1231_s2 + $0x38] sm:$0xff] }
  0x15   :  { %823 = vmatpush3.bf16.msra.mxu1 %v908_v20  ;;  %784 = vmatprep.subr.bf16.mxu0 %v909_v21  ;;  %v950_v59 = vld [vmem:[%s1230_s0 + $0x60] ss:$20 sps:$4 sm:$0xff]   ;;  %v951_v63 = vld [vmem:[%s1230_s0 + $0x38] ss:$20 sps:$4 sm:$0xff]   ;;  %v952_v0 = vld [vmem:[%s1230_s0 + $0x88] ss:$20 sps:$4 sm:$0xff]  }
  0x16   :  { %824 = vmatprep.subr.bf16.mxu1 %v910_v22  ;;  %v120_v61 = vld [vmem:[%s1231_s2 + $0x30] sm:$0xff] }
  0x17   :  { %129 = vperm.xlu0 %887, %v115_v53  }
  0x18   :  { %785 = vmatpush3.bf16.msra.mxu0 %v911_v23  ;;  %139 = vperm.xlu1 %888, %v117_v54  }
  0x19   :  { %825 = vmatpush3.bf16.msra.mxu1 %v912_v24  ;;  %786 = vmatprep.subr.bf16.mxu0 %v913_v25 }
  0x1a   :  { %826 = vmatprep.subr.bf16.mxu1 %v914_v26 }
  0x1b   :  { %144 = vperm.xlu0 %887, %v118_v58  }
  0x1c   :  { %787 = vmatpush3.bf16.msra.mxu0 %v915_v27  ;;  %149 = vperm.xlu1 %888, %v119_v60  }
  0x1d   :  { %827 = vmatpush3.bf16.msra.mxu1 %v916_v28  ;;  %788 = vmatprep.subr.bf16.mxu0 %v917_v29 }
  0x1e   :  { %828 = vmatprep.subr.bf16.mxu1 %v918_v30 }
  0x1f   :  { %154 = vperm.xlu0 %887, %v120_v61  }
  0x20   :  { %789 = vmatpush3.bf16.msra.mxu0 %v919_v31  ;;  %159 = vperm.xlu1 %888, %v121_v62  }
  0x21   :  { %829 = vmatpush3.bf16.msra.mxu1 %v920_v32  ;;  %862 = vmatprep.subr.bf16.mxu0 %v927_v37 }
  0x22   :  { %878 = vmatprep.subr.bf16.mxu1 %v927_v37 }
  0x23   :  { %524 = vmatmul.mubr.bf16.vlgmr.msra.gmra.mrb[0].mxu0 %v921_v33 }
  0x24   :  { %589 = vmatmul.mubr.bf16.vlgmr.msra.gmra.mrb[0].mxu1 %v924_v35  ;;  %863 = vmatpush3.bf16.msra.mxu0 %v927_v37 }
  0x25   :  { %882 = vmatpush3.bf16.msra.mxu1 %v927_v37  ;;  %531 = vmatprep.mubr.bf16.mxu0 %v928_v38 }
  0x26   :  { %596 = vmatprep.mubr.bf16.mxu1 %v930_v39  ;;  %864 = vmatprep.subr.bf16.mxu0 %v934_v40 }
  0x27   :  { %879 = vmatprep.subr.bf16.mxu1 %v934_v40 }
  0x28   :  { %865 = vmatpush3.bf16.msra.mxu0 %v934_v40 }
  0x29   :  { %883 = vmatpush3.bf16.msra.mxu1 %v934_v40  ;;  %866 = vmatprep.subr.bf16.mxu0 %v941_v45 }
  0x2a   :  { %880 = vmatprep.subr.bf16.mxu1 %v941_v45 }
  0x2b   :  { %532 = vmatmul.mubr.bf16.gmra.mrb[4].mxu0 %v932_v41 }
  0x2c   :  { %597 = vmatmul.mubr.bf16.gmra.mrb[4].mxu1 %v933_v42  ;;  %539 = vmatprep.mubr.bf16.mxu0 %v935_v43 }
  0x2d   :  { %604 = vmatprep.mubr.bf16.mxu1 %v937_v44  ;;  %867 = vmatpush3.bf16.msra.mxu0 %v941_v45 }
  0x2e   :  { %884 = vmatpush3.bf16.msra.mxu1 %v941_v45  ;;  %868 = vmatprep.subr.bf16.mxu0 %v948_v46 }
  0x2f   :  { %881 = vmatprep.subr.bf16.mxu1 %v948_v46 }
  0x31   :  { %869 = vmatpush3.bf16.msra.mxu0 %v948_v46 }
  0x32   :  { %885 = vmatpush3.bf16.msra.mxu1 %v948_v46 }
  0x33   :  { %540 = vmatmul.mubr.bf16.gmra.mrb[8].mxu0 %v939_v47 }
  0x34   :  { %605 = vmatmul.mubr.bf16.gmra.mrb[8].mxu1 %v940_v48  ;;  %547 = vmatprep.mubr.bf16.mxu0 %v942_v49 }
  0x35   :  { %612 = vmatprep.mubr.bf16.mxu1 %v944_v50 }
  0x3b   :  { %548 = vmatmul.mubr.bf16.gmra.mrb[12].mxu0 %v946_v55 }
  0x3c   :  { %613 = vmatmul.mubr.bf16.gmra.mrb[12].mxu1 %v947_v56  ;;  %870 = vmatprep.mubr.msk.bf16.mxu0 %vm478_vm0, %v949_v57 }
  0x3d   :  { %874 = vmatprep.mubr.msk.bf16.mxu1 %vm478_vm0, %v950_v59 }
  0x43   :  { %871 = vmatmul.mubr.msk.bf16.vlgmr.msra.gmra.mrb[16].mxu0 %vm478_vm0, %v951_v63 }
  0x44   :  { %875 = vmatmul.mubr.msk.bf16.vlgmr.msra.gmra.mrb[16].mxu1 %vm478_vm0, %v952_v0 }
  0x92   :  { %v125_v1 = vpop.permute.xlu0 %124 }
  0x93   :  { %v135_v18 = vpop.permute.xlu1 %134 }
  0x96   :  { %v130_v3 = vpop.permute.xlu0 %129 }
  0x97   :  { %v140_v33 = vpop.permute.xlu1 %139 }
  0x9a   :  { %v145_v36 = vpop.permute.xlu0 %144 }
  0x9b   :  { %v150_v50 = vpop.permute.xlu1 %149 }
  0x9e   :  { %v155_v54 = vpop.permute.xlu0 %154 }
  0xf6   :  { %v790_v2 = vpop.f32.mrb[0].mxu0 }
  0xf7   :  { %v830_v4 = vpop.f32.mrb[0].mxu1  ;;  %v791_v5 = vpop.f32.mrb[1].mxu0 }
  0xf8   :  { %v792_v6 = vadd.f32 %v791_v5, %v790_v2  ;;  %v831_v7 = vpop.f32.mrb[1].mxu1  ;;  %v793_v8 = vpop.f32.mrb[2].mxu0 }
  0xf9   :  { %v832_v9 = vadd.f32 %v831_v7, %v830_v4  ;;  %v833_v10 = vpop.f32.mrb[2].mxu1  ;;  %v794_v11 = vpop.f32.mrb[3].mxu0 }
  0xfa   :  { %v526_v12 = vadd.f32 %v792_v6, %v125_v1  ;;  %v795_v13 = vadd.f32 %v794_v11, %v793_v8  ;;  %v834_v14 = vpop.f32.mrb[3].mxu1  ;;  %v160_v4 = vpop.permute.xlu1 %159 }
  0xfb   :  { %v835_v15 = vadd.f32 %v834_v14, %v833_v10 }
  0xfc   :  { %v529_v16 = vadd.f32 %v795_v13, %v130_v3  ;;  %v1175_v17 = vadd.f32 %v832_v9, %v526_v12  ;;  %v688_v9 = vld [vmem:[%s1232_s3 + $0x10] sm:$0xff] }
  0xfd   :  { %v692_v13 = vld [vmem:[%s1232_s3 + $0x30] sm:$0xff] }
  0xfe   :  { %v796_v19 = vpop.f32.mrb[4].mxu0  ;;  %v1177_v20 = vadd.f32 %v835_v15, %v529_v16  ;;  %v686_v15 = vld [vmem:[%s1232_s3] sm:$0xff] }
  0xff   :  { %v836_v21 = vpop.f32.mrb[4].mxu1  ;;  %v797_v22 = vpop.f32.mrb[5].mxu0 }
 0x100   :  { %v798_v23 = vadd.f32 %v797_v22, %v796_v19  ;;  %v837_v24 = vpop.f32.mrb[5].mxu1  ;;  %v799_v25 = vpop.f32.mrb[6].mxu0 }
 0x101   :  { %v838_v26 = vadd.f32 %v837_v24, %v836_v21  ;;  %v839_v27 = vpop.f32.mrb[6].mxu1  ;;  %v800_v28 = vpop.f32.mrb[7].mxu0  ;;  %v690_v21 = vld [vmem:[%s1232_s3 + $0x20] sm:$0xff] }
 0x102   :  { %v534_v29 = vadd.f32 %v798_v23, %v135_v18  ;;  %v801_v30 = vadd.f32 %v800_v28, %v799_v25  ;;  %v840_v31 = vpop.f32.mrb[7].mxu1  ;;  %v689_v23 = vld [vmem:[%s1232_s3 + $0x18] sm:$0xff] }
 0x103   :  { %v841_v32 = vadd.f32 %v840_v31, %v839_v27  ;;  %v693_v28 = vld [vmem:[%s1232_s3 + $0x38] sm:$0xff] }
 0x104   :  { %v537_v34 = vadd.f32 %v801_v30, %v140_v33  ;;  %v599_v35 = vadd.f32 %v838_v26, %v534_v29 }
 0x106   :  { %v802_v37 = vpop.f32.mrb[8].mxu0  ;;  %v602_v38 = vadd.f32 %v841_v32, %v537_v34 }
 0x107   :  { %v842_v39 = vpop.f32.mrb[8].mxu1  ;;  %v803_v40 = vpop.f32.mrb[9].mxu0 }
 0x108   :  { %v804_v41 = vadd.f32 %v803_v40, %v802_v37  ;;  %v843_v42 = vpop.f32.mrb[9].mxu1  ;;  %v805_v43 = vpop.f32.mrb[10].mxu0 }
 0x109   :  { %v844_v44 = vadd.f32 %v843_v42, %v842_v39  ;;  %v845_v45 = vpop.f32.mrb[10].mxu1  ;;  %v806_v46 = vpop.f32.mrb[11].mxu0 }
 0x10a   :  { %v542_v47 = vadd.f32 %v804_v41, %v145_v36  ;;  %v807_v48 = vadd.f32 %v806_v46, %v805_v43  ;;  %v846_v49 = vpop.f32.mrb[11].mxu1 }
 0x10b   :  { %v847_v51 = vadd.f32 %v846_v49, %v845_v45 }
 0x10c   :  { %v545_v52 = vadd.f32 %v807_v48, %v150_v50  ;;  %v607_v53 = vadd.f32 %v844_v44, %v542_v47 }
 0x10e   :  { %v808_v55 = vpop.f32.mrb[12].mxu0  ;;  %v610_v56 = vadd.f32 %v847_v51, %v545_v52 }
 0x10f   :  { %v848_v57 = vpop.f32.mrb[12].mxu1  ;;  %v809_v58 = vpop.f32.mrb[13].mxu0 }
 0x110   :  { %v810_v59 = vadd.f32 %v809_v58, %v808_v55  ;;  %v849_v60 = vpop.f32.mrb[13].mxu1  ;;  %v811_v61 = vpop.f32.mrb[14].mxu0 }
 0x111   :  { %v850_v62 = vadd.f32 %v849_v60, %v848_v57  ;;  %v851_v63 = vpop.f32.mrb[14].mxu1  ;;  %v812_v0 = vpop.f32.mrb[15].mxu0 }
 0x112   :  { %v550_v1 = vadd.f32 %v810_v59, %v155_v54  ;;  %v813_v2 = vadd.f32 %v812_v0, %v811_v61  ;;  %v852_v3 = vpop.f32.mrb[15].mxu1 }
 0x113   :  { %v853_v5 = vadd.f32 %v852_v3, %v851_v63 }
 0x114   :  { %v553_v6 = vadd.f32 %v813_v2, %v160_v4  ;;  %v615_v7 = vadd.f32 %v850_v62, %v550_v1 }
 0x116   :  { %v872_v8 = vpop.f32.mrb[16].mxu0  ;;  %v618_v10 = vadd.f32 %v853_v5, %v553_v6 }
 0x117   :  { %v664_v11 = vadd.f32 %v872_v8, %v599_v35  ;;  %v876_v12 = vpop.f32.mrb[16].mxu1  ;;  %v655_v14 = vpop.f32.mrb[17].mxu0  ;;  %v691_v35 = vld [vmem:[%s1232_s3 + $0x28] sm:$0xff] }
 0x118   :  { %v680_v16 = vadd.f32 %v876_v12, %v615_v7  ;;  %v656_v18 = vadd.f32 %v655_v14, %v1175_v17  ;;  %v671_v19 = vpop.f32.mrb[17].mxu1  ;;  %v873_v22 = vpop.f32.mrb[18].mxu0  ;;  %v687_v17 = vld [vmem:[%s1232_s3 + $0x8] sm:$0xff] }
 0x119   :  { %v696_v24 = vadd.f32 %v688_v9, %v664_v11  ;;  %v672_v25 = vadd.f32 %v671_v19, %v607_v53  ;;  %v667_v26 = vadd.f32 %v873_v22, %v602_v38  ;;  %v877_v27 = vpop.f32.mrb[18].mxu1  ;;  %v658_v29 = vpop.f32.mrb[19].mxu0 }
 0x11a   :  { %v700_v30 = vadd.f32 %v692_v13, %v680_v16  ;;  %v694_v31 = vadd.f32 %v686_v15, %v656_v18  ;;  %v683_v32 = vadd.f32 %v877_v27, %v618_v10  ;;  %v659_v33 = vadd.f32 %v658_v29, %v1177_v20  ;;  %v674_v34 = vpop.f32.mrb[19].mxu1 }
 0x11b   :  { %704 = vst [vmem:[%s1233_s4 + $0x10] sm:$0xff] %v696_v24  ;;  %v698_v36 = vadd.f32 %v690_v21, %v672_v25  ;;  %v697_v37 = vadd.f32 %v689_v23, %v667_v26  ;;  %v675_v38 = vadd.f32 %v674_v34, %v610_v56 }
 0x11c   :  { %708 = vst [vmem:[%s1233_s4 + $0x30] sm:$0xff] %v700_v30  ;;  %702 = vst [vmem:[%s1233_s4] sm:$0xff] %v694_v31  ;;  %v701_v20 = vadd.f32 %v693_v28, %v683_v32  ;;  %v695_v39 = vadd.f32 %v687_v17, %v659_v33 }
 0x11d   :  { %706 = vst [vmem:[%s1233_s4 + $0x20] sm:$0xff] %v698_v36  ;;  %705 = vst [vmem:[%s1233_s4 + $0x18] sm:$0xff] %v697_v37  ;;  %v699_v40 = vadd.f32 %v691_v35, %v675_v38 }
 0x11e   :  { %709 = vst [vmem:[%s1233_s4 + $0x38] sm:$0xff] %v701_v20  ;;  %703 = vst [vmem:[%s1233_s4 + $0x8] sm:$0xff] %v695_v39 }
 0x11f   :  { %707 = vst [vmem:[%s1233_s4 + $0x28] sm:$0xff] %v699_v40 }

</bundles_post_ra>
